<compile_context>
chip_gen: v5e
topology: v5e:2x2
jax: 0.10.0
libtpu: 0.0.40
codegen_flags: <defaults>
</compile_context>

<pallas_src>
import numpy as np
import jax
import jax.numpy as jnp
from jax.experimental import pallas as pl
from jax.experimental.pallas import tpu as pltpu

# ---------------- static sizes implied by the module ----------------
L = 1598                          # input length: (((L-31)-127)-255) = 1185 = 3*395
K1, K2, K3 = 32, 128, 256
KEFF = K1 + K2 + K3 - 2           # 414: composed (conv1 o conv2 o conv3) kernel length
P = 395                           # pooled length (MaxPool1d(3)) -> Linear(395, 256)

# ---- sublane-folded layout ----
NROW = 8                          # fold factor (TPU sublanes)
SEG = 216                         # fold stride (multiple of 3 and 8); 8*216 >= 1185
POOL_J = SEG // 3                 # pooled outputs per folded row = 72 (8*72 = 576 >= 395)
MCOLS = SEG - 2                   # window-max columns feeding the selection   (214)
X_COLS = SEG + KEFF - 1           # folded input columns (incl. halo)          (629)
X_FLAT = SEG * (NROW - 1) + X_COLS    # flat zero-padded input length          (2141)
NFLAT = NROW * POOL_J             # flattened pooled length fed to Linear(395) (576)


def oned_cnn_kernel(x_ref, teff_ref, sel_ref, b1_ref, w2p_ref, b2_ref,
                    w3p_ref, b3_ref, beff_ref, w1f_hbm_ref,
                    out_ref,
                    pflat_ref, w1f_ref, dma_sem):
    f32 = jnp.float32

    # ---- start classifier-weight DMA (HBM -> VMEM); overlapped with conv/pool work
    w1f_copy = pltpu.make_async_copy(w1f_hbm_ref, w1f_ref, dma_sem)
    w1f_copy.start()

    # ---- conv1 o conv2 o conv3 (all valid, all linear) as ONE banded-Toeplitz
    #      matmul on the MXU, then Sigmoid on the EUP.
    h3 = jnp.dot(x_ref[...], teff_ref[...], preferred_element_type=f32)
    h3 = h3 + beff_ref[0]                                # (8, SEG)
    s = 1.0 / (1.0 + jnp.exp(-h3))

    # ---- MaxPool1d(3): in-register window max (value slices = lane shifts),
    #      then stride-3 selection via a small precomputed 0/1 matmul.
    m = jnp.maximum(jnp.maximum(s[:, 0:MCOLS], s[:, 1:1 + MCOLS]), s[:, 2:2 + MCOLS])
    pooled = jnp.dot(m, sel_ref[...], preferred_element_type=f32)    # (8, POOL_J)

    # ---- flatten (8, 72) -> lane-dense (1, 576) so Linear(395, 256) is ONE matmul.
    #      Flat index 72*r + j matches the torch flatten order; W1 rows >= 395 are
    #      zero in pack_params so the zero-padded folded tail is inert.
    for r in range(NROW):
        pflat_ref[0:1, r * POOL_J:(r + 1) * POOL_J] = pooled[r:r + 1, :]

    # ---- classifier: Linear(395,256) -> LeakyReLU -> Linear(256,64)
    #      -> LeakyReLU -> Linear(64,4) (output kept lane-dense as (1,128), 4 valid)
    w1f_copy.wait()                                      # W1 landed during conv/pool
    y = jnp.dot(pflat_ref[...], w1f_ref[...], preferred_element_type=f32) + b1_ref[...]
    y = jnp.where(y > 0, y, 0.01 * y)
    y = jnp.dot(y, w2p_ref[...], preferred_element_type=f32) + b2_ref[...]
    y = jnp.where(y > 0, y, 0.01 * y)
    y = jnp.dot(y, w3p_ref[...], preferred_element_type=f32) + b3_ref[...]
    out_ref[...] = y


def pack_params(params):
    """One-time packing of the torch-layout parameters for the kernel."""
    (w1, b1c, w2, b2c, w3, b3c, W1, b1, W2, b2, W3, b3) = params
    f32, f64 = jnp.float32, np.float64

    # ---- compose conv3 o conv2 o conv1 into one effective kernel (exact, in f64)
    w1v = np.asarray(w1[0], f64)                         # (3, 32)
    w2v = np.asarray(w2[0, 0], f64)                      # (128,)
    w3v = np.asarray(w3[0, 0], f64)                      # (256,)
    w_eff = np.stack([np.convolve(np.convolve(w3v, w2v), w1v[c])
                      for c in range(3)])                # (3, 414)
    assert w_eff.shape == (3, KEFF)
    s2, s3 = float(w2v.sum()), float(w3v.sum())
    b_eff = float(b3c[0]) + s3 * float(b2c[0]) + s3 * s2 * float(b1c[0])

    # banded-Toeplitz matrix: h3_fold[r, t] = sum_q x_cat[r, q] * Teff[q, t] + b_eff
    teff = np.zeros((3 * X_COLS, SEG), f64)
    for c in range(3):
        for t in range(SEG):
            teff[c * X_COLS + t: c * X_COLS + t + KEFF, t] = w_eff[c]

    # stride-3 MaxPool selection: pooled[r, j] = m[r, 3j]
    sel = np.zeros((MCOLS, POOL_J), np.float32)
    sel[3 * np.arange(POOL_J), np.arange(POOL_J)] = 1.0

    # flat first-linear weight: row i <-> pooled flat index i = 72*r + j.
    # NOTE: rows >= P(=395) MUST stay zero to neutralize pooled values coming from
    # the zero-padded folded tail (they are finite, just meaningless).
    W1f = np.zeros((NFLAT, 256), np.float32)
    W1f[:P, :] = np.asarray(W1, np.float32).T

    b1row = jnp.asarray(b1, f32).reshape(1, 256)
    W2p = jnp.asarray(W2, f32).T                         # (256, 64)
    b2row = jnp.asarray(b2, f32).reshape(1, 64)
    W3p = jnp.zeros((64, 128), f32).at[:, :4].set(jnp.asarray(W3, f32).T)
    b3row = jnp.zeros((1, 128), f32).at[0, :4].set(jnp.asarray(b3, f32))
    beff = jnp.full((1,), b_eff, f32)

    return (jnp.asarray(teff, f32), jnp.asarray(sel), jnp.asarray(W1f),
            beff, b1row, W2p, b2row, W3p, b3row)


@jax.jit
def oned_cnn_forward(x, packed):
    """x: (1, 3, L) float32.  Returns (4,) float32, matching the torch forward."""
    (teff, sel, W1f, beff, b1row, W2p, b2row, W3p, b3row) = packed
    f32 = jnp.float32

    # fold the signal into 8 sublane rows of SEG samples (+ conv halo) and
    # concatenate the 3 channels along the lane axis: (8, 3*X_COLS)
    x_flat = jnp.zeros((3, X_FLAT), f32).at[:, :L].set(x[0].astype(f32))
    x_fold = jnp.stack([x_flat[:, r * SEG:r * SEG + X_COLS] for r in range(NROW)],
                       axis=0)                           # (8, 3, X_COLS)
    x_cat = x_fold.reshape(NROW, 3 * X_COLS)             # (8, 1887)

    vmem = pl.BlockSpec(memory_space=pltpu.MemorySpace.VMEM)
    smem = pl.BlockSpec(memory_space=pltpu.MemorySpace.SMEM)
    hbm = pl.BlockSpec(memory_space=pl.ANY)              # raw ref, manual DMA

    out = pl.pallas_call(
        oned_cnn_kernel,
        out_shape=jax.ShapeDtypeStruct((1, 128), f32),
        in_specs=[vmem, vmem, vmem, vmem, vmem, vmem, vmem, vmem, smem, hbm],
        out_specs=vmem,
        scratch_shapes=[
            pltpu.VMEM((1, NFLAT), f32),                 # lane-dense flattened pooled
            pltpu.VMEM((NFLAT, 256), f32),               # classifier W1 (DMA dst)
            pltpu.SemaphoreType.DMA,                     # DMA completion sem
        ],
    )(x_cat, teff, sel, b1row, W2p, b2row, W3p, b3row, beff, W1f)

    return out[0, :4]


def reference_forward(x, params):
    """Pure-JAX reference reproducing the torch module (eval mode)."""
    (w1, b1c, w2, b2c, w3, b3c, W1, b1, W2, b2, W3, b3) = params

    def conv1d(inp, w, b):                         # inp (C, Lin), w (O, C, K)
        O, C, K = w.shape
        Lo = inp.shape[1] - K + 1
        cols = jnp.stack([inp[:, k:k + Lo] for k in range(K)], axis=1)  # (C, K, Lo)
        return jnp.einsum('ock,ckl->ol', w, cols) + b[:, None]

    h = conv1d(x[0], w1, b1c)
    h = conv1d(h, w2, b2c)
    h = conv1d(h, w3, b3c)
    s = jax.nn.sigmoid(h)                          # (1, 1185)
    pooled = jnp.max(s[0].reshape(-1, 3), axis=1)  # (395,)
    y = W1 @ pooled + b1
    y = jnp.where(y > 0, y, 0.01 * y)
    y = W2 @ y + b2
    y = jnp.where(y > 0, y, 0.01 * y)
    y = W3 @ y + b3
    return y


def init_params(key):
    ks = jax.random.split(key, 12)

    def u(k, shape, fan_in):
        bound = 1.0 / np.sqrt(fan_in)
        return jax.random.uniform(k, shape, jnp.float32, -bound, bound)

    w1 = u(ks[0], (1, 3, K1), 3 * K1); b1c = u(ks[1], (1,), 3 * K1)
    w2 = u(ks[2], (1, 1, K2), K2);     b2c = u(ks[3], (1,), K2)
    w3 = u(ks[4], (1, 1, K3), K3);     b3c = u(ks[5], (1,), K3)
    W1 = u(ks[6], (256, P), P);        b1 = u(ks[7], (256,), P)
    W2 = u(ks[8], (64, 256), 256);     b2 = u(ks[9], (64,), 256)
    W3 = u(ks[10], (4, 64), 64);       b3 = u(ks[11], (4,), 64)
    return (w1, b1c, w2, b2c, w3, b3c, W1, b1, W2, b2, W3, b3)


if __name__ == "__main__":
    root = jax.random.PRNGKey(0)
    k_x, k_p = jax.random.split(root)
    x = jax.random.normal(k_x, (1, 3, L), dtype=jnp.float32)
    params = init_params(k_p)

    packed = pack_params(params)                   # one-time packing (hoisted)

    out = jax.block_until_ready(oned_cnn_forward(x, packed))
    ref = jax.block_until_ready(reference_forward(x, params))
    np.testing.assert_allclose(np.asarray(out), np.asarray(ref),
                               rtol=1e-3, atol=1e-3)
    print("KERNEL_OK")
</pallas_src>

<mosaic_0001>
module attributes {stable_mosaic.version = 11 : i64} {
  func.func @oned_cnn_kernel(%arg0: memref<8x1887xf32, #tpu.memory_space<vmem>>, %arg1: memref<1887x216xf32, #tpu.memory_space<vmem>>, %arg2: memref<214x72xf32, #tpu.memory_space<vmem>>, %arg3: memref<1x256xf32, #tpu.memory_space<vmem>>, %arg4: memref<256x64xf32, #tpu.memory_space<vmem>>, %arg5: memref<1x64xf32, #tpu.memory_space<vmem>>, %arg6: memref<64x128xf32, #tpu.memory_space<vmem>>, %arg7: memref<1x128xf32, #tpu.memory_space<vmem>>, %arg8: memref<1xf32, #tpu.memory_space<smem>>, %arg9: memref<576x256xf32, #tpu.memory_space<any>>, %arg10: memref<1x128xf32, #tpu.memory_space<vmem>>, %arg11: memref<1x576xf32, #tpu.memory_space<vmem>>, %arg12: memref<576x256xf32, #tpu.memory_space<vmem>>, %arg13: memref<!tpu.dma_semaphore, #tpu.memory_space<semaphore_mem>>) attributes {dimension_semantics = [], scalar_prefetch = 0 : i64, scratch_operands = 3 : i64, tpu.core_type = #tpu.core_type<tc>} {
    tpu.enqueue_dma source(%arg9 : memref<576x256xf32, #tpu.memory_space<any>>) target(%arg12 : memref<576x256xf32, #tpu.memory_space<vmem>>) target_semaphore(%arg13 : memref<!tpu.dma_semaphore, #tpu.memory_space<semaphore_mem>>)
    %c0 = arith.constant 0 : index
    %c0_0 = arith.constant 0 : index
    %0 = vector.load %arg0[%c0, %c0_0] : memref<8x1887xf32, #tpu.memory_space<vmem>>, vector<8x1887xf32>
    %c0_1 = arith.constant 0 : index
    %c0_2 = arith.constant 0 : index
    %1 = vector.load %arg1[%c0_1, %c0_2] : memref<1887x216xf32, #tpu.memory_space<vmem>>, vector<1887x216xf32>
    %cst = arith.constant dense<0.000000e+00> : vector<8x216xf32>
    %2 = tpu.matmul %0, %1, %cst {dimension_numbers = #tpu.dot_dimension_numbers<[1], [0], [0], [1], [0, 0, 1, 1], [], []>} : vector<8x1887xf32>, vector<1887x216xf32>, vector<8x216xf32> -> vector<8x216xf32>
    %c0_3 = arith.constant 0 : index
    %3 = memref.load %arg8[%c0_3] : memref<1xf32, #tpu.memory_space<smem>>
    %4 = vector.broadcast %3 : f32 to vector<8x216xf32>
    %5 = arith.addf %2, %4 : vector<8x216xf32>
    %cst_4 = arith.constant 0.000000e+00 : f32
    %6 = vector.broadcast %cst_4 : f32 to vector<8x216xf32>
    %7 = arith.subf %6, %5 : vector<8x216xf32>
    %8 = math.exp %7 : vector<8x216xf32>
    %cst_5 = arith.constant 1.000000e+00 : f32
    %9 = vector.broadcast %cst_5 : f32 to vector<8x216xf32>
    %10 = arith.addf %9, %8 : vector<8x216xf32>
    %cst_6 = arith.constant 1.000000e+00 : f32
    %11 = vector.broadcast %cst_6 : f32 to vector<8x216xf32>
    %12 = arith.divf %11, %10 : vector<8x216xf32>
    %13 = vector.extract_strided_slice %12 {offsets = [0, 0], sizes = [8, 214], strides = [1, 1]} : vector<8x216xf32> to vector<8x214xf32>
    %14 = vector.extract_strided_slice %12 {offsets = [0, 1], sizes = [8, 214], strides = [1, 1]} : vector<8x216xf32> to vector<8x214xf32>
    %15 = arith.maximumf %13, %14 : vector<8x214xf32>
    %16 = vector.extract_strided_slice %12 {offsets = [0, 2], sizes = [8, 214], strides = [1, 1]} : vector<8x216xf32> to vector<8x214xf32>
    %17 = arith.maximumf %15, %16 : vector<8x214xf32>
    %c0_7 = arith.constant 0 : index
    %c0_8 = arith.constant 0 : index
    %18 = vector.load %arg2[%c0_7, %c0_8] : memref<214x72xf32, #tpu.memory_space<vmem>>, vector<214x72xf32>
    %cst_9 = arith.constant dense<0.000000e+00> : vector<8x72xf32>
    %19 = tpu.matmul %17, %18, %cst_9 {dimension_numbers = #tpu.dot_dimension_numbers<[1], [0], [0], [1], [0, 0, 1, 1], [], []>} : vector<8x214xf32>, vector<214x72xf32>, vector<8x72xf32> -> vector<8x72xf32>
    %20 = vector.extract_strided_slice %19 {offsets = [0, 0], sizes = [1, 72], strides = [1, 1]} : vector<8x72xf32> to vector<1x72xf32>
    %c0_10 = arith.constant 0 : index
    %c0_11 = arith.constant 0 : index
    %21 = vector.load %arg11[%c0_10, %c0_11] : memref<1x576xf32, #tpu.memory_space<vmem>>, vector<1x72xf32>
    tpu.vector_store %arg11[%c0_10, %c0_11], %20 {strides = array<i32>} : memref<1x576xf32, #tpu.memory_space<vmem>>, vector<1x72xf32>,
    %22 = vector.extract_strided_slice %19 {offsets = [1, 0], sizes = [1, 72], strides = [1, 1]} : vector<8x72xf32> to vector<1x72xf32>
    %c0_12 = arith.constant 0 : index
    %c72 = arith.constant 72 : index
    %23 = vector.load %arg11[%c0_12, %c72] : memref<1x576xf32, #tpu.memory_space<vmem>>, vector<1x72xf32>
    tpu.vector_store %arg11[%c0_12, %c72], %22 {strides = array<i32>} : memref<1x576xf32, #tpu.memory_space<vmem>>, vector<1x72xf32>,
    %24 = vector.extract_strided_slice %19 {offsets = [2, 0], sizes = [1, 72], strides = [1, 1]} : vector<8x72xf32> to vector<1x72xf32>
    %c0_13 = arith.constant 0 : index
    %c144 = arith.constant 144 : index
    %25 = vector.load %arg11[%c0_13, %c144] : memref<1x576xf32, #tpu.memory_space<vmem>>, vector<1x72xf32>
    tpu.vector_store %arg11[%c0_13, %c144], %24 {strides = array<i32>} : memref<1x576xf32, #tpu.memory_space<vmem>>, vector<1x72xf32>,
    %26 = vector.extract_strided_slice %19 {offsets = [3, 0], sizes = [1, 72], strides = [1, 1]} : vector<8x72xf32> to vector<1x72xf32>
    %c0_14 = arith.constant 0 : index
    %c216 = arith.constant 216 : index
    %27 = vector.load %arg11[%c0_14, %c216] : memref<1x576xf32, #tpu.memory_space<vmem>>, vector<1x72xf32>
    tpu.vector_store %arg11[%c0_14, %c216], %26 {strides = array<i32>} : memref<1x576xf32, #tpu.memory_space<vmem>>, vector<1x72xf32>,
    %28 = vector.extract_strided_slice %19 {offsets = [4, 0], sizes = [1, 72], strides = [1, 1]} : vector<8x72xf32> to vector<1x72xf32>
    %c0_15 = arith.constant 0 : index
    %c288 = arith.constant 288 : index
    %29 = vector.load %arg11[%c0_15, %c288] : memref<1x576xf32, #tpu.memory_space<vmem>>, vector<1x72xf32>
    tpu.vector_store %arg11[%c0_15, %c288], %28 {strides = array<i32>} : memref<1x576xf32, #tpu.memory_space<vmem>>, vector<1x72xf32>,
    %30 = vector.extract_strided_slice %19 {offsets = [5, 0], sizes = [1, 72], strides = [1, 1]} : vector<8x72xf32> to vector<1x72xf32>
    %c0_16 = arith.constant 0 : index
    %c360 = arith.constant 360 : index
    %31 = vector.load %arg11[%c0_16, %c360] : memref<1x576xf32, #tpu.memory_space<vmem>>, vector<1x72xf32>
    tpu.vector_store %arg11[%c0_16, %c360], %30 {strides = array<i32>} : memref<1x576xf32, #tpu.memory_space<vmem>>, vector<1x72xf32>,
    %32 = vector.extract_strided_slice %19 {offsets = [6, 0], sizes = [1, 72], strides = [1, 1]} : vector<8x72xf32> to vector<1x72xf32>
    %c0_17 = arith.constant 0 : index
    %c432 = arith.constant 432 : index
    %33 = vector.load %arg11[%c0_17, %c432] : memref<1x576xf32, #tpu.memory_space<vmem>>, vector<1x72xf32>
    tpu.vector_store %arg11[%c0_17, %c432], %32 {strides = array<i32>} : memref<1x576xf32, #tpu.memory_space<vmem>>, vector<1x72xf32>,
    %34 = vector.extract_strided_slice %19 {offsets = [7, 0], sizes = [1, 72], strides = [1, 1]} : vector<8x72xf32> to vector<1x72xf32>
    %c0_18 = arith.constant 0 : index
    %c504 = arith.constant 504 : index
    %35 = vector.load %arg11[%c0_18, %c504] : memref<1x576xf32, #tpu.memory_space<vmem>>, vector<1x72xf32>
    tpu.vector_store %arg11[%c0_18, %c504], %34 {strides = array<i32>} : memref<1x576xf32, #tpu.memory_space<vmem>>, vector<1x72xf32>,
    tpu.wait_dma2 semaphore(%arg13 : memref<!tpu.dma_semaphore, #tpu.memory_space<semaphore_mem>>) src(%arg9 : memref<576x256xf32, #tpu.memory_space<any>>) dst(%arg12 : memref<576x256xf32, #tpu.memory_space<vmem>>)
    %c0_19 = arith.constant 0 : index
    %c0_20 = arith.constant 0 : index
    %36 = vector.load %arg11[%c0_19, %c0_20] : memref<1x576xf32, #tpu.memory_space<vmem>>, vector<1x576xf32>
    %c0_21 = arith.constant 0 : index
    %c0_22 = arith.constant 0 : index
    %37 = vector.load %arg12[%c0_21, %c0_22] : memref<576x256xf32, #tpu.memory_space<vmem>>, vector<576x256xf32>
    %cst_23 = arith.constant dense<0.000000e+00> : vector<1x256xf32>
    %38 = tpu.matmul %36, %37, %cst_23 {dimension_numbers = #tpu.dot_dimension_numbers<[1], [0], [0], [1], [0, 0, 1, 1], [], []>} : vector<1x576xf32>, vector<576x256xf32>, vector<1x256xf32> -> vector<1x256xf32>
    %c0_24 = arith.constant 0 : index
    %c0_25 = arith.constant 0 : index
    %39 = vector.load %arg3[%c0_24, %c0_25] : memref<1x256xf32, #tpu.memory_space<vmem>>, vector<1x256xf32>
    %40 = arith.addf %38, %39 : vector<1x256xf32>
    %cst_26 = arith.constant 0.000000e+00 : f32
    %41 = vector.broadcast %cst_26 : f32 to vector<1x256xf32>
    %42 = arith.cmpf ogt, %40, %41 : vector<1x256xf32>
    %cst_27 = arith.constant 0.00999999977 : f32
    %43 = vector.broadcast %cst_27 : f32 to vector<1x256xf32>
    %44 = arith.mulf %43, %40 : vector<1x256xf32>
    %45 = arith.select %42, %40, %44 : vector<1x256xi1>, vector<1x256xf32>
    %c0_28 = arith.constant 0 : index
    %c0_29 = arith.constant 0 : index
    %46 = vector.load %arg4[%c0_28, %c0_29] : memref<256x64xf32, #tpu.memory_space<vmem>>, vector<256x64xf32>
    %cst_30 = arith.constant dense<0.000000e+00> : vector<1x64xf32>
    %47 = tpu.matmul %45, %46, %cst_30 {dimension_numbers = #tpu.dot_dimension_numbers<[1], [0], [0], [1], [0, 0, 1, 1], [], []>} : vector<1x256xf32>, vector<256x64xf32>, vector<1x64xf32> -> vector<1x64xf32>
    %c0_31 = arith.constant 0 : index
    %c0_32 = arith.constant 0 : index
    %48 = vector.load %arg5[%c0_31, %c0_32] : memref<1x64xf32, #tpu.memory_space<vmem>>, vector<1x64xf32>
    %49 = arith.addf %47, %48 : vector<1x64xf32>
    %cst_33 = arith.constant 0.000000e+00 : f32
    %50 = vector.broadcast %cst_33 : f32 to vector<1x64xf32>
    %51 = arith.cmpf ogt, %49, %50 : vector<1x64xf32>
    %cst_34 = arith.constant 0.00999999977 : f32
    %52 = vector.broadcast %cst_34 : f32 to vector<1x64xf32>
    %53 = arith.mulf %52, %49 : vector<1x64xf32>
    %54 = arith.select %51, %49, %53 : vector<1x64xi1>, vector<1x64xf32>
    %c0_35 = arith.constant 0 : index
    %c0_36 = arith.constant 0 : index
    %55 = vector.load %arg6[%c0_35, %c0_36] : memref<64x128xf32, #tpu.memory_space<vmem>>, vector<64x128xf32>
    %cst_37 = arith.constant dense<0.000000e+00> : vector<1x128xf32>
    %56 = tpu.matmul %54, %55, %cst_37 {dimension_numbers = #tpu.dot_dimension_numbers<[1], [0], [0], [1], [0, 0, 1, 1], [], []>} : vector<1x64xf32>, vector<64x128xf32>, vector<1x128xf32> -> vector<1x128xf32>
    %c0_38 = arith.constant 0 : index
    %c0_39 = arith.constant 0 : index
    %57 = vector.load %arg7[%c0_38, %c0_39] : memref<1x128xf32, #tpu.memory_space<vmem>>, vector<1x128xf32>
    %58 = arith.addf %56, %57 : vector<1x128xf32>
    %c0_40 = arith.constant 0 : index
    %c0_41 = arith.constant 0 : index
    %59 = vector.load %arg10[%c0_40, %c0_41] : memref<1x128xf32, #tpu.memory_space<vmem>>, vector<1x128xf32>
    tpu.vector_store %arg10[%c0_40, %c0_41], %58 {strides = array<i32>} : memref<1x128xf32, #tpu.memory_space<vmem>>, vector<1x128xf32>,
    return
  }
}

</mosaic_0001>

<bundles_post_ra>
// kernel: oned_cnn_forward.1
= control target key start
LH: loop header
LB: loop body
LE: loop exit
PB: predicated region body
PF: predicated region fallthrough
CT: control target
= control target key end

     0   :  { %s4918_s0 = inlined_call_operand.vmem [shape: f32[8,1887], index: 0, kind: input, shape index: {}]   ;;  %s4919_s1 = inlined_call_operand.vmem [shape: f32[1887,216], index: 1, kind: input, shape index: {}]   ;;  %s4920_s2 = inlined_call_operand.vmem [shape: f32[214,72], index: 2, kind: input, shape index: {}]   ;;  %s4921_s3 = inlined_call_operand.vmem [shape: f32[1,256], index: 3, kind: input, shape index: {}]   ;;  %s4922_s4 = inlined_call_operand.vmem [shape: f32[256,64], index: 4, kind: input, shape index: {}]   ;;  %s4923_s5 = inlined_call_operand.vmem [shape: f32[1,64], index: 5, kind: input, shape index: {}]   ;;  %s4924_s6 = inlined_call_operand.vmem [shape: f32[64,128], index: 6, kind: input, shape index: {}]   ;;  %s4925_s7 = inlined_call_operand.vmem [shape: f32[1,128], index: 7, kind: input, shape index: {}]   ;;  %s4926_s8 = inlined_call_operand.<no memory space> [shape: f32[1], index: 8, kind: input, shape index: {}]   ;;  %s4927_s9 = inlined_call_operand.vmem [shape: f32[576,256], index: 9, kind: input, shape index: {}]   ;;  %s4928_s10 = inlined_call_operand.vmem [shape: f32[1,128], index: 10, kind: output, shape index: {}]  }
   0x1   :  { %v2260_v0 = vld [vmem:[%s4927_s9] sm:$0xff]  ;;  %v2265_v1 = vld [vmem:[%s4927_s9 + $0x8] sm:$0xff]  ;;  %v2270_v2 = vld [vmem:[%s4927_s9 + $0x10] sm:$0xff] }
   0x2   :  { %4929 = vst [vmem:[#allocation8_spill] sm:$0xff] %v2260_v0  ;;  %v2275_v3 = vld [vmem:[%s4927_s9 + $0x18] sm:$0xff]  ;;  %v2280_v4 = vld [vmem:[%s4927_s9 + $0x20] sm:$0xff]  ;;  %v2285_v5 = vld [vmem:[%s4927_s9 + $0x28] sm:$0xff] }
   0x3   :  { %4930 = vst [vmem:[#allocation9_spill] sm:$0xff] %v2265_v1  ;;  %v2290_v6 = vld [vmem:[%s4927_s9 + $0x30] sm:$0xff]  ;;  %v2295_v7 = vld [vmem:[%s4927_s9 + $0x38] sm:$0xff]  ;;  %v2300_v8 = vld [vmem:[%s4927_s9 + $0x40] sm:$0xff] }
   0x4   :  { %4931 = vst [vmem:[#allocation10_spill] sm:$0xff] %v2270_v2  ;;  %v2305_v9 = vld [vmem:[%s4927_s9 + $0x48] sm:$0xff]  ;;  %v2310_v10 = vld [vmem:[%s4927_s9 + $0x50] sm:$0xff]  ;;  %v2315_v11 = vld [vmem:[%s4927_s9 + $0x58] sm:$0xff] }
   0x5   :  { %4932 = vst [vmem:[#allocation11_spill] sm:$0xff] %v2275_v3  ;;  %v2320_v12 = vld [vmem:[%s4927_s9 + $0x60] sm:$0xff]  ;;  %v2325_v13 = vld [vmem:[%s4927_s9 + $0x68] sm:$0xff]  ;;  %v2330_v14 = vld [vmem:[%s4927_s9 + $0x70] sm:$0xff] }
   0x6   :  { %4933 = vst [vmem:[#allocation12_spill] sm:$0xff] %v2280_v4  ;;  %v2335_v15 = vld [vmem:[%s4927_s9 + $0x78] sm:$0xff]  ;;  %v2340_v16 = vld [vmem:[%s4927_s9 + $0x80] sm:$0xff]  ;;  %v2345_v17 = vld [vmem:[%s4927_s9 + $0x88] sm:$0xff] }
   0x7   :  { %4934 = vst [vmem:[#allocation13_spill] sm:$0xff] %v2285_v5  ;;  %v2350_v18 = vld [vmem:[%s4927_s9 + $0x90] sm:$0xff]  ;;  %v2355_v19 = vld [vmem:[%s4927_s9 + $0x98] sm:$0xff]  ;;  %v2360_v20 = vld [vmem:[%s4927_s9 + $0xa0] sm:$0xff] }
   0x8   :  { %4935 = vst [vmem:[#allocation14_spill] sm:$0xff] %v2290_v6  ;;  %v2365_v21 = vld [vmem:[%s4927_s9 + $0xa8] sm:$0xff]  ;;  %v2370_v22 = vld [vmem:[%s4927_s9 + $0xb0] sm:$0xff]  ;;  %v2375_v23 = vld [vmem:[%s4927_s9 + $0xb8] sm:$0xff] }
   0x9   :  { %4936 = vst [vmem:[#allocation15_spill] sm:$0xff] %v2295_v7  ;;  %v2380_v24 = vld [vmem:[%s4927_s9 + $0xc0] sm:$0xff]  ;;  %v2385_v25 = vld [vmem:[%s4927_s9 + $0xc8] sm:$0xff]  ;;  %v2390_v26 = vld [vmem:[%s4927_s9 + $0xd0] sm:$0xff] }
   0xa   :  { %4937 = vst [vmem:[#allocation16_spill] sm:$0xff] %v2300_v8  ;;  %v2395_v27 = vld [vmem:[%s4927_s9 + $0xd8] sm:$0xff]  ;;  %v2400_v28 = vld [vmem:[%s4927_s9 + $0xe0] sm:$0xff]  ;;  %v2405_v29 = vld [vmem:[%s4927_s9 + $0xe8] sm:$0xff] }
   0xb   :  { %4938 = vst [vmem:[#allocation17_spill] sm:$0xff] %v2305_v9  ;;  %v2410_v30 = vld [vmem:[%s4927_s9 + $0xf0] sm:$0xff]  ;;  %v2415_v31 = vld [vmem:[%s4927_s9 + $0xf8] sm:$0xff]  ;;  %v2420_v32 = vld [vmem:[%s4927_s9 + $0x100] sm:$0xff] }
   0xc   :  { %4939 = vst [vmem:[#allocation18_spill] sm:$0xff] %v2315_v11  ;;  %v2425_v33 = vld [vmem:[%s4927_s9 + $0x108] sm:$0xff]  ;;  %v2430_v34 = vld [vmem:[%s4927_s9 + $0x110] sm:$0xff]  ;;  %v2435_v35 = vld [vmem:[%s4927_s9 + $0x118] sm:$0xff] }
   0xd   :  { %4940 = vst [vmem:[#allocation19_spill] sm:$0xff] %v2325_v13  ;;  %v2440_v36 = vld [vmem:[%s4927_s9 + $0x120] sm:$0xff]  ;;  %v2445_v37 = vld [vmem:[%s4927_s9 + $0x128] sm:$0xff]  ;;  %v2450_v38 = vld [vmem:[%s4927_s9 + $0x130] sm:$0xff] }
   0xe   :  { %4941 = vst [vmem:[#allocation20_spill] sm:$0xff] %v2335_v15  ;;  %v2455_v39 = vld [vmem:[%s4927_s9 + $0x138] sm:$0xff]  ;;  %v2460_v40 = vld [vmem:[%s4927_s9 + $0x140] sm:$0xff]  ;;  %v2465_v41 = vld [vmem:[%s4927_s9 + $0x148] sm:$0xff] }
   0xf   :  { %4942 = vst [vmem:[#allocation21_spill] sm:$0xff] %v2345_v17  ;;  %v2470_v42 = vld [vmem:[%s4927_s9 + $0x150] sm:$0xff]  ;;  %v2475_v43 = vld [vmem:[%s4927_s9 + $0x158] sm:$0xff]  ;;  %v2480_v44 = vld [vmem:[%s4927_s9 + $0x160] sm:$0xff] }
  0x10   :  { %4943 = vst [vmem:[#allocation22_spill] sm:$0xff] %v2355_v19  ;;  %v2485_v45 = vld [vmem:[%s4927_s9 + $0x168] sm:$0xff]  ;;  %v2490_v46 = vld [vmem:[%s4927_s9 + $0x170] sm:$0xff]  ;;  %v2495_v47 = vld [vmem:[%s4927_s9 + $0x178] sm:$0xff] }
  0x11   :  { %4944 = vst [vmem:[#allocation23_spill] sm:$0xff] %v2365_v21  ;;  %v2500_v48 = vld [vmem:[%s4927_s9 + $0x180] sm:$0xff]  ;;  %v2505_v49 = vld [vmem:[%s4927_s9 + $0x188] sm:$0xff]  ;;  %v2510_v50 = vld [vmem:[%s4927_s9 + $0x190] sm:$0xff] }
  0x12   :  { %4945 = vst [vmem:[#allocation24_spill] sm:$0xff] %v2375_v23  ;;  %v2515_v51 = vld [vmem:[%s4927_s9 + $0x198] sm:$0xff]  ;;  %v2520_v52 = vld [vmem:[%s4927_s9 + $0x1a0] sm:$0xff]  ;;  %v2525_v53 = vld [vmem:[%s4927_s9 + $0x1a8] sm:$0xff] }
  0x13   :  { %4946 = vst [vmem:[#allocation25_spill] sm:$0xff] %v2385_v25  ;;  %v2530_v54 = vld [vmem:[%s4927_s9 + $0x1b0] sm:$0xff]  ;;  %v2535_v55 = vld [vmem:[%s4927_s9 + $0x1b8] sm:$0xff]  ;;  %v2540_v56 = vld [vmem:[%s4927_s9 + $0x1c0] sm:$0xff] }
  0x14   :  { %4947 = vst [vmem:[#allocation26_spill] sm:$0xff] %v2395_v27  ;;  %v2545_v57 = vld [vmem:[%s4927_s9 + $0x1c8] sm:$0xff]  ;;  %v2550_v58 = vld [vmem:[%s4927_s9 + $0x1d0] sm:$0xff]  ;;  %v2555_v59 = vld [vmem:[%s4927_s9 + $0x1d8] sm:$0xff] }
  0x15   :  { %4948 = vst [vmem:[#allocation27_spill] sm:$0xff] %v2405_v29  ;;  %v2560_v60 = vld [vmem:[%s4927_s9 + $0x1e0] sm:$0xff]  ;;  %v2565_v61 = vld [vmem:[%s4927_s9 + $0x1e8] sm:$0xff]  ;;  %v2570_v62 = vld [vmem:[%s4927_s9 + $0x1f0] sm:$0xff] }
  0x16   :  { %4949 = vst [vmem:[#allocation28_spill] sm:$0xff] %v2415_v31  ;;  %v2575_v63 = vld [vmem:[%s4927_s9 + $0x1f8] sm:$0xff]  ;;  %v2590_v1 = vld [vmem:[%s4927_s9 + $0x210] sm:$0xff]  ;;  %v2600_v3 = vld [vmem:[%s4927_s9 + $0x220] sm:$0xff] }
  0x17   :  { %4950 = vst [vmem:[#allocation29_spill] sm:$0xff] %v2420_v32  ;;  %v2615_v5 = vld [vmem:[%s4927_s9 + $0x238] sm:$0xff]  ;;  %v2745_v19 = vld [vmem:[%s4927_s9 + $0x308] sm:$0xff]  ;;  %v2760_v21 = vld [vmem:[%s4927_s9 + $0x320] sm:$0xff] }
  0x18   :  { %4951 = vst [vmem:[#allocation30_spill] sm:$0xff] %v2425_v33  ;;  %v2580_v33 = vld [vmem:[%s4927_s9 + $0x200] sm:$0xff]  ;;  %v2635_v7 = vld [vmem:[%s4927_s9 + $0x258] sm:$0xff]  ;;  %v2785_v23 = vld [vmem:[%s4927_s9 + $0x348] sm:$0xff] }
  0x19   :  { %4952 = vst [vmem:[#allocation31_spill] sm:$0xff] %v2430_v34  ;;  %v2655_v9 = vld [vmem:[%s4927_s9 + $0x278] sm:$0xff]  ;;  %v2805_v25 = vld [vmem:[%s4927_s9 + $0x368] sm:$0xff] }
  0x1a   :  { %4953 = vst [vmem:[#allocation32_spill] sm:$0xff] %v2435_v35  ;;  %v2585_v35 = vld [vmem:[%s4927_s9 + $0x208] sm:$0xff]  ;;  %v2675_v11 = vld [vmem:[%s4927_s9 + $0x298] sm:$0xff] }
  0x1b   :  { %4954 = vst [vmem:[#allocation33_spill] sm:$0xff] %v2440_v36  ;;  %v2695_v13 = vld [vmem:[%s4927_s9 + $0x2b8] sm:$0xff]  ;;  %v2865_v29 = vld [vmem:[%s4927_s9 + $0x3c8] sm:$0xff] }
  0x1c   :  { %4955 = vst [vmem:[#allocation34_spill] sm:$0xff] %v2445_v37  ;;  %v2595_v37 = vld [vmem:[%s4927_s9 + $0x218] sm:$0xff]  ;;  %v2885_v31 = vld [vmem:[%s4927_s9 + $0x3e8] sm:$0xff] }
  0x1d   :  { %4956 = vst [vmem:[#allocation35_spill] sm:$0xff] %v2450_v38  ;;  %v2715_v15 = vld [vmem:[%s4927_s9 + $0x2d8] sm:$0xff]  ;;  %v2905_v0 = vld [vmem:[%s4927_s9 + $0x408] sm:$0xff] }
  0x1e   :  { %4957 = vst [vmem:[#allocation36_spill] sm:$0xff] %v2455_v39  ;;  %v2605_v39 = vld [vmem:[%s4927_s9 + $0x228] sm:$0xff]  ;;  %v2735_v17 = vld [vmem:[%s4927_s9 + $0x2f8] sm:$0xff] }
  0x1f   :  { %4958 = vst [vmem:[#allocation37_spill] sm:$0xff] %v2460_v40  ;;  %v2835_v27 = vld [vmem:[%s4927_s9 + $0x398] sm:$0xff] }
  0x20   :  { %4959 = vst [vmem:[#allocation38_spill] sm:$0xff] %v2465_v41  ;;  %v2625_v41 = vld [vmem:[%s4927_s9 + $0x248] sm:$0xff]  ;;  %v2895_v32 = vld [vmem:[%s4927_s9 + $0x3f8] sm:$0xff] }
  0x21   :  { %4960 = vst [vmem:[#allocation39_spill] sm:$0xff] %v2470_v42 }
  0x22   :  { %4961 = vst [vmem:[#allocation40_spill] sm:$0xff] %v2475_v43  ;;  %v2645_v43 = vld [vmem:[%s4927_s9 + $0x268] sm:$0xff] }
  0x23   :  { %4962 = vst [vmem:[#allocation41_spill] sm:$0xff] %v2485_v45  ;;  %v2665_v45 = vld [vmem:[%s4927_s9 + $0x288] sm:$0xff] }
  0x24   :  { %4963 = vst [vmem:[#allocation42_spill] sm:$0xff] %v2495_v47  ;;  %v2685_v47 = vld [vmem:[%s4927_s9 + $0x2a8] sm:$0xff] }
  0x25   :  { %4964 = vst [vmem:[#allocation43_spill] sm:$0xff] %v2505_v49  ;;  %v2705_v49 = vld [vmem:[%s4927_s9 + $0x2c8] sm:$0xff] }
  0x26   :  { %4965 = vst [vmem:[#allocation44_spill] sm:$0xff] %v2515_v51  ;;  %v2725_v51 = vld [vmem:[%s4927_s9 + $0x2e8] sm:$0xff] }
  0x27   :  { %4966 = vst [vmem:[#allocation45_spill] sm:$0xff] %v2525_v53  ;;  %v2740_v53 = vld [vmem:[%s4927_s9 + $0x300] sm:$0xff] }
  0x28   :  { %4967 = vst [vmem:[#allocation46_spill] sm:$0xff] %v2535_v55  ;;  %v2750_v55 = vld [vmem:[%s4927_s9 + $0x310] sm:$0xff] }
  0x29   :  { %4968 = vst [vmem:[#allocation47_spill] sm:$0xff] %v2545_v57  ;;  %v2765_v57 = vld [vmem:[%s4927_s9 + $0x328] sm:$0xff] }
  0x2a   :  { %4969 = vst [vmem:[#allocation48_spill] sm:$0xff] %v2555_v59  ;;  %v2795_v59 = vld [vmem:[%s4927_s9 + $0x358] sm:$0xff] }
  0x2b   :  { %4970 = vst [vmem:[#allocation49_spill] sm:$0xff] %v2565_v61  ;;  %v2825_v61 = vld [vmem:[%s4927_s9 + $0x388] sm:$0xff] }
  0x2c   :  { %4971 = vst [vmem:[#allocation50_spill] sm:$0xff] %v2575_v63  ;;  %v2855_v63 = vld [vmem:[%s4927_s9 + $0x3b8] sm:$0xff] }
  0x2d   :  { %4972 = vst [vmem:[#allocation51_spill] sm:$0xff] %v2580_v33  ;;  %v2875_v33 = vld [vmem:[%s4927_s9 + $0x3d8] sm:$0xff] }
  0x2e   :  { %4973 = vst [vmem:[#allocation52_spill] sm:$0xff] %v2585_v35  ;;  %v2610_v35 = vld [vmem:[%s4927_s9 + $0x230] sm:$0xff] }
  0x2f   :  { %4974 = vst [vmem:[#allocation53_spill] sm:$0xff] %v2590_v1 }
  0x30   :  { %4975 = vst [vmem:[#allocation54_spill] sm:$0xff] %v2595_v37  ;;  %v2620_v37 = vld [vmem:[%s4927_s9 + $0x240] sm:$0xff] }
  0x31   :  { %4976 = vst [vmem:[#allocation55_spill] sm:$0xff] %v2600_v3 }
  0x32   :  { %4977 = vst [vmem:[#allocation56_spill] sm:$0xff] %v2605_v39  ;;  %v2630_v39 = vld [vmem:[%s4927_s9 + $0x250] sm:$0xff] }
  0x33   :  { %4978 = vst [vmem:[#allocation57_spill] sm:$0xff] %v2610_v35 }
  0x34   :  { %4979 = vst [vmem:[#allocation58_spill] sm:$0xff] %v2615_v5  ;;  %v2640_v5 = vld [vmem:[%s4927_s9 + $0x260] sm:$0xff] }
  0x35   :  { %4980 = vst [vmem:[#allocation59_spill] sm:$0xff] %v2620_v37 }
  0x36   :  { %4981 = vst [vmem:[#allocation60_spill] sm:$0xff] %v2625_v41  ;;  %v2650_v41 = vld [vmem:[%s4927_s9 + $0x270] sm:$0xff] }
  0x37   :  { %4982 = vst [vmem:[#allocation61_spill] sm:$0xff] %v2630_v39 }
  0x38   :  { %4983 = vst [vmem:[#allocation62_spill] sm:$0xff] %v2635_v7  ;;  %v2660_v7 = vld [vmem:[%s4927_s9 + $0x280] sm:$0xff] }
  0x39   :  { %4984 = vst [vmem:[#allocation63_spill] sm:$0xff] %v2645_v43  ;;  %v2670_v43 = vld [vmem:[%s4927_s9 + $0x290] sm:$0xff] }
  0x3a   :  { %4985 = vst [vmem:[#allocation64_spill] sm:$0xff] %v2655_v9  ;;  %v2680_v9 = vld [vmem:[%s4927_s9 + $0x2a0] sm:$0xff] }
  0x3b   :  { %4986 = vst [vmem:[#allocation65_spill] sm:$0xff] %v2665_v45  ;;  %v2690_v45 = vld [vmem:[%s4927_s9 + $0x2b0] sm:$0xff] }
  0x3c   :  { %4987 = vst [vmem:[#allocation66_spill] sm:$0xff] %v2675_v11  ;;  %v2700_v11 = vld [vmem:[%s4927_s9 + $0x2c0] sm:$0xff] }
  0x3d   :  { %4988 = vst [vmem:[#allocation67_spill] sm:$0xff] %v2685_v47  ;;  %v2710_v47 = vld [vmem:[%s4927_s9 + $0x2d0] sm:$0xff] }
  0x3e   :  { %4989 = vst [vmem:[#allocation68_spill] sm:$0xff] %v2695_v13  ;;  %v2720_v13 = vld [vmem:[%s4927_s9 + $0x2e0] sm:$0xff] }
  0x3f   :  { %4990 = vst [vmem:[#allocation69_spill] sm:$0xff] %v2705_v49  ;;  %v2730_v49 = vld [vmem:[%s4927_s9 + $0x2f0] sm:$0xff] }
  0x40   :  { %4991 = vst [vmem:[#allocation70_spill] sm:$0xff] %v2715_v15  ;;  %v2755_v15 = vld [vmem:[%s4927_s9 + $0x318] sm:$0xff] }
  0x41   :  { %4992 = vst [vmem:[#allocation71_spill] sm:$0xff] %v2725_v51  ;;  %v2775_v51 = vld [vmem:[%s4927_s9 + $0x338] sm:$0xff] }
  0x42   :  { %4993 = vst [vmem:[#allocation72_spill] sm:$0xff] %v2735_v17  ;;  %v2815_v17 = vld [vmem:[%s4927_s9 + $0x378] sm:$0xff] }
  0x43   :  { %4994 = vst [vmem:[#allocation73_spill] sm:$0xff] %v2740_v53  ;;  %v2845_v53 = vld [vmem:[%s4927_s9 + $0x3a8] sm:$0xff] }
  0x44   :  { %4995 = vst [vmem:[#allocation74_spill] sm:$0xff] %v2745_v19  ;;  %v2770_v19 = vld [vmem:[%s4927_s9 + $0x330] sm:$0xff] }
  0x45   :  { %4996 = vst [vmem:[#allocation75_spill] sm:$0xff] %v2750_v55  ;;  %v2915_v55 = vld [vmem:[%s4927_s9 + $0x418] sm:$0xff] }
  0x46   :  { %4997 = vst [vmem:[#allocation76_spill] sm:$0xff] %v2755_v15  ;;  %v2780_v15 = vld [vmem:[%s4927_s9 + $0x340] sm:$0xff] }
  0x47   :  { %4998 = vst [vmem:[#allocation77_spill] sm:$0xff] %v2760_v21 }
  0x48   :  { %4999 = vst [vmem:[#allocation78_spill] sm:$0xff] %v2765_v57  ;;  %v2790_v57 = vld [vmem:[%s4927_s9 + $0x350] sm:$0xff] }
  0x49   :  { %5000 = vst [vmem:[#allocation79_spill] sm:$0xff] %v2770_v19 }
  0x4a   :  { %5001 = vst [vmem:[#allocation80_spill] sm:$0xff] %v2775_v51  ;;  %v2800_v51 = vld [vmem:[%s4927_s9 + $0x360] sm:$0xff] }
  0x4b   :  { %5002 = vst [vmem:[#allocation81_spill] sm:$0xff] %v2780_v15 }
  0x4c   :  { %5003 = vst [vmem:[#allocation82_spill] sm:$0xff] %v2785_v23  ;;  %v2810_v23 = vld [vmem:[%s4927_s9 + $0x370] sm:$0xff] }
  0x4d   :  { %5004 = vst [vmem:[#allocation83_spill] sm:$0xff] %v2790_v57 }
  0x4e   :  { %5005 = vst [vmem:[#allocation84_spill] sm:$0xff] %v2795_v59  ;;  %v2820_v59 = vld [vmem:[%s4927_s9 + $0x380] sm:$0xff] }
  0x4f   :  { %5006 = vst [vmem:[#allocation85_spill] sm:$0xff] %v2805_v25  ;;  %v2830_v25 = vld [vmem:[%s4927_s9 + $0x390] sm:$0xff] }
  0x50   :  { %5007 = vst [vmem:[#allocation86_spill] sm:$0xff] %v2815_v17  ;;  %v2840_v17 = vld [vmem:[%s4927_s9 + $0x3a0] sm:$0xff] }
  0x51   :  { %5008 = vst [vmem:[#allocation87_spill] sm:$0xff] %v2825_v61  ;;  %v2850_v61 = vld [vmem:[%s4927_s9 + $0x3b0] sm:$0xff] }
  0x52   :  { %5009 = vst [vmem:[#allocation88_spill] sm:$0xff] %v2835_v27  ;;  %v2860_v27 = vld [vmem:[%s4927_s9 + $0x3c0] sm:$0xff] }
  0x53   :  { %5010 = vst [vmem:[#allocation89_spill] sm:$0xff] %v2845_v53  ;;  %v2870_v53 = vld [vmem:[%s4927_s9 + $0x3d0] sm:$0xff] }
  0x54   :  { %5011 = vst [vmem:[#allocation90_spill] sm:$0xff] %v2855_v63  ;;  %v2880_v63 = vld [vmem:[%s4927_s9 + $0x3e0] sm:$0xff] }
  0x55   :  { %5012 = vst [vmem:[#allocation91_spill] sm:$0xff] %v2865_v29  ;;  %v2890_v29 = vld [vmem:[%s4927_s9 + $0x3f0] sm:$0xff] }
  0x56   :  { %5013 = vst [vmem:[#allocation92_spill] sm:$0xff] %v2875_v33  ;;  %v2900_v33 = vld [vmem:[%s4927_s9 + $0x400] sm:$0xff] }
  0x57   :  { %5014 = vst [vmem:[#allocation93_spill] sm:$0xff] %v2885_v31  ;;  %v2910_v31 = vld [vmem:[%s4927_s9 + $0x410] sm:$0xff] }
  0x58   :  { %5015 = vst [vmem:[#allocation94_spill] sm:$0xff] %v2895_v32  ;;  %v2920_v32 = vld [vmem:[%s4927_s9 + $0x420] sm:$0xff] }
  0x59   :  { %5016 = vst [vmem:[#allocation95_spill] sm:$0xff] %v2900_v33  ;;  %v2925_v33 = vld [vmem:[%s4927_s9 + $0x428] sm:$0xff] }
  0x5a   :  { %5017 = vst [vmem:[#allocation96_spill] sm:$0xff] %v2905_v0  ;;  %v2930_v0 = vld [vmem:[%s4927_s9 + $0x430] sm:$0xff] }
  0x5b   :  { %5018 = vst [vmem:[#allocation97_spill] sm:$0xff] %v2910_v31  ;;  %v2935_v31 = vld [vmem:[%s4927_s9 + $0x438] sm:$0xff] }
  0x5c   :  { %5019 = vst [vmem:[#allocation98_spill] sm:$0xff] %v2915_v55  ;;  %v2940_v55 = vld [vmem:[%s4927_s9 + $0x440] sm:$0xff] }
  0x5d   :  { %5020 = vst [vmem:[#allocation99_spill] sm:$0xff] %v2920_v32  ;;  %v2945_v32 = vld [vmem:[%s4927_s9 + $0x448] sm:$0xff] }
  0x5e   :  { %5021 = vst [vmem:[#allocation100_spill] sm:$0xff] %v2925_v33  ;;  %v2950_v33 = vld [vmem:[%s4927_s9 + $0x450] sm:$0xff] }
  0x5f   :  { %5022 = vst [vmem:[#allocation101_spill] sm:$0xff] %v2930_v0  ;;  %v2955_v0 = vld [vmem:[%s4927_s9 + $0x458] sm:$0xff] }
  0x60   :  { %5023 = vst [vmem:[#allocation102_spill] sm:$0xff] %v2935_v31  ;;  %v2960_v31 = vld [vmem:[%s4927_s9 + $0x460] sm:$0xff] }
  0x61   :  { %5024 = vst [vmem:[#allocation103_spill] sm:$0xff] %v2940_v55  ;;  %v2965_v55 = vld [vmem:[%s4927_s9 + $0x468] sm:$0xff] }
  0x62   :  { %5025 = vst [vmem:[#allocation104_spill] sm:$0xff] %v2945_v32  ;;  %v2970_v32 = vld [vmem:[%s4927_s9 + $0x470] sm:$0xff] }
  0x63   :  { %5026 = vst [vmem:[#allocation105_spill] sm:$0xff] %v2950_v33  ;;  %v2975_v33 = vld [vmem:[%s4927_s9 + $0x478] sm:$0xff] }
  0x64   :  { %5027 = vst [vmem:[#allocation106_spill] sm:$0xff] %v2955_v0 }
  0x65   :  { %5028 = vst [vmem:[#allocation107_spill] sm:$0xff] %v2960_v31 }
  0x66   :  { %5029 = vst [vmem:[#allocation108_spill] sm:$0xff] %v2965_v55 }
  0x67   :  { %5030 = vst [vmem:[#allocation109_spill] sm:$0xff] %v2970_v32 }
  0x68   :  { %5031 = vst [vmem:[#allocation110_spill] sm:$0xff] %v2975_v33 }
  0x69   :  { %337 = vsyncadd [#allocation4], 18432  ;;  %v383_v0 = vld [vmem:[%s4919_s1 + $0xf0] sm:$0xff]  ;;  %v381_v32 = vld [vmem:[%s4919_s1 + $0xe0] sm:$0xff]  ;;  %vm831_vm0 = vcmask 1046528   ;;  %vm827_vm1 = vcmask 777216  }
  0x6a   :  { %v447_v31 = vld [vmem:[%s4919_s1 + $0x2f0] sm:$0xff]  ;;  %838 = vmatpush.msra.mxu0 %v383_v0  ;;  %v445_v1 = vld [vmem:[%s4919_s1 + $0x2e0] sm:$0xff]  ;;  %v406_v15 = vld [vmem:[%s4919_s1 + $0x1a8] sm:$0xff]  ;;  %s2194_s22 = smov 126   ;;  %vm1529_vm6 = vcmask 1045504   ;;  %vm1482_vm11 = vcmask 1039360  }
  0x6b   :  { %878 = vmatpush.msra.mxu2 %v447_v31  ;;  %v479_v55 = vld [vmem:[%s4919_s1 + $0x3f0] sm:$0xff]  ;;  %v477_v0 = vld [vmem:[%s4919_s1 + $0x3e0] sm:$0xff]  ;;  %v444_v37 = vld [vmem:[%s4919_s1 + $0x2d8] sm:$0xff]  ;;  %vm1492_vm12 = vcmask 1031168   ;;  %vm1525_vm13 = vcmask 703488   ;;  %s2197_s11 = smov 88  }
  0x6c   :  { %v415_v33 = vld [vmem:[%s4919_s1 + $0x1f0] sm:$0xff]  ;;  %898 = vmatpush.msra.mxu3 %v479_v55  ;;  %839 = vmatpush.msra.mxu0 %v381_v32  ;;  %v413_v34 = vld [vmem:[%s4919_s1 + $0x1e0] sm:$0xff]  ;;  %v506_v40 = vld [vmem:[%s4919_s1 + $0x4c8] sm:$0xff]  ;;  %s2198_s12 = smov 32   ;;  %s2199_s13 = smov 104  }
  0x6d   :  { %858 = vmatpush.msra.mxu1 %v415_v33  ;;  %v379_v31 = vld [vmem:[%s4919_s1 + $0xd0] sm:$0xff]  ;;  %879 = vmatpush.msra.mxu2 %v445_v1  ;;  %v377_v2 = vld [vmem:[%s4919_s1 + $0xc0] sm:$0xff]  ;;  %s2200_s14 = smov 48   ;;  %s2201_s15 = smov 120  }
  0x6e   :  { %v443_v33 = vld [vmem:[%s4919_s1 + $0x2d0] sm:$0xff]  ;;  %899 = vmatpush.msra.mxu3 %v477_v0  ;;  %v441_v32 = vld [vmem:[%s4919_s1 + $0x2c0] sm:$0xff]  ;;  %840 = vmatpush.msra.mxu0 %v379_v31 }
  0x6f   :  { %v475_v55 = vld [vmem:[%s4919_s1 + $0x3d0] sm:$0xff]  ;;  %859 = vmatpush.msra.mxu1 %v413_v34  ;;  %880 = vmatpush.msra.mxu2 %v443_v33  ;;  %v473_v21 = vld [vmem:[%s4919_s1 + $0x3c0] sm:$0xff] }
  0x70   :  { %v411_v1 = vld [vmem:[%s4919_s1 + $0x1d0] sm:$0xff]  ;;  %v409_v34 = vld [vmem:[%s4919_s1 + $0x1c0] sm:$0xff]  ;;  %900 = vmatpush.msra.mxu3 %v475_v55  ;;  %841 = vmatpush.msra.mxu0 %v377_v2 }
  0x71   :  { %860 = vmatpush.msra.mxu1 %v411_v1  ;;  %v375_v0 = vld [vmem:[%s4919_s1 + $0xb0] sm:$0xff]  ;;  %881 = vmatpush.msra.mxu2 %v441_v32  ;;  %v373_v55 = vld [vmem:[%s4919_s1 + $0xa0] sm:$0xff] }
  0x72   :  { %v439_v3 = vld [vmem:[%s4919_s1 + $0x2b0] sm:$0xff]  ;;  %901 = vmatpush.msra.mxu3 %v473_v21  ;;  %v437_v1 = vld [vmem:[%s4919_s1 + $0x2a0] sm:$0xff]  ;;  %842 = vmatpush.msra.mxu0 %v375_v0 }
  0x73   :  { %v471_v31 = vld [vmem:[%s4919_s1 + $0x3b0] sm:$0xff]  ;;  %861 = vmatpush.msra.mxu1 %v409_v34  ;;  %882 = vmatpush.msra.mxu2 %v439_v3  ;;  %v469_v2 = vld [vmem:[%s4919_s1 + $0x3a0] sm:$0xff] }
  0x74   :  { %v407_v33 = vld [vmem:[%s4919_s1 + $0x1b0] sm:$0xff]  ;;  %v405_v32 = vld [vmem:[%s4919_s1 + $0x1a0] sm:$0xff]  ;;  %902 = vmatpush.msra.mxu3 %v471_v31  ;;  %843 = vmatpush.msra.mxu0 %v373_v55 }
  0x75   :  { %862 = vmatpush.msra.mxu1 %v407_v33  ;;  %v371_v21 = vld [vmem:[%s4919_s1 + $0x90] sm:$0xff]  ;;  %883 = vmatpush.msra.mxu2 %v437_v1  ;;  %v369_v31 = vld [vmem:[%s4919_s1 + $0x80] sm:$0xff] }
  0x76   :  { %v435_v34 = vld [vmem:[%s4919_s1 + $0x290] sm:$0xff]  ;;  %903 = vmatpush.msra.mxu3 %v469_v2  ;;  %v433_v33 = vld [vmem:[%s4919_s1 + $0x280] sm:$0xff]  ;;  %844 = vmatpush.msra.mxu0 %v371_v21 }
  0x77   :  { %v467_v3 = vld [vmem:[%s4919_s1 + $0x390] sm:$0xff]  ;;  %863 = vmatpush.msra.mxu1 %v405_v32  ;;  %884 = vmatpush.msra.mxu2 %v435_v34  ;;  %v465_v55 = vld [vmem:[%s4919_s1 + $0x380] sm:$0xff] }
  0x78   :  { %v403_v0 = vld [vmem:[%s4919_s1 + $0x190] sm:$0xff]  ;;  %v401_v1 = vld [vmem:[%s4919_s1 + $0x180] sm:$0xff]  ;;  %904 = vmatpush.msra.mxu3 %v467_v3  ;;  %845 = vmatpush.msra.mxu0 %v369_v31 }
  0x79   :  { %864 = vmatpush.msra.mxu1 %v403_v0  ;;  %v367_v2 = vld [vmem:[%s4919_s1 + $0x70] sm:$0xff]  ;;  %885 = vmatpush.msra.mxu2 %v433_v33  ;;  %v365_v3 = vld [vmem:[%s4919_s1 + $0x60] sm:$0xff] }
  0x7a   :  { %v431_v32 = vld [vmem:[%s4919_s1 + $0x270] sm:$0xff]  ;;  %905 = vmatpush.msra.mxu3 %v465_v55  ;;  %v429_v0 = vld [vmem:[%s4919_s1 + $0x260] sm:$0xff]  ;;  %846 = vmatpush.msra.mxu0 %v367_v2 }
  0x7b   :  { %v463_v21 = vld [vmem:[%s4919_s1 + $0x370] sm:$0xff]  ;;  %865 = vmatpush.msra.mxu1 %v401_v1  ;;  %886 = vmatpush.msra.mxu2 %v431_v32  ;;  %v461_v31 = vld [vmem:[%s4919_s1 + $0x360] sm:$0xff] }
  0x7c   :  { %v399_v34 = vld [vmem:[%s4919_s1 + $0x170] sm:$0xff]  ;;  %v397_v33 = vld [vmem:[%s4919_s1 + $0x160] sm:$0xff]  ;;  %906 = vmatpush.msra.mxu3 %v463_v21  ;;  %847 = vmatpush.msra.mxu0 %v365_v3 }
  0x7d   :  { %866 = vmatpush.msra.mxu1 %v399_v34  ;;  %v363_v55 = vld [vmem:[%s4919_s1 + $0x50] sm:$0xff]  ;;  %887 = vmatpush.msra.mxu2 %v429_v0  ;;  %v361_v21 = vld [vmem:[%s4919_s1 + $0x40] sm:$0xff] }
  0x7e   :  { %v427_v1 = vld [vmem:[%s4919_s1 + $0x250] sm:$0xff]  ;;  %907 = vmatpush.msra.mxu3 %v461_v31  ;;  %v425_v34 = vld [vmem:[%s4919_s1 + $0x240] sm:$0xff]  ;;  %848 = vmatpush.msra.mxu0 %v363_v55 }
  0x7f   :  { %v459_v2 = vld [vmem:[%s4919_s1 + $0x350] sm:$0xff]  ;;  %867 = vmatpush.msra.mxu1 %v397_v33  ;;  %888 = vmatpush.msra.mxu2 %v427_v1  ;;  %v457_v3 = vld [vmem:[%s4919_s1 + $0x340] sm:$0xff] }
  0x80   :  { %v395_v32 = vld [vmem:[%s4919_s1 + $0x150] sm:$0xff]  ;;  %v393_v0 = vld [vmem:[%s4919_s1 + $0x140] sm:$0xff]  ;;  %908 = vmatpush.msra.mxu3 %v459_v2  ;;  %849 = vmatpush.msra.mxu0 %v361_v21 }
  0x81   :  { %868 = vmatpush.msra.mxu1 %v395_v32  ;;  %v359_v31 = vld [vmem:[%s4919_s1 + $0x30] sm:$0xff]  ;;  %889 = vmatpush.msra.mxu2 %v425_v34  ;;  %v357_v2 = vld [vmem:[%s4919_s1 + $0x20] sm:$0xff] }
  0x82   :  { %v423_v33 = vld [vmem:[%s4919_s1 + $0x230] sm:$0xff]  ;;  %909 = vmatpush.msra.mxu3 %v457_v3  ;;  %v421_v32 = vld [vmem:[%s4919_s1 + $0x220] sm:$0xff]  ;;  %850 = vmatpush.msra.mxu0 %v359_v31 }
  0x83   :  { %v455_v55 = vld [vmem:[%s4919_s1 + $0x330] sm:$0xff]  ;;  %869 = vmatpush.msra.mxu1 %v393_v0  ;;  %890 = vmatpush.msra.mxu2 %v423_v33  ;;  %v453_v21 = vld [vmem:[%s4919_s1 + $0x320] sm:$0xff] }
  0x84   :  { %v391_v1 = vld [vmem:[%s4919_s1 + $0x130] sm:$0xff]  ;;  %v389_v34 = vld [vmem:[%s4919_s1 + $0x120] sm:$0xff]  ;;  %910 = vmatpush.msra.mxu3 %v455_v55  ;;  %851 = vmatpush.msra.mxu0 %v357_v2 }
  0x85   :  { %870 = vmatpush.msra.mxu1 %v391_v1  ;;  %v355_v3 = vld [vmem:[%s4919_s1 + $0x10] sm:$0xff]  ;;  %891 = vmatpush.msra.mxu2 %v421_v32  ;;  %v353_v55 = vld [vmem:[%s4919_s1] sm:$0xff] }
  0x86   :  { %v419_v0 = vld [vmem:[%s4919_s1 + $0x210] sm:$0xff]  ;;  %911 = vmatpush.msra.mxu3 %v453_v21  ;;  %v417_v1 = vld [vmem:[%s4919_s1 + $0x200] sm:$0xff]  ;;  %852 = vmatpush.msra.mxu0 %v355_v3 }
  0x87   :  { %v451_v31 = vld [vmem:[%s4919_s1 + $0x310] sm:$0xff]  ;;  %871 = vmatpush.msra.mxu1 %v389_v34  ;;  %892 = vmatpush.msra.mxu2 %v419_v0  ;;  %v449_v2 = vld [vmem:[%s4919_s1 + $0x300] sm:$0xff] }
  0x88   :  { %v387_v33 = vld [vmem:[%s4919_s1 + $0x110] sm:$0xff]  ;;  %912 = vmatpush.msra.mxu3 %v451_v31  ;;  %853 = vmatpush.msra.mxu0 %v353_v55  ;;  %v385_v3 = vld [vmem:[%s4919_s1 + $0x100] sm:$0xff] }
  0x89   :  { %v511_v32 = vld [vmem:[%s4919_s1 + $0x4f0] sm:$0xff]  ;;  %872 = vmatpush.msra.mxu1 %v387_v33  ;;  %893 = vmatpush.msra.mxu2 %v417_v1  ;;  %v509_v0 = vld [vmem:[%s4919_s1 + $0x4e0] sm:$0xff] }
  0x8a   :  { %v575_v21 = vld [vmem:[%s4919_s1 + $0x6f0] sm:$0xff]  ;;  %913 = vmatpush.msra.mxu3 %v449_v2  ;;  %918 = vmatpush.msrb.mxu0 %v511_v32  ;;  %v573_v33 = vld [vmem:[%s4919_s1 + $0x6e0] sm:$0xff] }
  0x8b   :  { %v607_v34 = vld [vmem:[%s4919_s1 + $0x7f0] sm:$0xff]  ;;  %958 = vmatpush.msrb.mxu2 %v575_v21  ;;  %v605_v55 = vld [vmem:[%s4919_s1 + $0x7e0] sm:$0xff]  ;;  %873 = vmatpush.msra.mxu1 %v385_v3 }
  0x8c   :  { %v543_v31 = vld [vmem:[%s4919_s1 + $0x5f0] sm:$0xff]  ;;  %978 = vmatpush.msrb.mxu3 %v607_v34  ;;  %919 = vmatpush.msrb.mxu0 %v509_v0  ;;  %v541_v2 = vld [vmem:[%s4919_s1 + $0x5e0] sm:$0xff] }
  0x8d   :  { %v507_v1 = vld [vmem:[%s4919_s1 + $0x4d0] sm:$0xff]  ;;  %938 = vmatpush.msrb.mxu1 %v543_v31  ;;  %959 = vmatpush.msrb.mxu2 %v573_v33  ;;  %v505_v34 = vld [vmem:[%s4919_s1 + $0x4c0] sm:$0xff] }
  0x8e   :  { %v571_v32 = vld [vmem:[%s4919_s1 + $0x6d0] sm:$0xff]  ;;  %979 = vmatpush.msrb.mxu3 %v605_v55  ;;  %920 = vmatpush.msrb.mxu0 %v507_v1  ;;  %v569_v0 = vld [vmem:[%s4919_s1 + $0x6c0] sm:$0xff] }
  0x8f   :  { %v603_v21 = vld [vmem:[%s4919_s1 + $0x7d0] sm:$0xff]  ;;  %939 = vmatpush.msrb.mxu1 %v541_v2  ;;  %960 = vmatpush.msrb.mxu2 %v571_v32  ;;  %v601_v31 = vld [vmem:[%s4919_s1 + $0x7c0] sm:$0xff] }
  0x90   :  { %v539_v3 = vld [vmem:[%s4919_s1 + $0x5d0] sm:$0xff]  ;;  %980 = vmatpush.msrb.mxu3 %v603_v21  ;;  %921 = vmatpush.msrb.mxu0 %v505_v34  ;;  %v537_v55 = vld [vmem:[%s4919_s1 + $0x5c0] sm:$0xff] }
  0x91   :  { %v503_v33 = vld [vmem:[%s4919_s1 + $0x4b0] sm:$0xff]  ;;  %940 = vmatpush.msrb.mxu1 %v539_v3  ;;  %961 = vmatpush.msrb.mxu2 %v569_v0  ;;  %v501_v32 = vld [vmem:[%s4919_s1 + $0x4a0] sm:$0xff] }
  0x92   :  { %v567_v1 = vld [vmem:[%s4919_s1 + $0x6b0] sm:$0xff]  ;;  %981 = vmatpush.msrb.mxu3 %v601_v31  ;;  %922 = vmatpush.msrb.mxu0 %v503_v33  ;;  %v565_v34 = vld [vmem:[%s4919_s1 + $0x6a0] sm:$0xff] }
  0x93   :  { %v599_v2 = vld [vmem:[%s4919_s1 + $0x7b0] sm:$0xff]  ;;  %941 = vmatpush.msrb.mxu1 %v537_v55  ;;  %962 = vmatpush.msrb.mxu2 %v567_v1  ;;  %v597_v3 = vld [vmem:[%s4919_s1 + $0x7a0] sm:$0xff] }
  0x94   :  { %v535_v21 = vld [vmem:[%s4919_s1 + $0x5b0] sm:$0xff]  ;;  %982 = vmatpush.msrb.mxu3 %v599_v2  ;;  %923 = vmatpush.msrb.mxu0 %v501_v32  ;;  %v533_v31 = vld [vmem:[%s4919_s1 + $0x5a0] sm:$0xff] }
  0x95   :  { %v499_v0 = vld [vmem:[%s4919_s1 + $0x490] sm:$0xff]  ;;  %942 = vmatpush.msrb.mxu1 %v535_v21  ;;  %963 = vmatpush.msrb.mxu2 %v565_v34  ;;  %v497_v1 = vld [vmem:[%s4919_s1 + $0x480] sm:$0xff] }
  0x96   :  { %v563_v33 = vld [vmem:[%s4919_s1 + $0x690] sm:$0xff]  ;;  %983 = vmatpush.msrb.mxu3 %v597_v3  ;;  %924 = vmatpush.msrb.mxu0 %v499_v0  ;;  %v561_v32 = vld [vmem:[%s4919_s1 + $0x680] sm:$0xff] }
  0x97   :  { %v595_v55 = vld [vmem:[%s4919_s1 + $0x790] sm:$0xff]  ;;  %943 = vmatpush.msrb.mxu1 %v533_v31  ;;  %964 = vmatpush.msrb.mxu2 %v563_v33  ;;  %v593_v21 = vld [vmem:[%s4919_s1 + $0x780] sm:$0xff] }
  0x98   :  { %v531_v2 = vld [vmem:[%s4919_s1 + $0x590] sm:$0xff]  ;;  %984 = vmatpush.msrb.mxu3 %v595_v55  ;;  %925 = vmatpush.msrb.mxu0 %v497_v1  ;;  %v529_v3 = vld [vmem:[%s4919_s1 + $0x580] sm:$0xff] }
  0x99   :  { %v495_v34 = vld [vmem:[%s4919_s1 + $0x470] sm:$0xff]  ;;  %944 = vmatpush.msrb.mxu1 %v531_v2  ;;  %965 = vmatpush.msrb.mxu2 %v561_v32  ;;  %v493_v33 = vld [vmem:[%s4919_s1 + $0x460] sm:$0xff] }
  0x9a   :  { %v559_v0 = vld [vmem:[%s4919_s1 + $0x670] sm:$0xff]  ;;  %985 = vmatpush.msrb.mxu3 %v593_v21  ;;  %926 = vmatpush.msrb.mxu0 %v495_v34  ;;  %v557_v1 = vld [vmem:[%s4919_s1 + $0x660] sm:$0xff] }
  0x9b   :  { %v591_v31 = vld [vmem:[%s4919_s1 + $0x770] sm:$0xff]  ;;  %945 = vmatpush.msrb.mxu1 %v529_v3  ;;  %966 = vmatpush.msrb.mxu2 %v559_v0  ;;  %v589_v2 = vld [vmem:[%s4919_s1 + $0x760] sm:$0xff] }
  0x9c   :  { %v527_v55 = vld [vmem:[%s4919_s1 + $0x570] sm:$0xff]  ;;  %986 = vmatpush.msrb.mxu3 %v591_v31  ;;  %927 = vmatpush.msrb.mxu0 %v493_v33  ;;  %v525_v21 = vld [vmem:[%s4919_s1 + $0x560] sm:$0xff] }
  0x9d   :  { %v491_v32 = vld [vmem:[%s4919_s1 + $0x450] sm:$0xff]  ;;  %946 = vmatpush.msrb.mxu1 %v527_v55  ;;  %967 = vmatpush.msrb.mxu2 %v557_v1  ;;  %v489_v0 = vld [vmem:[%s4919_s1 + $0x440] sm:$0xff] }
  0x9e   :  { %v555_v34 = vld [vmem:[%s4919_s1 + $0x650] sm:$0xff]  ;;  %987 = vmatpush.msrb.mxu3 %v589_v2  ;;  %928 = vmatpush.msrb.mxu0 %v491_v32  ;;  %v553_v33 = vld [vmem:[%s4919_s1 + $0x640] sm:$0xff] }
  0x9f   :  { %v587_v3 = vld [vmem:[%s4919_s1 + $0x750] sm:$0xff]  ;;  %947 = vmatpush.msrb.mxu1 %v525_v21  ;;  %968 = vmatpush.msrb.mxu2 %v555_v34  ;;  %v585_v55 = vld [vmem:[%s4919_s1 + $0x740] sm:$0xff] }
  0xa0   :  { %v523_v31 = vld [vmem:[%s4919_s1 + $0x550] sm:$0xff]  ;;  %988 = vmatpush.msrb.mxu3 %v587_v3  ;;  %929 = vmatpush.msrb.mxu0 %v489_v0  ;;  %v521_v2 = vld [vmem:[%s4919_s1 + $0x540] sm:$0xff] }
  0xa1   :  { %v487_v1 = vld [vmem:[%s4919_s1 + $0x430] sm:$0xff]  ;;  %948 = vmatpush.msrb.mxu1 %v523_v31  ;;  %969 = vmatpush.msrb.mxu2 %v553_v33  ;;  %v485_v34 = vld [vmem:[%s4919_s1 + $0x420] sm:$0xff] }
  0xa2   :  { %v551_v32 = vld [vmem:[%s4919_s1 + $0x630] sm:$0xff]  ;;  %989 = vmatpush.msrb.mxu3 %v585_v55  ;;  %930 = vmatpush.msrb.mxu0 %v487_v1  ;;  %v549_v0 = vld [vmem:[%s4919_s1 + $0x620] sm:$0xff] }
  0xa3   :  { %v583_v21 = vld [vmem:[%s4919_s1 + $0x730] sm:$0xff]  ;;  %949 = vmatpush.msrb.mxu1 %v521_v2  ;;  %970 = vmatpush.msrb.mxu2 %v551_v32  ;;  %v581_v31 = vld [vmem:[%s4919_s1 + $0x720] sm:$0xff] }
  0xa4   :  { %v519_v3 = vld [vmem:[%s4919_s1 + $0x530] sm:$0xff]  ;;  %990 = vmatpush.msrb.mxu3 %v583_v21  ;;  %931 = vmatpush.msrb.mxu0 %v485_v34  ;;  %v517_v55 = vld [vmem:[%s4919_s1 + $0x520] sm:$0xff] }
  0xa5   :  { %v483_v33 = vld [vmem:[%s4919_s1 + $0x410] sm:$0xff]  ;;  %950 = vmatpush.msrb.mxu1 %v519_v3  ;;  %971 = vmatpush.msrb.mxu2 %v549_v0  ;;  %v481_v32 = vld [vmem:[%s4919_s1 + $0x400] sm:$0xff] }
  0xa6   :  { %v547_v1 = vld [vmem:[%s4919_s1 + $0x610] sm:$0xff]  ;;  %991 = vmatpush.msrb.mxu3 %v581_v31  ;;  %932 = vmatpush.msrb.mxu0 %v483_v33  ;;  %v545_v34 = vld [vmem:[%s4919_s1 + $0x600] sm:$0xff]  ;;  %v341_v33 = vld [vmem:[%s4918_s0 + $0x18] sm:$0xff] }
  0xa7   :  { %v579_v2 = vld [vmem:[%s4919_s1 + $0x710] sm:$0xff]  ;;  %951 = vmatpush.msrb.mxu1 %v517_v55  ;;  %972 = vmatpush.msrb.mxu2 %v547_v1  ;;  %v577_v3 = vld [vmem:[%s4919_s1 + $0x700] sm:$0xff] }
  0xa8   :  { %v515_v21 = vld [vmem:[%s4919_s1 + $0x510] sm:$0xff]  ;;  %v3361_v0 = vld [vmem:[%s4918_s0] sm:$0xff]  ;;  %992 = vmatpush.msrb.mxu3 %v579_v2  ;;  %933 = vmatpush.msrb.mxu0 %v481_v32 }
  0xa9   :  { %v340_v31 = vld [vmem:[%s4918_s0 + $0x10] sm:$0xff]  ;;  %952 = vmatpush.msrb.mxu1 %v515_v21  ;;  %973 = vmatpush.msrb.mxu2 %v545_v34  ;;  %v513_v32 = vld [vmem:[%s4919_s1 + $0x500] sm:$0xff]  ;;  %v3385_v21 = vld [vmem:[%s4918_s0 + $0x8] sm:$0xff] }
  0xaa   :  { %v639_v55 = vld [vmem:[%s4919_s1 + $0x8f0] sm:$0xff]  ;;  %993 = vmatpush.msrb.mxu3 %v577_v3  ;;  %854 = vmatmul.f32.vlgmr.msra.gmra.mxu0 %v3361_v0  ;;  %v637_v34 = vld [vmem:[%s4919_s1 + $0x8e0] sm:$0xff] }
  0xab   :  { %v703_v1 = vld [vmem:[%s4919_s1 + $0xaf0] sm:$0xff]  ;;  %894 = vmatmul.f32.vlgmr.msra.gmra.mxu2 %v340_v31  ;;  %914 = vmatmul.f32.vlgmr.msra.gmra.mxu3 %v341_v33  ;;  %v701_v31 = vld [vmem:[%s4919_s1 + $0xae0] sm:$0xff] }
  0xac   :  { %v735_v2 = vld [vmem:[%s4919_s1 + $0xbf0] sm:$0xff]  ;;  %998 = vmatpush.msra.mxu0 %v639_v55  ;;  %1038 = vmatpush.msra.mxu2 %v703_v1  ;;  %v733_v33 = vld [vmem:[%s4919_s1 + $0xbe0] sm:$0xff] }
  0xad   :  { %v671_v3 = vld [vmem:[%s4919_s1 + $0x9f0] sm:$0xff]  ;;  %1058 = vmatpush.msra.mxu3 %v735_v2  ;;  %953 = vmatpush.msrb.mxu1 %v513_v32  ;;  %v669_v55 = vld [vmem:[%s4919_s1 + $0x9e0] sm:$0xff] }
  0xae   :  { %v635_v36 = vld [vmem:[%s4919_s1 + $0x8d0] sm:$0xff]  ;;  %874 = vmatmul.f32.vlgmr.msra.gmra.mxu1 %v3385_v21  ;;  %999 = vmatpush.msra.mxu0 %v637_v34  ;;  %v633_v32 = vld [vmem:[%s4919_s1 + $0x8c0] sm:$0xff] }
  0xaf   :  { %v699_v1 = vld [vmem:[%s4919_s1 + $0xad0] sm:$0xff]  ;;  %1018 = vmatpush.msra.mxu1 %v671_v3  ;;  %1039 = vmatpush.msra.mxu2 %v701_v31  ;;  %v697_v4 = vld [vmem:[%s4919_s1 + $0xac0] sm:$0xff] }
  0xb0   :  { %v731_v2 = vld [vmem:[%s4919_s1 + $0xbd0] sm:$0xff]  ;;  %1059 = vmatpush.msra.mxu3 %v733_v33  ;;  %1000 = vmatpush.msra.mxu0 %v635_v36  ;;  %v729_v3 = vld [vmem:[%s4919_s1 + $0xbc0] sm:$0xff] }
  0xb1   :  { %v667_v34 = vld [vmem:[%s4919_s1 + $0x9d0] sm:$0xff]  ;;  %1019 = vmatpush.msra.mxu1 %v669_v55  ;;  %1040 = vmatpush.msra.mxu2 %v699_v1  ;;  %v665_v33 = vld [vmem:[%s4919_s1 + $0x9c0] sm:$0xff] }
  0xb2   :  { %v344_v31 = vld [vmem:[%s4918_s0 + $0x30] sm:$0xff]  ;;  %1060 = vmatpush.msra.mxu3 %v731_v2  ;;  %1001 = vmatpush.msra.mxu0 %v633_v32  ;;  %v3442_v2 = vld [vmem:[%s4918_s0 + $0x20] sm:$0xff]  ;;  %v345_v32 = vld [vmem:[%s4918_s0 + $0x38] sm:$0xff] }
  0xb3   :  { %v631_v36 = vld [vmem:[%s4919_s1 + $0x8b0] sm:$0xff]  ;;  %1020 = vmatpush.msra.mxu1 %v667_v34  ;;  %1041 = vmatpush.msra.mxu2 %v697_v4  ;;  %v629_v4 = vld [vmem:[%s4919_s1 + $0x8a0] sm:$0xff] }
  0xb4   :  { %v695_v55 = vld [vmem:[%s4919_s1 + $0xab0] sm:$0xff]  ;;  %1061 = vmatpush.msra.mxu3 %v729_v3  ;;  %974 = vmatmul.f32.vlgmr.msrb.gmra.mxu2 %v344_v31  ;;  %v693_v3 = vld [vmem:[%s4919_s1 + $0xaa0] sm:$0xff] }
  0xb5   :  { %v727_v1 = vld [vmem:[%s4919_s1 + $0xbb0] sm:$0xff]  ;;  %1002 = vmatpush.msra.mxu0 %v631_v36  ;;  %1021 = vmatpush.msra.mxu1 %v665_v33  ;;  %v725_v31 = vld [vmem:[%s4919_s1 + $0xba0] sm:$0xff]  ;;  %v3463_v36 = vld [vmem:[%s4918_s0 + $0x28] sm:$0xff] }
  0xb6   :  { %v663_v34 = vld [vmem:[%s4919_s1 + $0x9b0] sm:$0xff]  ;;  %1042 = vmatpush.msra.mxu2 %v695_v55  ;;  %1062 = vmatpush.msra.mxu3 %v727_v1  ;;  %v661_v55 = vld [vmem:[%s4919_s1 + $0x9a0] sm:$0xff] }
  0xb7   :  { %934 = vmatmul.f32.vlgmr.msrb.gmra.mxu0 %v3442_v2  ;;  %994 = vmatmul.f32.vlgmr.msrb.gmra.mxu3 %v345_v32  ;;  %v627_v33 = vld [vmem:[%s4919_s1 + $0x890] sm:$0xff]  ;;  %v625_v19 = vld [vmem:[%s4919_s1 + $0x880] sm:$0xff] }
  0xb8   :  { %1003 = vmatpush.msra.mxu0 %v629_v4  ;;  %1022 = vmatpush.msra.mxu1 %v663_v34  ;;  %v691_v1 = vld [vmem:[%s4919_s1 + $0xa90] sm:$0xff]  ;;  %v689_v34 = vld [vmem:[%s4919_s1 + $0xa80] sm:$0xff] }
  0xb9   :  { %1043 = vmatpush.msra.mxu2 %v693_v3  ;;  %1063 = vmatpush.msra.mxu3 %v725_v31  ;;  %v723_v32 = vld [vmem:[%s4919_s1 + $0xb90] sm:$0xff]  ;;  %v721_v3 = vld [vmem:[%s4919_s1 + $0xb80] sm:$0xff] }
  0xba   :  { %954 = vmatmul.f32.vlgmr.msrb.gmra.mxu1 %v3463_v36  ;;  %1004 = vmatpush.msra.mxu0 %v627_v33  ;;  %v659_v4 = vld [vmem:[%s4919_s1 + $0x990] sm:$0xff]  ;;  %v657_v33 = vld [vmem:[%s4919_s1 + $0x980] sm:$0xff] }
  0xbb   :  { %1023 = vmatpush.msra.mxu1 %v661_v55  ;;  %1044 = vmatpush.msra.mxu2 %v691_v1  ;;  %v623_v31 = vld [vmem:[%s4919_s1 + $0x870] sm:$0xff]  ;;  %v621_v1 = vld [vmem:[%s4919_s1 + $0x860] sm:$0xff] }
  0xbc   :  { %1064 = vmatpush.msra.mxu3 %v723_v32  ;;  %1005 = vmatpush.msra.mxu0 %v625_v19  ;;  %v687_v35 = vld [vmem:[%s4919_s1 + $0xa70] sm:$0xff]  ;;  %v685_v32 = vld [vmem:[%s4919_s1 + $0xa60] sm:$0xff] }
  0xbd   :  { %1024 = vmatpush.msra.mxu1 %v659_v4  ;;  %1045 = vmatpush.msra.mxu2 %v689_v34  ;;  %v719_v55 = vld [vmem:[%s4919_s1 + $0xb70] sm:$0xff]  ;;  %v717_v4 = vld [vmem:[%s4919_s1 + $0xb60] sm:$0xff] }
  0xbe   :  { %1065 = vmatpush.msra.mxu3 %v721_v3  ;;  %1006 = vmatpush.msra.mxu0 %v623_v31  ;;  %v655_v19 = vld [vmem:[%s4919_s1 + $0x970] sm:$0xff]  ;;  %v653_v3 = vld [vmem:[%s4919_s1 + $0x960] sm:$0xff] }
  0xbf   :  { %1025 = vmatpush.msra.mxu1 %v657_v33  ;;  %1046 = vmatpush.msra.mxu2 %v687_v35  ;;  %v619_v34 = vld [vmem:[%s4919_s1 + $0x850] sm:$0xff]  ;;  %v617_v33 = vld [vmem:[%s4919_s1 + $0x840] sm:$0xff] }
  0xc0   :  { %1066 = vmatpush.msra.mxu3 %v719_v55  ;;  %1007 = vmatpush.msra.mxu0 %v621_v1  ;;  %v683_v31 = vld [vmem:[%s4919_s1 + $0xa50] sm:$0xff]  ;;  %v681_v1 = vld [vmem:[%s4919_s1 + $0xa40] sm:$0xff] }
  0xc1   :  { %1026 = vmatpush.msra.mxu1 %v655_v19  ;;  %1047 = vmatpush.msra.mxu2 %v685_v32  ;;  %v715_v35 = vld [vmem:[%s4919_s1 + $0xb50] sm:$0xff]  ;;  %v713_v19 = vld [vmem:[%s4919_s1 + $0xb40] sm:$0xff] }
  0xc2   :  { %1067 = vmatpush.msra.mxu3 %v717_v4  ;;  %1008 = vmatpush.msra.mxu0 %v619_v34  ;;  %v651_v55 = vld [vmem:[%s4919_s1 + $0x950] sm:$0xff]  ;;  %v649_v4 = vld [vmem:[%s4919_s1 + $0x940] sm:$0xff] }
  0xc3   :  { %1027 = vmatpush.msra.mxu1 %v653_v3  ;;  %1048 = vmatpush.msra.mxu2 %v683_v31  ;;  %v615_v32 = vld [vmem:[%s4919_s1 + $0x830] sm:$0xff]  ;;  %v613_v31 = vld [vmem:[%s4919_s1 + $0x820] sm:$0xff] }
  0xc4   :  { %1068 = vmatpush.msra.mxu3 %v715_v35  ;;  %1009 = vmatpush.msra.mxu0 %v617_v33  ;;  %v679_v34 = vld [vmem:[%s4919_s1 + $0xa30] sm:$0xff]  ;;  %v677_v33 = vld [vmem:[%s4919_s1 + $0xa20] sm:$0xff] }
  0xc5   :  { %1028 = vmatpush.msra.mxu1 %v651_v55  ;;  %1049 = vmatpush.msra.mxu2 %v681_v1  ;;  %v711_v3 = vld [vmem:[%s4919_s1 + $0xb30] sm:$0xff]  ;;  %v709_v55 = vld [vmem:[%s4919_s1 + $0xb20] sm:$0xff] }
  0xc6   :  { %1069 = vmatpush.msra.mxu3 %v713_v19  ;;  %1010 = vmatpush.msra.mxu0 %v615_v32  ;;  %v647_v35 = vld [vmem:[%s4919_s1 + $0x930] sm:$0xff]  ;;  %v645_v19 = vld [vmem:[%s4919_s1 + $0x920] sm:$0xff] }
  0xc7   :  { %1029 = vmatpush.msra.mxu1 %v649_v4  ;;  %1050 = vmatpush.msra.mxu2 %v679_v34  ;;  %v611_v1 = vld [vmem:[%s4919_s1 + $0x810] sm:$0xff]  ;;  %v609_v34 = vld [vmem:[%s4919_s1 + $0x800] sm:$0xff] }
  0xc8   :  { %1070 = vmatpush.msra.mxu3 %v711_v3  ;;  %1011 = vmatpush.msra.mxu0 %v613_v31  ;;  %v675_v32 = vld [vmem:[%s4919_s1 + $0xa10] sm:$0xff]  ;;  %v673_v31 = vld [vmem:[%s4919_s1 + $0xa00] sm:$0xff] }
  0xc9   :  { %1030 = vmatpush.msra.mxu1 %v647_v35  ;;  %1051 = vmatpush.msra.mxu2 %v677_v33  ;;  %v707_v4 = vld [vmem:[%s4919_s1 + $0xb10] sm:$0xff]  ;;  %v705_v35 = vld [vmem:[%s4919_s1 + $0xb00] sm:$0xff] }
  0xca   :  { %1071 = vmatpush.msra.mxu3 %v709_v55  ;;  %1012 = vmatpush.msra.mxu0 %v611_v1  ;;  %v643_v3 = vld [vmem:[%s4919_s1 + $0x910] sm:$0xff]  ;;  %v3589_v33 = vld [vmem:[%s4918_s0 + $0x40] sm:$0xff] }
  0xcb   :  { %1031 = vmatpush.msra.mxu1 %v645_v19  ;;  %1052 = vmatpush.msra.mxu2 %v675_v32  ;;  %v348_v55 = vld [vmem:[%s4918_s0 + $0x50] sm:$0xff]  ;;  %v384_v32 = vld [vmem:[%s4919_s1 + $0xf8] sm:$0xff]  ;;  %v817_v6 = vld [vmem:[%s4919_s1 + $0xe80] sm:$0xff] }
  0xcc   :  { %1072 = vmatpush.msra.mxu3 %v707_v4  ;;  %1013 = vmatpush.msra.mxu0 %v609_v34  ;;  %v767_v1 = vld [vmem:[%s4919_s1 + $0xcf0] sm:$0xff]  ;;  %v641_v4 = vld [vmem:[%s4919_s1 + $0x900] sm:$0xff]  ;;  %v349_v34 = vld [vmem:[%s4918_s0 + $0x58] sm:$0xff] }
  0xcd   :  { %1032 = vmatpush.msra.mxu1 %v643_v3  ;;  %1053 = vmatpush.msra.mxu2 %v673_v31  ;;  %v823_v19 = vld [vmem:[%s4919_s1 + $0xeb0] sm:$0x7f]  ;;  %v3613_v3 = vld [vmem:[%s4918_s0 + $0x48] sm:$0xff]  ;;  %v765_v31 = vld [vmem:[%s4919_s1 + $0xce0] sm:$0xff] }
  0xce   :  { %1073 = vmatpush.msra.mxu3 %v705_v35  ;;  %1014 = vmatmul.f32.vlgmr.msra.gmra.mxu0 %v3589_v33  ;;  %v799_v35 = vld [vmem:[%s4919_s1 + $0xdf0] sm:$0xff] }
  0xcf   :  { %1054 = vmatmul.f32.vlgmr.msra.gmra.mxu2 %v348_v55  ;;  %1078 = vmatpush.msrb.mxu0 %v767_v1  ;;  %v821_v55 = vld [vmem:[%s4919_s1 + $0xea0] sm:$0xff]  ;;  %v382_v1 = vld [vmem:[%s4919_s1 + $0xe8] sm:$0xff]  ;;  %v763_v38 = vld [vmem:[%s4919_s1 + $0xcd0] sm:$0xff] }
  0xd0   :  { %2158 = vmatpush.msk.msrb.mxu2 %vm831_vm0, %v823_v19  ;;  %1138 = vmatpush.msrb.mxu3 %v384_v32  ;;  %v797_v19 = vld [vmem:[%s4919_s1 + $0xde0] sm:$0xff]  ;;  %v819_v32 = vld [vmem:[%s4919_s1 + $0xe90] sm:$0xff] }
  0xd1   :  { %1033 = vmatpush.msra.mxu1 %v641_v4  ;;  %1074 = vmatmul.f32.vlgmr.msra.gmra.mxu3 %v349_v34  ;;  %v380_v4 = vld [vmem:[%s4919_s1 + $0xd8] sm:$0xff]  ;;  %v761_v34 = vld [vmem:[%s4919_s1 + $0xcc0] sm:$0xff] }
  0xd2   :  { %1034 = vmatmul.f32.vlgmr.msra.gmra.mxu1 %v3613_v3  ;;  %1079 = vmatpush.msrb.mxu0 %v765_v31  ;;  %v795_v31 = vld [vmem:[%s4919_s1 + $0xdd0] sm:$0xff] }
  0xd3   :  { %1098 = vmatpush.msrb.mxu1 %v799_v35  ;;  %1123 = vmatpush.msrb.mxu2 %v821_v55  ;;  %v378_v35 = vld [vmem:[%s4919_s1 + $0xc8] sm:$0xff]  ;;  %v759_v55 = vld [vmem:[%s4919_s1 + $0xcb0] sm:$0xff] }
  0xd4   :  { %1139 = vmatpush.msrb.mxu3 %v382_v1  ;;  %1080 = vmatpush.msrb.mxu0 %v763_v38  ;;  %v793_v38 = vld [vmem:[%s4919_s1 + $0xdc0] sm:$0xff]  ;;  %v815_v1 = vld [vmem:[%s4919_s1 + $0xe70] sm:$0xff] }
  0xd5   :  { %1099 = vmatpush.msrb.mxu1 %v797_v19  ;;  %1124 = vmatpush.msrb.mxu2 %v819_v32  ;;  %v376_v19 = vld [vmem:[%s4919_s1 + $0xb8] sm:$0xff]  ;;  %v757_v32 = vld [vmem:[%s4919_s1 + $0xca0] sm:$0xff] }
  0xd6   :  { %1140 = vmatpush.msrb.mxu3 %v380_v4  ;;  %1081 = vmatpush.msrb.mxu0 %v761_v34  ;;  %v791_v4 = vld [vmem:[%s4919_s1 + $0xdb0] sm:$0xff]  ;;  %v813_v34 = vld [vmem:[%s4919_s1 + $0xe60] sm:$0xff] }
  0xd7   :  { %1100 = vmatpush.msrb.mxu1 %v795_v31  ;;  %1125 = vmatpush.msrb.mxu2 %v817_v6  ;;  %v374_v6 = vld [vmem:[%s4919_s1 + $0xa8] sm:$0xff]  ;;  %v755_v31 = vld [vmem:[%s4919_s1 + $0xc90] sm:$0xff] }
  0xd8   :  { %1141 = vmatpush.msrb.mxu3 %v378_v35  ;;  %1082 = vmatpush.msrb.mxu0 %v759_v55  ;;  %v789_v35 = vld [vmem:[%s4919_s1 + $0xda0] sm:$0xff]  ;;  %v811_v55 = vld [vmem:[%s4919_s1 + $0xe50] sm:$0xff] }
  0xd9   :  { %1101 = vmatpush.msrb.mxu1 %v793_v38  ;;  %1126 = vmatpush.msrb.mxu2 %v815_v1  ;;  %v372_v38 = vld [vmem:[%s4919_s1 + $0x98] sm:$0xff]  ;;  %v753_v1 = vld [vmem:[%s4919_s1 + $0xc80] sm:$0xff] }
  0xda   :  { %1142 = vmatpush.msrb.mxu3 %v376_v19  ;;  %1083 = vmatpush.msrb.mxu0 %v757_v32  ;;  %v787_v19 = vld [vmem:[%s4919_s1 + $0xd90] sm:$0xff]  ;;  %v809_v32 = vld [vmem:[%s4919_s1 + $0xe40] sm:$0xff] }
  0xdb   :  { %1102 = vmatpush.msrb.mxu1 %v791_v4  ;;  %1127 = vmatpush.msrb.mxu2 %v813_v34  ;;  %v370_v4 = vld [vmem:[%s4919_s1 + $0x88] sm:$0xff]  ;;  %v751_v34 = vld [vmem:[%s4919_s1 + $0xc70] sm:$0xff] }
  0xdc   :  { %1143 = vmatpush.msrb.mxu3 %v374_v6  ;;  %1084 = vmatpush.msrb.mxu0 %v755_v31  ;;  %v785_v6 = vld [vmem:[%s4919_s1 + $0xd80] sm:$0xff]  ;;  %v807_v31 = vld [vmem:[%s4919_s1 + $0xe30] sm:$0xff] }
  0xdd   :  { %1103 = vmatpush.msrb.mxu1 %v789_v35  ;;  %1128 = vmatpush.msrb.mxu2 %v811_v55  ;;  %v368_v35 = vld [vmem:[%s4919_s1 + $0x78] sm:$0xff]  ;;  %v749_v55 = vld [vmem:[%s4919_s1 + $0xc60] sm:$0xff] }
  0xde   :  { %1144 = vmatpush.msrb.mxu3 %v372_v38  ;;  %1085 = vmatpush.msrb.mxu0 %v753_v1  ;;  %v783_v38 = vld [vmem:[%s4919_s1 + $0xd70] sm:$0xff]  ;;  %v805_v1 = vld [vmem:[%s4919_s1 + $0xe20] sm:$0xff] }
  0xdf   :  { %1104 = vmatpush.msrb.mxu1 %v787_v19  ;;  %1129 = vmatpush.msrb.mxu2 %v809_v32  ;;  %v366_v19 = vld [vmem:[%s4919_s1 + $0x68] sm:$0xff]  ;;  %v747_v32 = vld [vmem:[%s4919_s1 + $0xc50] sm:$0xff] }
  0xe0   :  { %1145 = vmatpush.msrb.mxu3 %v370_v4  ;;  %1086 = vmatpush.msrb.mxu0 %v751_v34  ;;  %v781_v4 = vld [vmem:[%s4919_s1 + $0xd60] sm:$0xff]  ;;  %v803_v34 = vld [vmem:[%s4919_s1 + $0xe10] sm:$0xff] }
  0xe1   :  { %1105 = vmatpush.msrb.mxu1 %v785_v6  ;;  %1130 = vmatpush.msrb.mxu2 %v807_v31  ;;  %v364_v6 = vld [vmem:[%s4919_s1 + $0x58] sm:$0xff]  ;;  %v745_v31 = vld [vmem:[%s4919_s1 + $0xc40] sm:$0xff] }
  0xe2   :  { %1146 = vmatpush.msrb.mxu3 %v368_v35  ;;  %1087 = vmatpush.msrb.mxu0 %v749_v55  ;;  %v779_v35 = vld [vmem:[%s4919_s1 + $0xd50] sm:$0xff]  ;;  %v801_v55 = vld [vmem:[%s4919_s1 + $0xe00] sm:$0xff] }
  0xe3   :  { %1106 = vmatpush.msrb.mxu1 %v783_v38  ;;  %1131 = vmatpush.msrb.mxu2 %v805_v1  ;;  %v362_v38 = vld [vmem:[%s4919_s1 + $0x48] sm:$0xff]  ;;  %v416_v1 = vld [vmem:[%s4919_s1 + $0x1f8] sm:$0xff] }
  0xe4   :  { %1147 = vmatpush.msrb.mxu3 %v366_v19  ;;  %1088 = vmatpush.msrb.mxu0 %v747_v32  ;;  %v743_v19 = vld [vmem:[%s4919_s1 + $0xc30] sm:$0xff]  ;;  %v777_v32 = vld [vmem:[%s4919_s1 + $0xd40] sm:$0xff] }
  0xe5   :  { %1107 = vmatpush.msrb.mxu1 %v781_v4  ;;  %1132 = vmatpush.msrb.mxu2 %v803_v34  ;;  %v360_v4 = vld [vmem:[%s4919_s1 + $0x38] sm:$0xff]  ;;  %v414_v34 = vld [vmem:[%s4919_s1 + $0x1e8] sm:$0xff] }
  0xe6   :  { %1148 = vmatpush.msrb.mxu3 %v364_v6  ;;  %1089 = vmatpush.msrb.mxu0 %v745_v31  ;;  %v741_v6 = vld [vmem:[%s4919_s1 + $0xc20] sm:$0xff]  ;;  %v775_v31 = vld [vmem:[%s4919_s1 + $0xd30] sm:$0xff] }
  0xe7   :  { %1108 = vmatpush.msrb.mxu1 %v779_v35  ;;  %1133 = vmatpush.msrb.mxu2 %v801_v55  ;;  %v358_v35 = vld [vmem:[%s4919_s1 + $0x28] sm:$0xff]  ;;  %v412_v55 = vld [vmem:[%s4919_s1 + $0x1d8] sm:$0xff] }
  0xe8   :  { %1149 = vmatpush.msrb.mxu3 %v362_v38  ;;  %1090 = vmatpush.msrb.mxu0 %v743_v19  ;;  %v739_v38 = vld [vmem:[%s4919_s1 + $0xc10] sm:$0xff]  ;;  %v356_v19 = vld [vmem:[%s4919_s1 + $0x18] sm:$0xff] }
  0xe9   :  { %1158 = vmatpush.msra.mxu2 %v416_v1  ;;  %1109 = vmatpush.msrb.mxu1 %v777_v32  ;;  %v773_v1 = vld [vmem:[%s4919_s1 + $0xd20] sm:$0xff]  ;;  %v3788_v32 = vld [vmem:[%s4918_s0 + $0x70] sm:$0xff] }
  0xea   :  { %1150 = vmatpush.msrb.mxu3 %v360_v4  ;;  %1091 = vmatpush.msrb.mxu0 %v741_v6  ;;  %v410_v4 = vld [vmem:[%s4919_s1 + $0x1c8] sm:$0xff]  ;;  %v771_v6 = vld [vmem:[%s4919_s1 + $0xd10] sm:$0xff] }
  0xeb   :  { %1159 = vmatpush.msra.mxu2 %v414_v34  ;;  %1110 = vmatpush.msrb.mxu1 %v775_v31  ;;  %v737_v34 = vld [vmem:[%s4919_s1 + $0xc00] sm:$0xff]  ;;  %v354_v31 = vld [vmem:[%s4919_s1 + $0x8] sm:$0xff] }
  0xec   :  { %1151 = vmatpush.msrb.mxu3 %v358_v35  ;;  %1092 = vmatpush.msrb.mxu0 %v739_v38  ;;  %v3807_v35 = vld [vmem:[%s4918_s0 + $0x60] sm:$0xff]  ;;  %v448_v38 = vld [vmem:[%s4919_s1 + $0x2f8] sm:$0xff] }
  0xed   :  { %1160 = vmatpush.msra.mxu2 %v412_v55  ;;  %1111 = vmatpush.msrb.mxu1 %v773_v1  ;;  %v408_v55 = vld [vmem:[%s4919_s1 + $0x1b8] sm:$0xff] }
  0xee   :  { %1152 = vmatpush.msrb.mxu3 %v356_v19  ;;  %2159 = vmatmul.msk.f32.vlgmr.msrb.gmra.mxu2 %vm827_vm1, %v3788_v32  ;;  %v512_v1 = vld [vmem:[%s4919_s1 + $0x4f8] sm:$0xff]  ;;  %v769_v19 = vld [vmem:[%s4919_s1 + $0xd00] sm:$0xff] }
  0xef   :  { %1161 = vmatpush.msra.mxu2 %v410_v4  ;;  %1093 = vmatpush.msrb.mxu0 %v737_v34  ;;  %v3828_v4 = vld [vmem:[%s4918_s0 + $0x68] sm:$0xff] }
  0xf0   :  { %1112 = vmatpush.msrb.mxu1 %v771_v6  ;;  %1153 = vmatpush.msrb.mxu3 %v354_v31  ;;  %v446_v34 = vld [vmem:[%s4919_s1 + $0x2e8] sm:$0xff]  ;;  %v480_v6 = vld [vmem:[%s4919_s1 + $0x3f8] sm:$0xff] }
  0xf1   :  { %1094 = vmatmul.f32.vlgmr.msrb.gmra.mxu0 %v3807_v35  ;;  %1162 = vmatpush.msra.mxu2 %v408_v55  ;;  %v510_v31 = vld [vmem:[%s4919_s1 + $0x4e8] sm:$0xff]  ;;  %v404_v55 = vld [vmem:[%s4919_s1 + $0x198] sm:$0xff] }
  0xf2   :  { %1178 = vmatpush.msra.mxu0 %v448_v38  ;;  %1218 = vmatpush.msra.mxu3 %v512_v1  ;;  %v478_v38 = vld [vmem:[%s4919_s1 + $0x3e8] sm:$0xff]  ;;  %v508_v1 = vld [vmem:[%s4919_s1 + $0x4d8] sm:$0xff] }
  0xf3   :  { %1113 = vmatpush.msrb.mxu1 %v769_v19  ;;  %1163 = vmatpush.msra.mxu2 %v406_v15  ;;  %v402_v15 = vld [vmem:[%s4919_s1 + $0x188] sm:$0xff] }
  0xf4   :  { %1114 = vmatmul.f32.vlgmr.msrb.gmra.mxu1 %v3828_v4  ;;  %1179 = vmatpush.msra.mxu0 %v446_v34  ;;  %v442_v19 = vld [vmem:[%s4919_s1 + $0x2c8] sm:$0xff]  ;;  %v476_v34 = vld [vmem:[%s4919_s1 + $0x3d8] sm:$0xff] }
  0xf5   :  { %1198 = vmatpush.msra.mxu1 %v480_v6  ;;  %1219 = vmatpush.msra.mxu3 %v510_v31  ;;  %v400_v6 = vld [vmem:[%s4919_s1 + $0x178] sm:$0xff] }
  0xf6   :  { %1164 = vmatpush.msra.mxu2 %v404_v55  ;;  %1180 = vmatpush.msra.mxu0 %v444_v37  ;;  %v440_v31 = vld [vmem:[%s4919_s1 + $0x2b8] sm:$0xff]  ;;  %v474_v37 = vld [vmem:[%s4919_s1 + $0x3c8] sm:$0xff] }
  0xf7   :  { %1199 = vmatpush.msra.mxu1 %v478_v38  ;;  %1220 = vmatpush.msra.mxu3 %v508_v1  ;;  %v504_v55 = vld [vmem:[%s4919_s1 + $0x4b8] sm:$0xff]  ;;  %v398_v38 = vld [vmem:[%s4919_s1 + $0x168] sm:$0xff] }
  0xf8   :  { %1165 = vmatpush.msra.mxu2 %v402_v15  ;;  %1181 = vmatpush.msra.mxu0 %v442_v19  ;;  %v438_v1 = vld [vmem:[%s4919_s1 + $0x2a8] sm:$0xff]  ;;  %v472_v15 = vld [vmem:[%s4919_s1 + $0x3b8] sm:$0xff] }
  0xf9   :  { %1200 = vmatpush.msra.mxu1 %v476_v34  ;;  %1221 = vmatpush.msra.mxu3 %v506_v40  ;;  %v502_v19 = vld [vmem:[%s4919_s1 + $0x4a8] sm:$0xff]  ;;  %v396_v40 = vld [vmem:[%s4919_s1 + $0x158] sm:$0xff] }
  0xfa   :  { %1166 = vmatpush.msra.mxu2 %v400_v6  ;;  %1182 = vmatpush.msra.mxu0 %v440_v31  ;;  %v436_v34 = vld [vmem:[%s4919_s1 + $0x298] sm:$0xff]  ;;  %v470_v6 = vld [vmem:[%s4919_s1 + $0x3a8] sm:$0xff] }
  0xfb   :  { %1201 = vmatpush.msra.mxu1 %v474_v37  ;;  %1222 = vmatpush.msra.mxu3 %v504_v55  ;;  %v500_v31 = vld [vmem:[%s4919_s1 + $0x498] sm:$0xff]  ;;  %v394_v37 = vld [vmem:[%s4919_s1 + $0x148] sm:$0xff] }
  0xfc   :  { %1167 = vmatpush.msra.mxu2 %v398_v38  ;;  %1183 = vmatpush.msra.mxu0 %v438_v1  ;;  %v434_v55 = vld [vmem:[%s4919_s1 + $0x288] sm:$0xff]  ;;  %v468_v38 = vld [vmem:[%s4919_s1 + $0x398] sm:$0xff] }
  0xfd   :  { %1202 = vmatpush.msra.mxu1 %v472_v15  ;;  %1223 = vmatpush.msra.mxu3 %v502_v19  ;;  %v498_v1 = vld [vmem:[%s4919_s1 + $0x488] sm:$0xff]  ;;  %v392_v15 = vld [vmem:[%s4919_s1 + $0x138] sm:$0xff] }
  0xfe   :  { %1168 = vmatpush.msra.mxu2 %v396_v40  ;;  %1184 = vmatpush.msra.mxu0 %v436_v34  ;;  %v432_v19 = vld [vmem:[%s4919_s1 + $0x278] sm:$0xff]  ;;  %v466_v40 = vld [vmem:[%s4919_s1 + $0x388] sm:$0xff] }
  0xff   :  { %1203 = vmatpush.msra.mxu1 %v470_v6  ;;  %1224 = vmatpush.msra.mxu3 %v500_v31  ;;  %v496_v34 = vld [vmem:[%s4919_s1 + $0x478] sm:$0xff]  ;;  %v390_v6 = vld [vmem:[%s4919_s1 + $0x128] sm:$0xff] }
 0x100   :  { %1169 = vmatpush.msra.mxu2 %v394_v37  ;;  %1185 = vmatpush.msra.mxu0 %v434_v55  ;;  %v430_v31 = vld [vmem:[%s4919_s1 + $0x268] sm:$0xff]  ;;  %v464_v37 = vld [vmem:[%s4919_s1 + $0x378] sm:$0xff] }
 0x101   :  { %1204 = vmatpush.msra.mxu1 %v468_v38  ;;  %1225 = vmatpush.msra.mxu3 %v498_v1  ;;  %v494_v55 = vld [vmem:[%s4919_s1 + $0x468] sm:$0xff]  ;;  %v388_v38 = vld [vmem:[%s4919_s1 + $0x118] sm:$0xff] }
 0x102   :  { %1170 = vmatpush.msra.mxu2 %v392_v15  ;;  %1186 = vmatpush.msra.mxu0 %v432_v19  ;;  %v428_v1 = vld [vmem:[%s4919_s1 + $0x258] sm:$0xff]  ;;  %v462_v15 = vld [vmem:[%s4919_s1 + $0x368] sm:$0xff] }
 0x103   :  { %1205 = vmatpush.msra.mxu1 %v466_v40  ;;  %1226 = vmatpush.msra.mxu3 %v496_v34  ;;  %v492_v19 = vld [vmem:[%s4919_s1 + $0x458] sm:$0xff]  ;;  %v386_v40 = vld [vmem:[%s4919_s1 + $0x108] sm:$0xff] }
 0x104   :  { %1171 = vmatpush.msra.mxu2 %v390_v6  ;;  %1187 = vmatpush.msra.mxu0 %v430_v31  ;;  %v426_v34 = vld [vmem:[%s4919_s1 + $0x248] sm:$0xff]  ;;  %v460_v6 = vld [vmem:[%s4919_s1 + $0x358] sm:$0xff] }
 0x105   :  { %1206 = vmatpush.msra.mxu1 %v464_v37  ;;  %1227 = vmatpush.msra.mxu3 %v494_v55  ;;  %v490_v31 = vld [vmem:[%s4919_s1 + $0x448] sm:$0xff]  ;;  %v544_v37 = vld [vmem:[%s4919_s1 + $0x5f8] sm:$0xff] }
 0x106   :  { %1172 = vmatpush.msra.mxu2 %v388_v38  ;;  %1188 = vmatpush.msra.mxu0 %v428_v1  ;;  %v424_v55 = vld [vmem:[%s4919_s1 + $0x238] sm:$0xff]  ;;  %v458_v38 = vld [vmem:[%s4919_s1 + $0x348] sm:$0xff] }
 0x107   :  { %1207 = vmatpush.msra.mxu1 %v462_v15  ;;  %1228 = vmatpush.msra.mxu3 %v492_v19  ;;  %v488_v1 = vld [vmem:[%s4919_s1 + $0x438] sm:$0xff]  ;;  %v542_v15 = vld [vmem:[%s4919_s1 + $0x5e8] sm:$0xff] }
 0x108   :  { %1173 = vmatpush.msra.mxu2 %v386_v40  ;;  %1189 = vmatpush.msra.mxu0 %v426_v34  ;;  %v422_v19 = vld [vmem:[%s4919_s1 + $0x228] sm:$0xff]  ;;  %v456_v40 = vld [vmem:[%s4919_s1 + $0x338] sm:$0xff] }
 0x109   :  { %1208 = vmatpush.msra.mxu1 %v460_v6  ;;  %1229 = vmatpush.msra.mxu3 %v490_v31  ;;  %v486_v34 = vld [vmem:[%s4919_s1 + $0x428] sm:$0xff]  ;;  %v540_v6 = vld [vmem:[%s4919_s1 + $0x5d8] sm:$0xff] }
 0x10a   :  { %1238 = vmatpush.msrb.mxu2 %v544_v37  ;;  %1190 = vmatpush.msra.mxu0 %v424_v55  ;;  %v420_v31 = vld [vmem:[%s4919_s1 + $0x218] sm:$0xff]  ;;  %v454_v37 = vld [vmem:[%s4919_s1 + $0x328] sm:$0xff] }
 0x10b   :  { %1209 = vmatpush.msra.mxu1 %v458_v38  ;;  %1230 = vmatpush.msra.mxu3 %v488_v1  ;;  %v484_v55 = vld [vmem:[%s4919_s1 + $0x418] sm:$0xff]  ;;  %v538_v38 = vld [vmem:[%s4919_s1 + $0x5c8] sm:$0xff] }
 0x10c   :  { %1239 = vmatpush.msrb.mxu2 %v542_v15  ;;  %1191 = vmatpush.msra.mxu0 %v422_v19  ;;  %v418_v1 = vld [vmem:[%s4919_s1 + $0x208] sm:$0xff]  ;;  %v452_v15 = vld [vmem:[%s4919_s1 + $0x318] sm:$0xff] }
 0x10d   :  { %1210 = vmatpush.msra.mxu1 %v456_v40  ;;  %1231 = vmatpush.msra.mxu3 %v486_v34  ;;  %v482_v19 = vld [vmem:[%s4919_s1 + $0x408] sm:$0xff]  ;;  %v536_v40 = vld [vmem:[%s4919_s1 + $0x5b8] sm:$0xff] }
 0x10e   :  { %1240 = vmatpush.msrb.mxu2 %v540_v6  ;;  %1192 = vmatpush.msra.mxu0 %v420_v31  ;;  %v576_v34 = vld [vmem:[%s4919_s1 + $0x6f8] sm:$0xff]  ;;  %v450_v31 = vld [vmem:[%s4919_s1 + $0x308] sm:$0xff] }
 0x10f   :  { %1211 = vmatpush.msra.mxu1 %v454_v37  ;;  %1232 = vmatpush.msra.mxu3 %v484_v55  ;;  %v640_v6 = vld [vmem:[%s4919_s1 + $0x8f8] sm:$0xff]  ;;  %v534_v37 = vld [vmem:[%s4919_s1 + $0x5a8] sm:$0xff] }
 0x110   :  { %1241 = vmatpush.msrb.mxu2 %v538_v38  ;;  %1193 = vmatpush.msra.mxu0 %v418_v1  ;;  %v574_v55 = vld [vmem:[%s4919_s1 + $0x6e8] sm:$0xff]  ;;  %v608_v38 = vld [vmem:[%s4919_s1 + $0x7f8] sm:$0xff] }
 0x111   :  { %1212 = vmatpush.msra.mxu1 %v452_v15  ;;  %1233 = vmatpush.msra.mxu3 %v482_v19  ;;  %v638_v1 = vld [vmem:[%s4919_s1 + $0x8e8] sm:$0xff]  ;;  %v532_v15 = vld [vmem:[%s4919_s1 + $0x598] sm:$0xff] }
 0x112   :  { %1154 = vmatmul.f32.vlgmr.msrb.gmra.mxu3 %v3361_v0  ;;  %1242 = vmatpush.msrb.mxu2 %v536_v40  ;;  %v572_v0 = vld [vmem:[%s4919_s1 + $0x6d8] sm:$0xff]  ;;  %v606_v19 = vld [vmem:[%s4919_s1 + $0x7e8] sm:$0xff] }
 0x113   :  { %1258 = vmatpush.msrb.mxu0 %v576_v34  ;;  %1298 = vmatpush.msrb.mxu3 %v640_v6  ;;  %v636_v40 = vld [vmem:[%s4919_s1 + $0x8d8] sm:$0xff]  ;;  %v530_v34 = vld [vmem:[%s4919_s1 + $0x588] sm:$0xff] }
 0x114   :  { %1213 = vmatpush.msra.mxu1 %v450_v31  ;;  %1243 = vmatpush.msrb.mxu2 %v534_v37  ;;  %v570_v6 = vld [vmem:[%s4919_s1 + $0x6c8] sm:$0xff]  ;;  %v604_v31 = vld [vmem:[%s4919_s1 + $0x7d8] sm:$0xff] }
 0x115   :  { %1259 = vmatpush.msrb.mxu0 %v574_v55  ;;  %1299 = vmatpush.msrb.mxu3 %v638_v1  ;;  %v634_v37 = vld [vmem:[%s4919_s1 + $0x8c8] sm:$0xff]  ;;  %v528_v55 = vld [vmem:[%s4919_s1 + $0x578] sm:$0xff] }
 0x116   :  { %1278 = vmatpush.msrb.mxu1 %v608_v38  ;;  %1244 = vmatpush.msrb.mxu2 %v532_v15  ;;  %v568_v38 = vld [vmem:[%s4919_s1 + $0x6b8] sm:$0xff]  ;;  %v602_v1 = vld [vmem:[%s4919_s1 + $0x7c8] sm:$0xff] }
 0x117   :  { %1260 = vmatpush.msrb.mxu0 %v572_v0  ;;  %1300 = vmatpush.msrb.mxu3 %v636_v40  ;;  %v632_v15 = vld [vmem:[%s4919_s1 + $0x8b8] sm:$0xff]  ;;  %v526_v0 = vld [vmem:[%s4919_s1 + $0x568] sm:$0xff] }
 0x118   :  { %1279 = vmatpush.msrb.mxu1 %v606_v19  ;;  %1245 = vmatpush.msrb.mxu2 %v530_v34  ;;  %v566_v19 = vld [vmem:[%s4919_s1 + $0x6a8] sm:$0xff]  ;;  %v600_v40 = vld [vmem:[%s4919_s1 + $0x7b8] sm:$0xff] }
 0x119   :  { %1261 = vmatpush.msrb.mxu0 %v570_v6  ;;  %1301 = vmatpush.msrb.mxu3 %v634_v37  ;;  %v630_v34 = vld [vmem:[%s4919_s1 + $0x8a8] sm:$0xff]  ;;  %v524_v6 = vld [vmem:[%s4919_s1 + $0x558] sm:$0xff] }
 0x11a   :  { %1280 = vmatpush.msrb.mxu1 %v604_v31  ;;  %1246 = vmatpush.msrb.mxu2 %v528_v55  ;;  %v564_v31 = vld [vmem:[%s4919_s1 + $0x698] sm:$0xff]  ;;  %v598_v37 = vld [vmem:[%s4919_s1 + $0x7a8] sm:$0xff] }
 0x11b   :  { %1262 = vmatpush.msrb.mxu0 %v568_v38  ;;  %1302 = vmatpush.msrb.mxu3 %v632_v15  ;;  %v628_v55 = vld [vmem:[%s4919_s1 + $0x898] sm:$0xff]  ;;  %v522_v38 = vld [vmem:[%s4919_s1 + $0x548] sm:$0xff] }
 0x11c   :  { %1281 = vmatpush.msrb.mxu1 %v602_v1  ;;  %1247 = vmatpush.msrb.mxu2 %v526_v0  ;;  %v562_v1 = vld [vmem:[%s4919_s1 + $0x688] sm:$0xff]  ;;  %v596_v15 = vld [vmem:[%s4919_s1 + $0x798] sm:$0xff] }
 0x11d   :  { %1263 = vmatpush.msrb.mxu0 %v566_v19  ;;  %1303 = vmatpush.msrb.mxu3 %v630_v34  ;;  %v626_v0 = vld [vmem:[%s4919_s1 + $0x888] sm:$0xff]  ;;  %v520_v19 = vld [vmem:[%s4919_s1 + $0x538] sm:$0xff] }
 0x11e   :  { %1282 = vmatpush.msrb.mxu1 %v600_v40  ;;  %1248 = vmatpush.msrb.mxu2 %v524_v6  ;;  %v560_v40 = vld [vmem:[%s4919_s1 + $0x678] sm:$0xff]  ;;  %v594_v34 = vld [vmem:[%s4919_s1 + $0x788] sm:$0xff] }
 0x11f   :  { %1264 = vmatpush.msrb.mxu0 %v564_v31  ;;  %1304 = vmatpush.msrb.mxu3 %v628_v55  ;;  %v624_v6 = vld [vmem:[%s4919_s1 + $0x878] sm:$0xff]  ;;  %v518_v31 = vld [vmem:[%s4919_s1 + $0x528] sm:$0xff] }
 0x120   :  { %1283 = vmatpush.msrb.mxu1 %v598_v37  ;;  %1249 = vmatpush.msrb.mxu2 %v522_v38  ;;  %v558_v37 = vld [vmem:[%s4919_s1 + $0x668] sm:$0xff]  ;;  %v592_v55 = vld [vmem:[%s4919_s1 + $0x778] sm:$0xff] }
 0x121   :  { %1265 = vmatpush.msrb.mxu0 %v562_v1  ;;  %1305 = vmatpush.msrb.mxu3 %v626_v0  ;;  %v622_v38 = vld [vmem:[%s4919_s1 + $0x868] sm:$0xff]  ;;  %v516_v1 = vld [vmem:[%s4919_s1 + $0x518] sm:$0xff] }
 0x122   :  { %1284 = vmatpush.msrb.mxu1 %v596_v15  ;;  %1250 = vmatpush.msrb.mxu2 %v520_v19  ;;  %v556_v15 = vld [vmem:[%s4919_s1 + $0x658] sm:$0xff]  ;;  %v590_v0 = vld [vmem:[%s4919_s1 + $0x768] sm:$0xff] }
 0x123   :  { %1266 = vmatpush.msrb.mxu0 %v560_v40  ;;  %1306 = vmatpush.msrb.mxu3 %v624_v6  ;;  %v620_v19 = vld [vmem:[%s4919_s1 + $0x858] sm:$0xff]  ;;  %v514_v40 = vld [vmem:[%s4919_s1 + $0x508] sm:$0xff] }
 0x124   :  { %1285 = vmatpush.msrb.mxu1 %v594_v34  ;;  %1251 = vmatpush.msrb.mxu2 %v518_v31  ;;  %v554_v34 = vld [vmem:[%s4919_s1 + $0x648] sm:$0xff]  ;;  %v588_v6 = vld [vmem:[%s4919_s1 + $0x758] sm:$0xff] }
 0x125   :  { %1267 = vmatpush.msrb.mxu0 %v558_v37  ;;  %1307 = vmatpush.msrb.mxu3 %v622_v38  ;;  %v618_v31 = vld [vmem:[%s4919_s1 + $0x848] sm:$0xff]  ;;  %v672_v37 = vld [vmem:[%s4919_s1 + $0x9f8] sm:$0xff] }
 0x126   :  { %1286 = vmatpush.msrb.mxu1 %v592_v55  ;;  %1252 = vmatpush.msrb.mxu2 %v516_v1  ;;  %v552_v55 = vld [vmem:[%s4919_s1 + $0x638] sm:$0xff]  ;;  %v586_v38 = vld [vmem:[%s4919_s1 + $0x748] sm:$0xff] }
 0x127   :  { %1268 = vmatpush.msrb.mxu0 %v556_v15  ;;  %1308 = vmatpush.msrb.mxu3 %v620_v19  ;;  %v616_v1 = vld [vmem:[%s4919_s1 + $0x838] sm:$0xff]  ;;  %v670_v15 = vld [vmem:[%s4919_s1 + $0x9e8] sm:$0xff] }
 0x128   :  { %1287 = vmatpush.msrb.mxu1 %v590_v0  ;;  %1253 = vmatpush.msrb.mxu2 %v514_v40  ;;  %v550_v0 = vld [vmem:[%s4919_s1 + $0x628] sm:$0xff]  ;;  %v584_v19 = vld [vmem:[%s4919_s1 + $0x738] sm:$0xff] }
 0x129   :  { %1269 = vmatpush.msrb.mxu0 %v554_v34  ;;  %1309 = vmatpush.msrb.mxu3 %v618_v31  ;;  %v614_v40 = vld [vmem:[%s4919_s1 + $0x828] sm:$0xff]  ;;  %v548_v34 = vld [vmem:[%s4919_s1 + $0x618] sm:$0xff] }
 0x12a   :  { %1288 = vmatpush.msrb.mxu1 %v588_v6  ;;  %1174 = vmatmul.f32.vlgmr.msra.gmra.mxu2 %v3385_v21  ;;  %v668_v21 = vld [vmem:[%s4919_s1 + $0x9d8] sm:$0xff]  ;;  %v582_v6 = vld [vmem:[%s4919_s1 + $0x728] sm:$0xff] }
 0x12b   :  { %1318 = vmatpush.msra.mxu2 %v672_v37  ;;  %1270 = vmatpush.msrb.mxu0 %v552_v55  ;;  %v612_v31 = vld [vmem:[%s4919_s1 + $0x818] sm:$0xff]  ;;  %v666_v37 = vld [vmem:[%s4919_s1 + $0x9c8] sm:$0xff] }
 0x12c   :  { %1289 = vmatpush.msrb.mxu1 %v586_v38  ;;  %1310 = vmatpush.msrb.mxu3 %v616_v1  ;;  %v546_v55 = vld [vmem:[%s4919_s1 + $0x608] sm:$0xff]  ;;  %v580_v38 = vld [vmem:[%s4919_s1 + $0x718] sm:$0xff] }
 0x12d   :  { %1319 = vmatpush.msra.mxu2 %v670_v15  ;;  %1271 = vmatpush.msrb.mxu0 %v550_v0  ;;  %v610_v1 = vld [vmem:[%s4919_s1 + $0x808] sm:$0xff]  ;;  %v704_v15 = vld [vmem:[%s4919_s1 + $0xaf8] sm:$0xff] }
 0x12e   :  { %1290 = vmatpush.msrb.mxu1 %v584_v19  ;;  %1311 = vmatpush.msrb.mxu3 %v614_v40  ;;  %v664_v0 = vld [vmem:[%s4919_s1 + $0x9b8] sm:$0xff]  ;;  %v578_v40 = vld [vmem:[%s4919_s1 + $0x708] sm:$0xff] }
 0x12f   :  { %1320 = vmatpush.msra.mxu2 %v668_v21  ;;  %1272 = vmatpush.msrb.mxu0 %v548_v34  ;;  %v768_v19 = vld [vmem:[%s4919_s1 + $0xcf8] sm:$0xff]  ;;  %v702_v21 = vld [vmem:[%s4919_s1 + $0xae8] sm:$0xff] }
 0x130   :  { %1291 = vmatpush.msrb.mxu1 %v582_v6  ;;  %1312 = vmatpush.msrb.mxu3 %v612_v31  ;;  %v662_v34 = vld [vmem:[%s4919_s1 + $0x9a8] sm:$0xff]  ;;  %v736_v6 = vld [vmem:[%s4919_s1 + $0xbf8] sm:$0xff] }
 0x131   :  { %1234 = vmatmul.f32.vlgmr.msra.gmra.mxu3 %v3442_v2  ;;  %1321 = vmatpush.msra.mxu2 %v666_v37  ;;  %v2185_v2 = vld [vmem:[%s4918_s0 + $0x10] sm:$0xff]  ;;  %v766_v31 = vld [vmem:[%s4919_s1 + $0xce8] sm:$0xff]  ;;  %v700_v37 = vld [vmem:[%s4919_s1 + $0xad8] sm:$0xff] }
 0x132   :  { %1273 = vmatpush.msrb.mxu0 %v546_v55  ;;  %1292 = vmatpush.msrb.mxu1 %v580_v38  ;;  %v2186_v55 = vld [vmem:[%s4918_s0 + $0x18] sm:$0xff]  ;;  %v734_v38 = vld [vmem:[%s4919_s1 + $0xbe8] sm:$0xff] }
 0x133   :  { %1313 = vmatpush.msrb.mxu3 %v610_v1  ;;  %1194 = vmatmul.f32.vlgmr.msra.gmra.mxu0 %v2185_v2  ;;  %v764_v1 = vld [vmem:[%s4919_s1 + $0xcd8] sm:$0xff]  ;;  %v762_v2 = vld [vmem:[%s4919_s1 + $0xcc8] sm:$0xff] }
 0x134   :  { %1254 = vmatmul.f32.vlgmr.msrb.gmra.mxu2 %v3463_v36  ;;  %1338 = vmatpush.msra.mxu0 %v704_v15  ;;  %v660_v36 = vld [vmem:[%s4919_s1 + $0x998] sm:$0xff]  ;;  %v658_v15 = vld [vmem:[%s4919_s1 + $0x988] sm:$0xff] }
 0x135   :  { %1322 = vmatpush.msra.mxu2 %v664_v0  ;;  %1378 = vmatpush.msra.mxu3 %v768_v19  ;;  %v698_v0 = vld [vmem:[%s4919_s1 + $0xac8] sm:$0xff]  ;;  %v732_v19 = vld [vmem:[%s4919_s1 + $0xbd8] sm:$0xff] }
 0x136   :  { %1293 = vmatpush.msrb.mxu1 %v578_v40  ;;  %1339 = vmatpush.msra.mxu0 %v702_v21  ;;  %v656_v40 = vld [vmem:[%s4919_s1 + $0x978] sm:$0xff] }
 0x137   :  { %1214 = vmatmul.f32.vlgmr.msra.gmra.mxu1 %v2186_v55  ;;  %1323 = vmatpush.msra.mxu2 %v662_v34  ;;  %v696_v21 = vld [vmem:[%s4919_s1 + $0xab8] sm:$0xff]  ;;  %v730_v34 = vld [vmem:[%s4919_s1 + $0xbc8] sm:$0xff] }
 0x138   :  { %1358 = vmatpush.msra.mxu1 %v736_v6  ;;  %1379 = vmatpush.msra.mxu3 %v766_v31  ;;  %v760_v6 = vld [vmem:[%s4919_s1 + $0xcb8] sm:$0xff]  ;;  %v654_v31 = vld [vmem:[%s4919_s1 + $0x968] sm:$0xff] }
 0x139   :  { %1324 = vmatpush.msra.mxu2 %v660_v36  ;;  %1340 = vmatpush.msra.mxu0 %v700_v37  ;;  %v694_v36 = vld [vmem:[%s4919_s1 + $0xaa8] sm:$0xff]  ;;  %v728_v37 = vld [vmem:[%s4919_s1 + $0xbb8] sm:$0xff] }
 0x13a   :  { %1359 = vmatpush.msra.mxu1 %v734_v38  ;;  %1380 = vmatpush.msra.mxu3 %v764_v1  ;;  %v758_v55 = vld [vmem:[%s4919_s1 + $0xca8] sm:$0xff]  ;;  %v652_v38 = vld [vmem:[%s4919_s1 + $0x958] sm:$0xff] }
 0x13b   :  { %1314 = vmatmul.f32.vlgmr.msrb.gmra.mxu3 %v3589_v33  ;;  %1325 = vmatpush.msra.mxu2 %v658_v15  ;;  %v2187_v33 = vld [vmem:[%s4918_s0 + $0x30] sm:$0xff]  ;;  %v2188_v1 = vld [vmem:[%s4918_s0 + $0x38] sm:$0xff] }
 0x13c   :  { %1341 = vmatpush.msra.mxu0 %v698_v0  ;;  %1360 = vmatpush.msra.mxu1 %v732_v19  ;;  %v692_v15 = vld [vmem:[%s4919_s1 + $0xa98] sm:$0xff]  ;;  %v726_v0 = vld [vmem:[%s4919_s1 + $0xba8] sm:$0xff] }
 0x13d   :  { %1381 = vmatpush.msra.mxu3 %v762_v2  ;;  %1274 = vmatmul.f32.vlgmr.msrb.gmra.mxu0 %v2187_v33  ;;  %v756_v19 = vld [vmem:[%s4919_s1 + $0xc98] sm:$0xff]  ;;  %v650_v2 = vld [vmem:[%s4919_s1 + $0x948] sm:$0xff] }
 0x13e   :  { %1326 = vmatpush.msra.mxu2 %v656_v40  ;;  %1342 = vmatpush.msra.mxu0 %v696_v21  ;;  %v826_v40 = vstv %s4926_s8  ;;  %v855_v21 = vpop.f32.mrf.mxu0  ;;  %v754_v33 = vld [vmem:[%s4919_s1 + $0xc88] sm:$0xff] }
 0x13f   :  { %1361 = vmatpush.msra.mxu1 %v730_v34  ;;  %1382 = vmatpush.msra.mxu3 %v760_v6  ;;  %v690_v34 = vld [vmem:[%s4919_s1 + $0xa88] sm:$0xff]  ;;  %v724_v6 = vld [vmem:[%s4919_s1 + $0xb98] sm:$0xff] }
 0x140   :  { %1294 = vmatmul.f32.vlgmr.msrb.gmra.mxu1 %v2188_v1  ;;  %1327 = vmatpush.msra.mxu2 %v654_v31  ;;  %v648_v31 = vld [vmem:[%s4919_s1 + $0x938] sm:$0xff]  ;;  %v646_v1 = vld [vmem:[%s4919_s1 + $0x928] sm:$0xff] }
 0x141   :  { %1343 = vmatpush.msra.mxu0 %v694_v36  ;;  %1362 = vmatpush.msra.mxu1 %v728_v37  ;;  %v688_v36 = vld [vmem:[%s4919_s1 + $0xa78] sm:$0xff]  ;;  %v722_v37 = vld [vmem:[%s4919_s1 + $0xb88] sm:$0xff] }
 0x142   :  { %1383 = vmatpush.msra.mxu3 %v758_v55  ;;  %1328 = vmatpush.msra.mxu2 %v652_v38  ;;  %v856_v55 = vadd.f32 %v855_v21, %v826_v40  ;;  %v752_v38 = vld [vmem:[%s4919_s1 + $0xc78] sm:$0xff] }
 0x143   :  { %1344 = vmatpush.msra.mxu0 %v692_v15  ;;  %1363 = vmatpush.msra.mxu1 %v726_v0  ;;  %v875_v15 = vpop.f32.mrf.mxu1  ;;  %v686_v0 = vld [vmem:[%s4919_s1 + $0xa68] sm:$0xff]  ;;  %v644_v21 = vld [vmem:[%s4919_s1 + $0x918] sm:$0xff] }
 0x144   :  { %1384 = vmatpush.msra.mxu3 %v756_v19  ;;  %1329 = vmatpush.msra.mxu2 %v650_v2  ;;  %v720_v19 = vld [vmem:[%s4919_s1 + $0xb78] sm:$0xff]  ;;  %v750_v2 = vld [vmem:[%s4919_s1 + $0xc68] sm:$0xff] }
 0x145   :  { %1345 = vmatpush.msra.mxu0 %v690_v34  ;;  %1364 = vmatpush.msra.mxu1 %v724_v6  ;;  %v684_v34 = vld [vmem:[%s4919_s1 + $0xa58] sm:$0xff]  ;;  %v718_v6 = vld [vmem:[%s4919_s1 + $0xb68] sm:$0xff] }
 0x146   :  { %1385 = vmatpush.msra.mxu3 %v754_v33  ;;  %1330 = vmatpush.msra.mxu2 %v648_v31  ;;  %v876_v33 = vadd.f32 %v875_v15, %v856_v55  ;;  %v748_v31 = vld [vmem:[%s4919_s1 + $0xc58] sm:$0xff] }
 0x147   :  { %1346 = vmatpush.msra.mxu0 %v688_v36  ;;  %1365 = vmatpush.msra.mxu1 %v722_v37  ;;  %v642_v36 = vld [vmem:[%s4919_s1 + $0x908] sm:$0xff]  ;;  %v895_v37 = vpop.f32.mrf.mxu2  ;;  %v716_v55 = vld [vmem:[%s4919_s1 + $0xb58] sm:$0xff] }
 0x148   :  { %1386 = vmatpush.msra.mxu3 %v752_v38  ;;  %1331 = vmatpush.msra.mxu2 %v646_v1  ;;  %v682_v38 = vld [vmem:[%s4919_s1 + $0xa48] sm:$0xff]  ;;  %v800_v15 = vld [vmem:[%s4919_s1 + $0xdf8] sm:$0xff] }
 0x149   :  { %1347 = vmatpush.msra.mxu0 %v686_v0  ;;  %1366 = vmatpush.msra.mxu1 %v720_v19  ;;  %v746_v1 = vld [vmem:[%s4919_s1 + $0xc48] sm:$0xff]  ;;  %v680_v0 = vld [vmem:[%s4919_s1 + $0xa38] sm:$0xff]  ;;  %v896_v19 = vadd.f32 %v895_v37, %v876_v33 }
 0x14a   :  { %1387 = vmatpush.msra.mxu3 %v750_v2  ;;  %1332 = vmatpush.msra.mxu2 %v644_v21  ;;  %v714_v2 = vld [vmem:[%s4919_s1 + $0xb48] sm:$0xff]  ;;  %v744_v21 = vld [vmem:[%s4919_s1 + $0xc38] sm:$0xff] }
 0x14b   :  { %1348 = vmatpush.msra.mxu0 %v684_v34  ;;  %1367 = vmatpush.msra.mxu1 %v718_v6  ;;  %v915_v34 = vpop.f32.mrf.mxu3  ;;  %v798_v6 = vld [vmem:[%s4919_s1 + $0xde8] sm:$0xff]  ;;  %v676_v37 = vld [vmem:[%s4919_s1 + $0xa18] sm:$0xff] }
 0x14c   :  { %1388 = vmatpush.msra.mxu3 %v748_v31  ;;  %1333 = vmatpush.msra.mxu2 %v642_v36  ;;  %v678_v33 = vld [vmem:[%s4919_s1 + $0xa28] sm:$0xff]  ;;  %v712_v31 = vld [vmem:[%s4919_s1 + $0xb38] sm:$0xff] }
 0x14d   :  { %1349 = vmatpush.msra.mxu0 %v682_v38  ;;  %1368 = vmatpush.msra.mxu1 %v716_v55  ;;  %v742_v36 = vld [vmem:[%s4919_s1 + $0xc28] sm:$0xff]  ;;  %v916_v38 = vadd.f32 %v915_v34, %v896_v19 }
 0x14e   :  { %1389 = vmatpush.msra.mxu3 %v746_v1  ;;  %1334 = vmatmul.f32.vlgmr.msra.gmra.mxu2 %v3613_v3  ;;  %v796_v3 = vld [vmem:[%s4919_s1 + $0xdd8] sm:$0xff]  ;;  %v710_v55 = vld [vmem:[%s4919_s1 + $0xb28] sm:$0xff] }
 0x14f   :  { %1398 = vmatpush.msrb.mxu2 %v800_v15  ;;  %1350 = vmatpush.msra.mxu0 %v680_v0  ;;  %v740_v1 = vld [vmem:[%s4919_s1 + $0xc18] sm:$0xff]  ;;  %v935_v15 = vpop.f32.mrf.mxu0  ;;  %v794_v0 = vld [vmem:[%s4919_s1 + $0xdc8] sm:$0xff] }
 0x150   :  { %1369 = vmatpush.msra.mxu1 %v714_v2  ;;  %1390 = vmatpush.msra.mxu3 %v744_v21  ;;  %v674_v19 = vld [vmem:[%s4919_s1 + $0xa08] sm:$0xff]  ;;  %v708_v2 = vld [vmem:[%s4919_s1 + $0xb18] sm:$0xff]  ;;  %v936_v34 = vadd.f32 %v935_v15, %v916_v38  ;;  %v975_v15 = vpop.f32.mrf.mxu2 }
 0x151   :  { %1399 = vmatpush.msrb.mxu2 %v798_v6  ;;  %1351 = vmatpush.msra.mxu0 %v678_v33  ;;  %v738_v21 = vld [vmem:[%s4919_s1 + $0xc08] sm:$0xff]  ;;  %v792_v6 = vld [vmem:[%s4919_s1 + $0xdb8] sm:$0xff] }
 0x152   :  { %1370 = vmatpush.msra.mxu1 %v712_v31  ;;  %1391 = vmatpush.msra.mxu3 %v742_v36  ;;  %v706_v33 = vld [vmem:[%s4919_s1 + $0xb08] sm:$0xff]  ;;  %v955_v31 = vpop.f32.mrf.mxu1  ;;  %v824_v36 = vld [vmem:[%s4919_s1 + $0xeb8] sm:$0x7f] }
 0x153   :  { %1400 = vmatpush.msrb.mxu2 %v796_v3  ;;  %1352 = vmatpush.msra.mxu0 %v676_v37  ;;  %v2189_v3 = vld [vmem:[%s4918_s0 + $0x50] sm:$0xff]  ;;  %v790_v37 = vld [vmem:[%s4919_s1 + $0xda8] sm:$0xff] }
 0x154   :  { %1371 = vmatpush.msra.mxu1 %v710_v55  ;;  %1392 = vmatpush.msra.mxu3 %v740_v1  ;;  %v822_v38 = vld [vmem:[%s4919_s1 + $0xea8] sm:$0xff]  ;;  %v956_v55 = vadd.f32 %v955_v31, %v936_v34  ;;  %v2190_v1 = vld [vmem:[%s4918_s0 + $0x58] sm:$0xff]  ;;  %s2196_s0 = smov 16  }
 0x155   :  { %1401 = vmatpush.msrb.mxu2 %v794_v0  ;;  %1353 = vmatpush.msra.mxu0 %v674_v19  ;;  %v820_v0 = vld [vmem:[%s4919_s1 + $0xe98] sm:$0xff]  ;;  %v786_v19 = vld [vmem:[%s4919_s1 + $0xd88] sm:$0xff] }
 0x156   :  { %1372 = vmatpush.msra.mxu1 %v708_v2  ;;  %1393 = vmatpush.msra.mxu3 %v738_v21  ;;  %v818_v2 = vld [vmem:[%s4919_s1 + $0xe88] sm:$0xff]  ;;  %v976_v21 = vadd.f32 %v975_v15, %v956_v55  ;;  %v784_v34 = vld [vmem:[%s4919_s1 + $0xd78] sm:$0xff] }
 0x157   :  { %1354 = vmatmul.f32.vlgmr.msra.gmra.mxu0 %v2189_v3  ;;  %1394 = vmatmul.f32.vlgmr.msra.gmra.mxu3 %v3807_v35  ;;  %v788_v35 = vld [vmem:[%s4919_s1 + $0xd98] sm:$0xff]  ;;  %v782_v31 = vld [vmem:[%s4919_s1 + $0xd68] sm:$0xff] }
 0x158   :  { %1402 = vmatpush.msrb.mxu2 %v792_v6  ;;  %1373 = vmatpush.msra.mxu1 %v706_v33  ;;  %v995_v6 = vpop.f32.mrf.mxu3  ;;  %v816_v33 = vld [vmem:[%s4919_s1 + $0xe78] sm:$0xff]  ;;  %v814_v3 = vld [vmem:[%s4919_s1 + $0xe68] sm:$0xff] }
 0x159   :  { %1374 = vmatmul.f32.vlgmr.msra.gmra.mxu1 %v2190_v1  ;;  %2160 = vmatpush.msk.msrb.mxu0 %vm831_vm0, %v824_v36  ;;  %v1015_v36 = vpop.f32.mrf.mxu0  ;;  %v812_v55 = vld [vmem:[%s4919_s1 + $0xe58] sm:$0xff] }
 0x15a   :  { %1403 = vmatpush.msrb.mxu2 %v790_v37  ;;  %v996_v37 = vadd.f32 %v995_v6, %v976_v21  ;;  %v1035_v15 = vpop.f32.mrf.mxu1  ;;  %v808_v21 = vld [vmem:[%s4919_s1 + $0xe38] sm:$0xff]  ;;  %v774_v6 = vld [vmem:[%s4919_s1 + $0xd28] sm:$0xff] }
 0x15b   :  { %1423 = vmatpush.msrb.mxu0 %v822_v38  ;;  %v780_v38 = vld [vmem:[%s4919_s1 + $0xd58] sm:$0xff] }
 0x15c   :  { %1404 = vmatpush.msrb.mxu2 %v788_v35  ;;  %v1016_v1 = vadd.f32 %v1015_v36, %v996_v37  ;;  %v778_v35 = vld [vmem:[%s4919_s1 + $0xd48] sm:$0xff]  ;;  %v772_v36 = vld [vmem:[%s4919_s1 + $0xd18] sm:$0xff] }
 0x15d   :  { %1424 = vmatpush.msrb.mxu0 %v820_v0  ;;  %v810_v0 = vld [vmem:[%s4919_s1 + $0xe48] sm:$0xff]  ;;  %v804_v37 = vld [vmem:[%s4919_s1 + $0xe18] sm:$0xff] }
 0x15e   :  { %1405 = vmatpush.msrb.mxu2 %v786_v19  ;;  %v776_v19 = vld [vmem:[%s4919_s1 + $0xd38] sm:$0xff] }
 0x15f   :  { %1425 = vmatpush.msrb.mxu0 %v818_v2  ;;  %v1055_v2 = vpop.f32.mrf.mxu2 }
 0x160   :  { %1406 = vmatpush.msrb.mxu2 %v784_v34  ;;  %v1036_v34 = vadd.f32 %v1035_v15, %v1016_v1 }
 0x161   :  { %1426 = vmatpush.msrb.mxu0 %v816_v33  ;;  %v806_v33 = vld [vmem:[%s4919_s1 + $0xe28] sm:$0xff] }
 0x162   :  { %1407 = vmatpush.msrb.mxu2 %v782_v31  ;;  %v1056_v31 = vadd.f32 %v1055_v2, %v1036_v34 }
 0x163   :  { %1427 = vmatpush.msrb.mxu0 %v814_v3  ;;  %v1075_v3 = vpop.f32.mrf.mxu3 }
 0x164   :  { %1408 = vmatpush.msrb.mxu2 %v780_v38  ;;  %v770_v38 = vld [vmem:[%s4919_s1 + $0xd08] sm:$0xff]  ;;  %v1076_v1 = vadd.f32 %v1075_v3, %v1056_v31 }
 0x165   :  { %1428 = vmatpush.msrb.mxu0 %v812_v55  ;;  %v802_v55 = vld [vmem:[%s4919_s1 + $0xe08] sm:$0xff]  ;;  %s2193_s1 = smov 127  }
 0x166   :  { %1409 = vmatpush.msrb.mxu2 %v778_v35 }
 0x167   :  { %1429 = vmatpush.msrb.mxu0 %v810_v0 }
 0x168   :  { %1410 = vmatpush.msrb.mxu2 %v776_v19 }
 0x169   :  { %1430 = vmatpush.msrb.mxu0 %v808_v21 }
 0x16a   :  { %1411 = vmatpush.msrb.mxu2 %v774_v6 }
 0x16b   :  { %1431 = vmatpush.msrb.mxu0 %v806_v33 }
 0x16c   :  { %1412 = vmatpush.msrb.mxu2 %v772_v36 }
 0x16d   :  { %1432 = vmatpush.msrb.mxu0 %v804_v37 }
 0x16e   :  { %1413 = vmatpush.msrb.mxu2 %v770_v38  ;;  %v1095_v35 = vpop.f32.mrf.mxu0 }
 0x16f   :  { %1414 = vmatmul.f32.vlgmr.msrb.gmra.mxu2 %v3828_v4  ;;  %1433 = vmatpush.msrb.mxu0 %v802_v55  ;;  %v1096_v15 = vadd.f32 %v1095_v35, %v1076_v1 }
 0x170   :  { %2161 = vmatmul.msk.f32.vlgmr.msrb.gmra.mxu0 %vm827_vm1, %v3788_v32  ;;  %vm1585_vm1 = vcmask 588800  }
 0x171   :  { %v1115_v0 = vpop.f32.mrf.mxu1  ;;  %v1135_v19 = vpop.f32.mrf.mxu2  ;;  %1849 = vmatpush.msra.mxu0 %v2570_v62 }
 0x172   :  { %v1116_v2 = vadd.f32 %v1115_v0, %v1096_v15 }
 0x174   :  { %v1136_v21 = vadd.f32 %v1135_v19, %v1116_v2 }
 0x176   :  { %v1438_v34 = vsub.f32 0.0, %v1136_v21 }
 0x178   :  { %v1440_v6 = vmul.f32 1.442695, %v1438_v34 }
 0x17a   :  { %2177 = vpow2.f32 %v1440_v6 }
 0x180   :  { %v2178_v33 = vpop.eup %2177 }
 0x181   :  { %v1444_v36 = vadd.f32 1.0, %v2178_v33 }
 0x183   :  { %2179 = vrcp.f32 %v1444_v36  ;;  %v1457_v38 = vand.u32 2147483648, %v1444_v36  ;;  %v1455_v55 = vand.u32 2147483647, %v1444_v36  ;;  %vm1451_vm3 = vweird.f32 %v1444_v36 }
 0x185   :  { %v1458_v32 = vor.u32 1.1754944e-38, %v1457_v38  ;;  %vm1456_vm5 = vcmp.eq.f32.partialorder %v1455_v55, 8.507059e+37 }
 0x189   :  { %v2180_v31 = vpop.eup %2179 }
 0x18a   :  { %v1447_v3 = vmul.f32 %v2180_v31, %v1444_v36  ;;  %vm1452_vm2 = vweird.f32 %v2180_v31 }
 0x18b   :  { %vm1453_vm4 = vmor %vm1451_vm3, %vm1452_vm2 }
 0x18c   :  { %v1448_v37 = vsub.f32 1.0, %v1447_v3 }
 0x18e   :  { %v1449_v4 = vmul.f32 %v2180_v31, %v1448_v37 }
 0x190   :  { %v1450_v1 = vadd.f32 %v2180_v31, %v1449_v4 }
 0x192   :  { %v1454_v35 = vsel %vm1453_vm4, %v2180_v31, %v1450_v1 }
 0x193   :  { %v4503_v15 = vsel %vm1456_vm5, %v1458_v32, %v1454_v35 }
 0x194   :  { %1478 = vrot.lane.b32.xlu1 %v4503_v15, %s2193_s1 }
 0x195   :  { %v1155_v0 = vpop.f32.mrf.mxu3 }
 0x196   :  { %v1156_v19 = vadd.f32 %v1155_v0, %v826_v40 }
 0x19c   :  { %1488 = vrot.lane.b32.xlu1 %v4503_v15, %s2194_s22 }
 0x1ad   :  { %v1175_v2 = vpop.f32.mrf.mxu2 }
 0x1ae   :  { %v1176_v21 = vadd.f32 %v1175_v2, %v1156_v19 }
 0x1b0   :  { %v1195_v34 = vpop.f32.mrf.mxu0 }
 0x1b1   :  { %v1196_v6 = vadd.f32 %v1195_v34, %v1176_v21 }
 0x1b4   :  { %v1215_v33 = vpop.f32.mrf.mxu1  ;;  %v1235_v31 = vpop.f32.mrf.mxu3 }
 0x1b5   :  { %v1216_v36 = vadd.f32 %v1215_v33, %v1196_v6 }
 0x1b7   :  { %v1236_v3 = vadd.f32 %v1235_v31, %v1216_v36  ;;  %v1255_v37 = vpop.f32.mrf.mxu2 }
 0x1b9   :  { %v1256_v38 = vadd.f32 %v1255_v37, %v1236_v3  ;;  %v1513_v37 = vld [vmem:[%s4920_s2 + $0x78] sm:$0xff] }
 0x1ba   :  { %v1275_v4 = vpop.f32.mrf.mxu0  ;;  %1533 = vmatpush.msrb.mxu1 %v1513_v37 }
 0x1bb   :  { %v1276_v55 = vadd.f32 %v1275_v4, %v1256_v38  ;;  %v1522_v38 = vld [vmem:[%s4920_s2 + $0xc0] sm:$0xff] }
 0x1bd   :  { %v1295_v1 = vpop.f32.mrf.mxu1 }
 0x1be   :  { %v1296_v32 = vadd.f32 %v1295_v1, %v1276_v55  ;;  %v1315_v35 = vpop.f32.mrf.mxu3  ;;  %v1510_v55 = vld [vmem:[%s4920_s2 + $0x60] sm:$0xff] }
 0x1c0   :  { %v1316_v57 = vadd.f32 %v1315_v35, %v1296_v32  ;;  %v1521_v32 = vld [vmem:[%s4920_s2 + $0xb8] sm:$0xff] }
 0x1c1   :  { %v1509_v35 = vld [vmem:[%s4920_s2 + $0x58] sm:$0xff] }
 0x1d1   :  { %v1335_v8 = vpop.f32.mrf.mxu2 }
 0x1d2   :  { %v1336_v39 = vadd.f32 %v1335_v8, %v1316_v57  ;;  %v1512_v8 = vld [vmem:[%s4920_s2 + $0x70] sm:$0xff]  ;;  %v1523_v57 = vld [vmem:[%s4920_s2 + $0xc8] sm:$0xff] }
 0x1d3   :  { %1534 = vmatpush.msrb.mxu1 %v1512_v8 }
 0x1d4   :  { %v1355_v42 = vpop.f32.mrf.mxu0 }
 0x1d5   :  { %v1356_v40 = vadd.f32 %v1355_v42, %v1336_v39  ;;  %v1524_v39 = vld [vmem:[%s4920_s2 + $0xd0] sm:$0x3f]  ;;  %v1511_v42 = vld [vmem:[%s4920_s2 + $0x68] sm:$0xff] }
 0x1d6   :  { %v1375_v0 = vpop.f32.mrf.mxu1  ;;  %2162 = vmatpush.msk.msrb.mxu3 %vm1529_vm6, %v1524_v39  ;;  %1535 = vmatpush.msrb.mxu1 %v1511_v42 }
 0x1d7   :  { %v1376_v2 = vadd.f32 %v1375_v0, %v1356_v40  ;;  %v1520_v40 = vld [vmem:[%s4920_s2 + $0xb0] sm:$0xff] }
 0x1d8   :  { %1559 = vmatpush.msrb.mxu3 %v1523_v57  ;;  %1536 = vmatpush.msrb.mxu1 %v1510_v55  ;;  %v1508_v0 = vld [vmem:[%s4920_s2 + $0x50] sm:$0xff]  ;;  %v1518_v55 = vld [vmem:[%s4920_s2 + $0xa0] sm:$0xff] }
 0x1da   :  { %v1395_v19 = vpop.f32.mrf.mxu3  ;;  %1560 = vmatpush.msrb.mxu3 %v1522_v38  ;;  %1537 = vmatpush.msrb.mxu1 %v1509_v35  ;;  %v1501_v35 = vld [vmem:[%s4920_s2 + $0x18] sm:$0xff] }
 0x1db   :  { %v1396_v21 = vadd.f32 %v1395_v19, %v1376_v2  ;;  %v1519_v19 = vld [vmem:[%s4920_s2 + $0xa8] sm:$0xff] }
 0x1dc   :  { %1561 = vmatpush.msrb.mxu3 %v1521_v32  ;;  %v1507_v2 = vld [vmem:[%s4920_s2 + $0x48] sm:$0xff]  ;;  %1538 = vmatpush.msrb.mxu1 %v1508_v0  ;;  %v1517_v32 = vld [vmem:[%s4920_s2 + $0x98] sm:$0xff]  ;;  %v1500_v0 = vld [vmem:[%s4920_s2 + $0x10] sm:$0xff] }
 0x1de   :  { %1562 = vmatpush.msrb.mxu3 %v1520_v40  ;;  %1539 = vmatpush.msrb.mxu1 %v1507_v2  ;;  %v1516_v40 = vld [vmem:[%s4920_s2 + $0x90] sm:$0xff]  ;;  %v1499_v2 = vld [vmem:[%s4920_s2 + $0x8] sm:$0xff] }
 0x1e0   :  { %1563 = vmatpush.msrb.mxu3 %v1519_v19  ;;  %v1515_v19 = vld [vmem:[%s4920_s2 + $0x88] sm:$0xff] }
 0x1e2   :  { %1564 = vmatpush.msrb.mxu3 %v1518_v55 }
 0x1e4   :  { %1565 = vmatpush.msrb.mxu3 %v1517_v32 }
 0x1e6   :  { %1566 = vmatpush.msrb.mxu3 %v1516_v40 }
 0x1e8   :  { %1567 = vmatpush.msrb.mxu3 %v1515_v19 }
 0x1ed   :  { %v1435_v6 = vpop.f32.mrf.mxu0 }
 0x1f2   :  { %v1415_v34 = vpop.f32.mrf.mxu2 }
 0x1f3   :  { %v1416_v33 = vadd.f32 %v1415_v34, %v1396_v21  ;;  %v1506_v21 = vld [vmem:[%s4920_s2 + $0x40] sm:$0xff] }
 0x1f4   :  { %1540 = vmatpush.msrb.mxu1 %v1506_v21  ;;  %v1514_v21 = vld [vmem:[%s4920_s2 + $0x80] sm:$0xff] }
 0x1f5   :  { %v1436_v36 = vadd.f32 %v1435_v6, %v1416_v33  ;;  %v1505_v33 = vld [vmem:[%s4920_s2 + $0x38] sm:$0xff]  ;;  %1568 = vmatpush.msrb.mxu3 %v1514_v21 }
 0x1f6   :  { %1541 = vmatpush.msrb.mxu1 %v1505_v33 }
 0x1f7   :  { %v1439_v31 = vsub.f32 0.0, %v1436_v36  ;;  %1829 = vmatpush.msra.mxu3 %v2410_v30 }
 0x1f9   :  { %v1442_v3 = vmul.f32 1.442695, %v1439_v31  ;;  %v1504_v31 = vld [vmem:[%s4920_s2 + $0x30] sm:$0xff] }
 0x1fa   :  { %1542 = vmatpush.msrb.mxu1 %v1504_v31 }
 0x1fb   :  { %2181 = vpow2.f32 %v1442_v3 }
 0x201   :  { %v2182_v4 = vpop.eup %2181 }
 0x202   :  { %v1445_v1 = vadd.f32 1.0, %v2182_v4  ;;  %v1503_v4 = vld [vmem:[%s4920_s2 + $0x28] sm:$0xff] }
 0x203   :  { %1543 = vmatpush.msrb.mxu1 %v1503_v4  ;;  %v1573_v4 = vlaneseq }
 0x204   :  { %2183 = vrcp.f32 %v1445_v1  ;;  %v1472_v3 = vand.u32 2147483648, %v1445_v1  ;;  %v1470_v8 = vand.u32 2147483647, %v1445_v1  ;;  %vm1466_vm8 = vweird.f32 %v1445_v1 }
 0x205   :  { %vm1575_vm14 = vcmp.lt.s32.totalorder %v1573_v4, 72  ;;  %vm1588_vm15 = vcmp.ge.s32.totalorder %v1573_v4, 72  ;;  %vm1589_vm0 = vcmp.lt.s32.totalorder %v1573_v4, 144  ;;  %vm1598_vm3 = vcmp.ge.s32.totalorder %v1573_v4, 16 }
 0x206   :  { %v1473_v42 = vor.u32 1.1754944e-38, %v1472_v3  ;;  %vm1471_vm10 = vcmp.eq.f32.partialorder %v1470_v8, 8.507059e+37  ;;  %vm1590_vm2 = vmand %vm1588_vm15, %vm1589_vm0  ;;  %vm1599_vm4 = vcmp.lt.s32.totalorder %v1573_v4, 88  ;;  %vm1611_vm5 = vcmp.ge.s32.totalorder %v1573_v4, 88 }
 0x207   :  { %vm1612_vm6 = vcmp.lt.s32.totalorder %v1573_v4, 160  ;;  %vm1631_vm15 = vcmask 850944  }
 0x20a   :  { %v2184_v34 = vpop.eup %2183 }
 0x20b   :  { %v1462_v6 = vmul.f32 %v2184_v34, %v1445_v1  ;;  %vm1467_vm7 = vweird.f32 %v2184_v34  ;;  %v1502_v1 = vld [vmem:[%s4920_s2 + $0x20] sm:$0xff] }
 0x20c   :  { %vm1468_vm9 = vmor %vm1466_vm8, %vm1467_vm7  ;;  %1544 = vmatpush.msrb.mxu1 %v1502_v1  ;;  %vm1621_vm7 = vcmp.ge.s32.totalorder %v1573_v4, 32  ;;  %vm1622_vm8 = vcmp.lt.s32.totalorder %v1573_v4, 104 }
 0x20d   :  { %v1463_v36 = vsub.f32 1.0, %v1462_v6  ;;  %v1479_v6 = vpop.permute.xlu1 %1478 }
 0x20e   :  { %1545 = vmatpush.msrb.mxu1 %v1501_v35 }
 0x20f   :  { %v1464_v37 = vmul.f32 %v2184_v34, %v1463_v36 }
 0x210   :  { %1546 = vmatpush.msrb.mxu1 %v1500_v0 }
 0x211   :  { %v1465_v39 = vadd.f32 %v2184_v34, %v1464_v37 }
 0x212   :  { %1547 = vmatpush.msrb.mxu1 %v1499_v2 }
 0x213   :  { %v1469_v57 = vsel %vm1468_vm9, %v2184_v34, %v1465_v39  ;;  %v1498_v34 = vld [vmem:[%s4920_s2] sm:$0xff]  ;;  %s2195_s2 = smov 72   ;;  %vm1608_vm9 = vcmask 719872  }
 0x214   :  { %v1474_v38 = vsel %vm1471_vm10, %v1473_v42, %v1469_v57  ;;  %1548 = vmatpush.msrb.mxu1 %v1498_v34  ;;  %vm1600_vm10 = vmand %vm1598_vm3, %vm1599_vm4  ;;  %vm1657_vm4 = vcmp.ge.s32.totalorder %v1573_v4, 120 }
 0x215   :  { %1480 = vrot.lane.b32.xlu0 %v1474_v38, %s2193_s1  ;;  %v1489_v3 = vpop.permute.xlu1 %1488 }
 0x21d   :  { %1490 = vrot.lane.b32.xlu0 %v1474_v38, %s2194_s22 }
 0x287   :  { %v1481_v33 = vpop.permute.xlu0 %1480 }
 0x288   :  { %v1483_v36 = vsel %vm1482_vm11, %v1479_v6, %v1481_v33  ;;  %v1487_v31 = vmax.f32 %v1474_v38, %v1481_v33  ;;  %vm1613_vm11 = vmand %vm1611_vm5, %vm1612_vm6  ;;  %vm1658_vm5 = vcmp.lt.s32.totalorder %v1573_v4, 192  ;;  %vm1654_vm6 = vcmask 982016  }
 0x289   :  { %v1486_v37 = vmax.f32 %v4503_v15, %v1483_v36 }
 0x28f   :  { %v1491_v8 = vpop.permute.xlu0 %1490 }
 0x290   :  { %v1493_v39 = vsel %vm1492_vm12, %v1489_v3, %v1491_v8  ;;  %v1497_v42 = vmax.f32 %v1487_v31, %v1491_v8  ;;  %vm1623_vm12 = vmand %vm1621_vm7, %vm1622_vm8 }
 0x291   :  { %v1496_v57 = vmax.f32 %v1486_v37, %v1493_v39  ;;  %vm1659_vm7 = vmand %vm1657_vm4, %vm1658_vm5 }
 0x292   :  { %2163 = vmatmul.msk.f32.vlgmr.msrb.gmra.mxu3 %vm1525_vm13, %v1497_v42  ;;  %vm1634_vm13 = vcmp.ge.s32.totalorder %v1573_v4, 104 }
 0x293   :  { %1549 = vmatmul.f32.vlgmr.msrb.gmra.mxu1 %v1496_v57 }
 0x310   :  { %v1550_v55 = vpop.f32.mrf.mxu1 }
 0x315   :  { %v1570_v1 = vpop.f32.mrf.mxu3 }
 0x316   :  { %v1571_v32 = vadd.f32 %v1570_v1, %v1550_v55 }
 0x318   :  { %1579 = vst [vmem:[#allocation1] sm:$0xff] %v1571_v32 }
 0x319   :  { %1577 = vst.msk [vmem:[#allocation2] sm:$0x1] %vm1575_vm14, %v1571_v32  ;;  %vm1635_vm14 = vcmp.lt.s32.totalorder %v1573_v4, 176 }
 0x31a   :  { %vm1636_vm0 = vmand %vm1634_vm13, %vm1635_vm14 }
 0x31f   :  { %v1581_v35 = vld [vmem:[#allocation1 + $0x1] ss:$9 sm:$0xff] }
 0x320   :  { %1582 = vrot.lane.b32.xlu2 %v1581_v35, %s2195_s2  ;;  %1592 = vst [vmem:[#allocation1] sm:$0xff] %v1571_v32 }
 0x327   :  { %v1594_v15 = vld [vmem:[#allocation1 + $0x2] ss:$9 sm:$0xff] }
 0x328   :  { %1595 = vrot.lane.b32.xlu0 %v1594_v15, %s2196_s0  ;;  %1602 = vst [vmem:[#allocation1] sm:$0xff] %v1571_v32 }
 0x32f   :  { %v1604_v38 = vld [vmem:[#allocation1 + $0x3] ss:$9 sm:$0xff] }
 0x330   :  { %1605 = vrot.lane.b32.xlu2 %v1604_v38, %s2197_s11  ;;  %1615 = vst [vmem:[#allocation1] sm:$0xff] %v1571_v32 }
 0x337   :  { %v1617_v40 = vld [vmem:[#allocation1 + $0x4] ss:$9 sm:$0xff] }
 0x338   :  { %1618 = vrot.lane.b32.xlu2 %v1617_v40, %s2198_s12  ;;  %1625 = vst [vmem:[#allocation1] sm:$0xff] %v1571_v32 }
 0x33f   :  { %v1627_v0 = vld [vmem:[#allocation1 + $0x5] ss:$9 sm:$0xff] }
 0x340   :  { %1628 = vrot.lane.b32.xlu1 %v1627_v0, %s2199_s13  ;;  %1638 = vst [vmem:[#allocation1] sm:$0xff] %v1571_v32 }
 0x347   :  { %v1640_v19 = vld [vmem:[#allocation1 + $0x6] ss:$9 sm:$0xff] }
 0x348   :  { %1641 = vrot.lane.b32.xlu1 %v1640_v19, %s2200_s14  ;;  %1648 = vst [vmem:[#allocation1] sm:$0xff] %v1571_v32 }
 0x34f   :  { %v1650_v2 = vld [vmem:[#allocation1 + $0x7] ss:$9 sm:$0xff] }
 0x350   :  { %1651 = vrot.lane.b32.xlu0 %v1650_v2, %s2201_s15 }
 0x37a   :  { %v1583_v21 = vpop.permute.xlu2 %1582 }
 0x37b   :  { %v1584_v34 = vrot.slane %v1583_v21, 7 }
 0x37d   :  { %v1586_v6 = vsel %vm1585_vm1, %v1584_v34, %v1583_v21  ;;  %vm1644_vm1 = vcmp.ge.s32.totalorder %v1573_v4, 48 }
 0x37e   :  { %1591 = vst.msk [vmem:[#allocation2] sm:$0x3] %vm1590_vm2, %v1586_v6  ;;  %vm1645_vm2 = vcmp.lt.s32.totalorder %v1573_v4, 120 }
 0x37f   :  { %vm1646_vm3 = vmand %vm1644_vm1, %vm1645_vm2 }
 0x38a   :  { %v1606_v33 = vpop.permute.xlu2 %1605 }
 0x38b   :  { %v1607_v36 = vrot.slane %v1606_v33, 7 }
 0x38d   :  { %v1609_v3 = vsel %vm1608_vm9, %v1607_v36, %v1606_v33 }
 0x392   :  { %v1619_v37 = vpop.permute.xlu2 %1618 }
 0x39a   :  { %v1596_v31 = vpop.permute.xlu0 %1595 }
 0x39b   :  { %1601 = vst.msk [vmem:[#allocation2 + $0x1] sm:$0x1] %vm1600_vm10, %v1596_v31 }
 0x39c   :  { %1614 = vst.msk [vmem:[#allocation2 + $0x1] sm:$0x3] %vm1613_vm11, %v1609_v3 }
 0x39d   :  { %1624 = vst.msk [vmem:[#allocation2 + $0x2] sm:$0x1] %vm1623_vm12, %v1619_v37 }
 0x3b2   :  { %v1629_v8 = vpop.permute.xlu1 %1628 }
 0x3b3   :  { %v1630_v39 = vrot.slane %v1629_v8, 7 }
 0x3b5   :  { %v1632_v42 = vsel %vm1631_vm15, %v1630_v39, %v1629_v8 }
 0x3b6   :  { %1637 = vst.msk [vmem:[#allocation2 + $0x2] sm:$0x3] %vm1636_vm0, %v1632_v42 }
 0x3ba   :  { %v1642_v57 = vpop.permute.xlu1 %1641 }
 0x3bb   :  { %1647 = vst.msk [vmem:[#allocation2 + $0x3] sm:$0x1] %vm1646_vm3, %v1642_v57 }
 0x3c2   :  { %v1652_v55 = vpop.permute.xlu0 %1651 }
 0x3c3   :  { %v1653_v1 = vrot.slane %v1652_v55, 7 }
 0x3c5   :  { %v1655_v32 = vsel %vm1654_vm6, %v1653_v1, %v1652_v55 }
 0x3c6   :  { %1660 = vst.msk [vmem:[#allocation2 + $0x3] sm:$0x3] %vm1659_vm7, %v1655_v32 }
 0x3c7   :  { %2191 = dma.done.wait [#allocation4], 18432 }
 0x3c8   :  { %2192 = vsyncadd [#allocation4], 4294948864  ;;  %1869 = vmatpush.msra.mxu2 %v2730_v49  ;;  %1889 = vmatpush.msra.mxu1 %v2890_v29  ;;  %v5049_v29 = vld [vmem:[#allocation53_spill] sm:$0xff]  ;;  %v5050_v30 = vld [vmem:[#allocation75_spill] sm:$0xff]  ;;  %vm1826_vm8 = vcmask 523264  }
 0x3c9   :  { %1830 = vmatpush.msra.mxu3 %v2400_v28  ;;  %1850 = vmatpush.msra.mxu0 %v2560_v60  ;;  %v5058_v49 = vld [vmem:[#allocation50_spill] sm:$0xff]  ;;  %v5065_v60 = vld [vmem:[#allocation25_spill] sm:$0xff]  ;;  %v5069_v4 = vld [vmem:[#allocation71_spill] sm:$0xff] }
 0x3ca   :  { %1870 = vmatpush.msra.mxu2 %v2720_v13  ;;  %1890 = vmatpush.msra.mxu1 %v2880_v63  ;;  %v5035_v13 = vld [vmem:[#allocation16_spill] sm:$0xff]  ;;  %v5067_v62 = vld [vmem:[#allocation101_spill] sm:$0xff]  ;;  %v5070_v15 = vld [vmem:[#allocation99_spill] sm:$0xff] }
 0x3cb   :  { %1831 = vmatpush.msra.mxu3 %v2390_v26  ;;  %1851 = vmatpush.msra.mxu0 %v2550_v58  ;;  %v5047_v26 = vld [vmem:[#allocation10_spill] sm:$0xff]  ;;  %v5063_v58 = vld [vmem:[#allocation72_spill] sm:$0xff]  ;;  %v5071_v38 = vld [vmem:[#allocation47_spill] sm:$0xff] }
 0x3cc   :  { %1871 = vmatpush.msra.mxu2 %v2710_v47  ;;  %1891 = vmatpush.msra.mxu1 %v2870_v53  ;;  %v5056_v47 = vld [vmem:[#allocation107_spill] sm:$0xff]  ;;  %v5061_v53 = vld [vmem:[#allocation26_spill] sm:$0xff]  ;;  %v5068_v63 = vld [vmem:[#allocation24_spill] sm:$0xff] }
 0x3cd   :  { %1832 = vmatpush.msra.mxu3 %v2380_v24  ;;  %1852 = vmatpush.msra.mxu0 %v2540_v56  ;;  %v5045_v24 = vld [vmem:[#allocation55_spill] sm:$0xff]  ;;  %v5073_v0 = vld [vmem:[#allocation70_spill] sm:$0xff]  ;;  %v5074_v19 = vld [vmem:[#allocation97_spill] sm:$0xff] }
 0x3ce   :  { %1872 = vmatpush.msra.mxu2 %v2700_v11  ;;  %1892 = vmatpush.msra.mxu1 %v2860_v27  ;;  %v5034_v11 = vld [vmem:[#allocation83_spill] sm:$0xff]  ;;  %v5075_v2 = vld [vmem:[#allocation46_spill] sm:$0xff]  ;;  %v5078_v33 = vld [vmem:[#allocation45_spill] sm:$0xff] }
 0x3cf   :  { %1833 = vmatpush.msra.mxu3 %v2370_v22  ;;  %1853 = vmatpush.msra.mxu0 %v2530_v54  ;;  %v5043_v22 = vld [vmem:[#allocation12_spill] sm:$0xff]  ;;  %v5048_v27 = vld [vmem:[#allocation31_spill] sm:$0xff]  ;;  %v5062_v54 = vld [vmem:[#allocation49_spill] sm:$0xff] }
 0x3d0   :  { %1873 = vmatpush.msra.mxu2 %v2690_v45  ;;  %1893 = vmatpush.msra.mxu1 %v2850_v61  ;;  %v5054_v45 = vld [vmem:[#allocation28_spill] sm:$0xff]  ;;  %v5072_v40 = vld [vmem:[#allocation23_spill] sm:$0xff]  ;;  %v5076_v34 = vld [vmem:[#allocation22_spill] sm:$0xff] }
 0x3d1   :  { %1834 = vmatpush.msra.mxu3 %v2360_v20  ;;  %1854 = vmatpush.msra.mxu0 %v2520_v52  ;;  %v4664_v20 = vld [vmem:[#allocation2] sm:$0x1f]  ;;  %v5060_v52 = vld [vmem:[#allocation105_spill] sm:$0xff]  ;;  %v5066_v61 = vld [vmem:[#allocation48_spill] sm:$0xff] }
 0x3d2   :  { %1874 = vmatpush.msra.mxu2 %v2680_v9  ;;  %1894 = vmatpush.msra.mxu1 %v2840_v17  ;;  %v5033_v9 = vld [vmem:[#allocation61_spill] sm:$0xff]  ;;  %v5039_v17 = vld [vmem:[#allocation14_spill] sm:$0xff]  ;;  %v1812_v28 = vperm.slane %v4664_v20, 0  ;;  %v1814_v56 = vperm.slane %v4664_v20, 2  ;;  %v1815_v35 = vperm.slane %v4664_v20, 3  ;;  %v1816_v21 = vperm.slane %v4664_v20, 4 }
 0x3d3   :  { %1835 = vmatpush.msra.mxu3 %v2350_v18  ;;  %1855 = vmatpush.msra.mxu0 %v2510_v50  ;;  %v5041_v18 = vld [vmem:[#allocation57_spill] sm:$0xff]  ;;  %v5077_v6 = vld [vmem:[#allocation95_spill] sm:$0xff]  ;;  %v5079_v36 = vld [vmem:[#allocation94_spill] sm:$0xff] }
 0x3d4   :  { %1875 = vmatpush.msra.mxu2 %v2670_v43  ;;  %1895 = vmatpush.msra.mxu1 %v2830_v25  ;;  %v5046_v25 = vld [vmem:[#allocation77_spill] sm:$0xff]  ;;  %v5081_v3 = vld [vmem:[#allocation44_spill] sm:$0xff]  ;;  %v5084_v39 = vld [vmem:[#allocation43_spill] sm:$0xff] }
 0x3d5   :  { %1836 = vmatpush.msra.mxu3 %v2340_v16  ;;  %1856 = vmatpush.msra.mxu0 %v2500_v48  ;;  %v5037_v16 = vld [vmem:[#allocation59_spill] sm:$0xff]  ;;  %v5052_v43 = vld [vmem:[#allocation29_spill] sm:$0xff]  ;;  %v5083_v8 = vld [vmem:[#allocation20_spill] sm:$0xff] }
 0x3d6   :  { %1876 = vmatpush.msra.mxu2 %v2660_v7  ;;  %1896 = vmatpush.msra.mxu1 %v2820_v59  ;;  %v5032_v7 = vld [vmem:[#allocation39_spill] sm:$0xff]  ;;  %v5059_v50 = vld [vmem:[#allocation73_spill] sm:$0xff]  ;;  %v5086_v57 = vld [vmem:[#allocation92_spill] sm:$0xff] }
 0x3d7   :  { %1837 = vmatpush.msra.mxu3 %v2330_v14  ;;  %1857 = vmatpush.msra.mxu0 %v2490_v46  ;;  %v5036_v14 = vld [vmem:[#allocation37_spill] sm:$0xff]  ;;  %v5055_v46 = vld [vmem:[#allocation51_spill] sm:$0xff]  ;;  %v5088_v1 = vld [vmem:[#allocation42_spill] sm:$0xff] }
 0x3d8   :  { %1877 = vmatpush.msra.mxu2 %v2650_v41  ;;  %1897 = vmatpush.msra.mxu1 %v2810_v23  ;;  %v5044_v23 = vld [vmem:[#allocation33_spill] sm:$0xff]  ;;  %v5051_v41 = vld [vmem:[#allocation8_spill] sm:$0xff]  ;;  %v5057_v48 = vld [vmem:[#allocation27_spill] sm:$0xff] }
 0x3d9   :  { %1838 = vmatpush.msra.mxu3 %v2320_v12  ;;  %1858 = vmatpush.msra.mxu0 %v2480_v44  ;;  %v5038_v12 = vld [vmem:[#allocation81_spill] sm:$0xff]  ;;  %v5064_v59 = vld [vmem:[#allocation103_spill] sm:$0xff]  ;;  %v5089_v32 = vld [vmem:[#allocation68_spill] sm:$0xff] }
 0x3da   :  { %1878 = vmatpush.msra.mxu2 %v2640_v5  ;;  %1898 = vmatpush.msra.mxu1 %v2800_v51  ;;  %v5040_v5 = vld [vmem:[#allocation35_spill] sm:$0xff]  ;;  %v5053_v44 = vld [vmem:[#allocation109_spill] sm:$0xff]  ;;  %v1813_v51 = vperm.slane %v4664_v20, 1 }
 0x3db   :  { %1839 = vmatpush.msra.mxu3 %v2310_v10  ;;  %1859 = vmatpush.msra.mxu0 %v5032_v7  ;;  %v5042_v10 = vld [vmem:[#allocation79_spill] sm:$0xff]  ;;  %v5080_v31 = vld [vmem:[#allocation21_spill] sm:$0xff] }
 0x3dc   :  { %1879 = vmatpush.msra.mxu2 %v5033_v9  ;;  %1899 = vmatpush.msra.mxu1 %v5034_v11  ;;  %v5082_v37 = vld [vmem:[#allocation93_spill] sm:$0xff]  ;;  %v5087_v55 = vld [vmem:[#allocation19_spill] sm:$0xff]  ;;  %v5091_v9 = vld [vmem:[#allocation18_spill] sm:$0xff] }
 0x3dd   :  { %1840 = vmatpush.msra.mxu3 %v5035_v13  ;;  %1860 = vmatpush.msra.mxu0 %v5036_v14  ;;  %v5085_v42 = vld [vmem:[#allocation69_spill] sm:$0xff]  ;;  %v5090_v7 = vld [vmem:[#allocation91_spill] sm:$0xff]  ;;  %v5094_v14 = vld [vmem:[#allocation90_spill] sm:$0xff] }
 0x3de   :  { %1880 = vmatpush.msra.mxu2 %v5037_v16  ;;  %1900 = vmatpush.msra.mxu1 %v5038_v12  ;;  %v5092_v11 = vld [vmem:[#allocation41_spill] sm:$0xff]  ;;  %v5093_v13 = vld [vmem:[#allocation67_spill] sm:$0xff]  ;;  %v5096_v12 = vld [vmem:[#allocation40_spill] sm:$0xff] }
 0x3df   :  { %1841 = vmatpush.msra.mxu3 %v5039_v17  ;;  %1861 = vmatpush.msra.mxu0 %v5040_v5  ;;  %v5095_v16 = vld [vmem:[#allocation17_spill] sm:$0xff]  ;;  %v5097_v17 = vld [vmem:[#allocation66_spill] sm:$0xff] }
 0x3e0   :  { %1881 = vmatpush.msra.mxu2 %v5041_v18  ;;  %1901 = vmatpush.msra.mxu1 %v5042_v10  ;;  %v5098_v5 = vld [vmem:[#allocation89_spill] sm:$0xff]  ;;  %v5099_v18 = vld [vmem:[#allocation15_spill] sm:$0xff]  ;;  %v5100_v10 = vld [vmem:[#allocation38_spill] sm:$0xff] }
 0x3e1   :  { %1842 = vmatpush.msra.mxu3 %v5043_v22  ;;  %1862 = vmatpush.msra.mxu0 %v5044_v23  ;;  %v5101_v22 = vld [vmem:[#allocation65_spill] sm:$0xff]  ;;  %v5102_v23 = vld [vmem:[#allocation88_spill] sm:$0xff] }
 0x3e2   :  { %1882 = vmatpush.msra.mxu2 %v5045_v24  ;;  %1902 = vmatpush.msra.mxu1 %v5046_v25  ;;  %v5103_v24 = vld [vmem:[#allocation13_spill] sm:$0xff]  ;;  %v5104_v25 = vld [vmem:[#allocation36_spill] sm:$0xff] }
 0x3e3   :  { %1843 = vmatpush.msra.mxu3 %v5047_v26  ;;  %1863 = vmatpush.msra.mxu0 %v5048_v27  ;;  %v5105_v26 = vld [vmem:[#allocation64_spill] sm:$0xff]  ;;  %v5106_v27 = vld [vmem:[#allocation87_spill] sm:$0xff] }
 0x3e4   :  { %1883 = vmatpush.msra.mxu2 %v5049_v29  ;;  %1903 = vmatpush.msra.mxu1 %v5050_v30  ;;  %v5107_v29 = vld [vmem:[#allocation11_spill] sm:$0xff]  ;;  %v5108_v30 = vld [vmem:[#allocation34_spill] sm:$0xff]  ;;  %v2041_v20 = vld [vmem:[%s4922_s4 + $0x30] sm:$0xff] }
 0x3e5   :  { %1844 = vmatpush.msra.mxu3 %v5051_v41  ;;  %1864 = vmatpush.msra.mxu0 %v5052_v43  ;;  %v5109_v41 = vld [vmem:[#allocation63_spill] sm:$0xff]  ;;  %v5110_v43 = vld [vmem:[#allocation86_spill] sm:$0xff] }
 0x3e6   :  { %1884 = vmatpush.msra.mxu2 %v5055_v46  ;;  %1845 = vmatmul.f32.vlgmr.msra.gmra.mxu3 %v1812_v28  ;;  %v5113_v46 = vld [vmem:[#allocation62_spill] sm:$0xff] }
 0x3e7   :  { %1917 = vmatpush.msrb.mxu3 %v5053_v44  ;;  %1929 = vmatpush.msrb.mxu0 %v5054_v45  ;;  %v5111_v44 = vld [vmem:[#allocation9_spill] sm:$0xff]  ;;  %v5112_v45 = vld [vmem:[#allocation32_spill] sm:$0xff] }
 0x3e8   :  { %1949 = vmatpush.msrb.mxu2 %v5058_v49  ;;  %1904 = vmatpush.msra.mxu1 %v5059_v50  ;;  %v5116_v49 = vld [vmem:[#allocation30_spill] sm:$0xff]  ;;  %v5117_v50 = vld [vmem:[#allocation60_spill] sm:$0xff] }
 0x3e9   :  { %1918 = vmatpush.msrb.mxu3 %v5056_v47  ;;  %1930 = vmatpush.msrb.mxu0 %v5057_v48  ;;  %v5114_v47 = vld [vmem:[#allocation85_spill] sm:$0xff]  ;;  %v5115_v48 = vld [vmem:[#allocation110_spill] sm:$0xff] }
 0x3ea   :  { %1950 = vmatpush.msrb.mxu2 %v5062_v54  ;;  %1969 = vmatpush.msrb.mxu1 %v5063_v58  ;;  %v5120_v54 = vld [vmem:[#allocation58_spill] sm:$0xff] }
 0x3eb   :  { %1919 = vmatpush.msrb.mxu3 %v5060_v52  ;;  %1931 = vmatpush.msrb.mxu0 %v5061_v53  ;;  %v5118_v52 = vld [vmem:[#allocation84_spill] sm:$0xff]  ;;  %v5121_v58 = vld [vmem:[#allocation82_spill] sm:$0xff] }
 0x3ec   :  { %1951 = vmatpush.msrb.mxu2 %v5066_v61  ;;  %1865 = vmatmul.f32.vlgmr.msra.gmra.mxu0 %v1813_v51  ;;  %v5119_v53 = vld [vmem:[#allocation108_spill] sm:$0xff] }
 0x3ed   :  { %1920 = vmatpush.msrb.mxu3 %v5064_v59  ;;  %1932 = vmatpush.msrb.mxu0 %v5065_v60  ;;  %v5122_v59 = vld [vmem:[#allocation106_spill] sm:$0xff]  ;;  %v5123_v61 = vld [vmem:[#allocation56_spill] sm:$0xff] }
 0x3ee   :  { %1885 = vmatmul.f32.vlgmr.msra.gmra.mxu2 %v1814_v56  ;;  %1970 = vmatpush.msrb.mxu1 %v5069_v4  ;;  %v2050_v60 = vld [vmem:[%s4922_s4 + $0x78] sm:$0xff] }
 0x3ef   :  { %1921 = vmatpush.msrb.mxu3 %v5067_v62  ;;  %1933 = vmatpush.msrb.mxu0 %v5068_v63  ;;  %v5124_v62 = vld [vmem:[#allocation80_spill] sm:$0xff]  ;;  %v5126_v4 = vld [vmem:[#allocation54_spill] sm:$0xff] }
 0x3f0   :  { %1952 = vmatpush.msrb.mxu2 %v5071_v38  ;;  %1971 = vmatpush.msrb.mxu1 %v5073_v0  ;;  %v5125_v63 = vld [vmem:[#allocation104_spill] sm:$0xff]  ;;  %v5128_v38 = vld [vmem:[#allocation102_spill] sm:$0xff] }
 0x3f1   :  { %1922 = vmatpush.msrb.mxu3 %v5070_v15  ;;  %1934 = vmatpush.msrb.mxu0 %v5072_v40  ;;  %v5127_v15 = vld [vmem:[#allocation78_spill] sm:$0xff]  ;;  %v2048_v40 = vld [vmem:[%s4922_s4 + $0x68] sm:$0xff] }
 0x3f2   :  { %1953 = vmatpush.msrb.mxu2 %v5075_v2  ;;  %1905 = vmatmul.f32.vlgmr.msra.gmra.mxu1 %v1815_v35  ;;  %v5130_v0 = vld [vmem:[#allocation76_spill] sm:$0xff]  ;;  %v2047_v2 = vld [vmem:[%s4922_s4 + $0x60] sm:$0xff] }
 0x3f3   :  { %1923 = vmatpush.msrb.mxu3 %v5074_v19  ;;  %1935 = vmatpush.msrb.mxu0 %v5076_v34  ;;  %v5131_v19 = vld [vmem:[#allocation100_spill] sm:$0xff]  ;;  %v5132_v34 = vld [vmem:[#allocation74_spill] sm:$0xff] }
 0x3f4   :  { %1954 = vmatpush.msrb.mxu2 %v5078_v33  ;;  %1972 = vmatpush.msrb.mxu1 %v5085_v42  ;;  %v2046_v33 = vld [vmem:[%s4922_s4 + $0x58] sm:$0xff] }
 0x3f5   :  { %1924 = vmatpush.msrb.mxu3 %v5077_v6  ;;  %1936 = vmatpush.msrb.mxu0 %v5080_v31  ;;  %v5133_v6 = vld [vmem:[#allocation98_spill] sm:$0xff]  ;;  %v2045_v31 = vld [vmem:[%s4922_s4 + $0x50] sm:$0xff] }
 0x3f6   :  { %2164 = vmatmul.msk.f32.vlgmr.msrb.gmra.mxu3 %vm1826_vm8, %v1816_v21  ;;  %1955 = vmatpush.msrb.mxu2 %v5081_v3  ;;  %v2042_v3 = vld [vmem:[%s4922_s4 + $0x38] sm:$0xff] }
 0x3f7   :  { %1989 = vmatpush.msra.mxu3 %v5079_v36  ;;  %1937 = vmatpush.msrb.mxu0 %v5083_v8  ;;  %v5134_v36 = vld [vmem:[#allocation96_spill] sm:$0xff]  ;;  %v2038_v8 = vld [vmem:[%s4922_s4 + $0x18] sm:$0xff] }
 0x3f8   :  { %1956 = vmatpush.msrb.mxu2 %v5084_v39  ;;  %1973 = vmatpush.msrb.mxu1 %v5089_v32  ;;  %v2037_v39 = vld [vmem:[%s4922_s4 + $0x10] sm:$0xff]  ;;  %v2066_v42 = vld [vmem:[%s4922_s4 + $0xf8] sm:$0xff]  ;;  %v2064_v32 = vld [vmem:[%s4922_s4 + $0xe8] sm:$0xff] }
 0x3f9   :  { %1990 = vmatpush.msra.mxu3 %v5082_v37  ;;  %1938 = vmatpush.msrb.mxu0 %v5087_v55  ;;  %v2039_v37 = vld [vmem:[%s4922_s4 + $0x20] sm:$0xff]  ;;  %v2065_v55 = vld [vmem:[%s4922_s4 + $0xf0] sm:$0xff] }
 0x3fa   :  { %1957 = vmatpush.msrb.mxu2 %v5088_v1  ;;  %1974 = vmatpush.msrb.mxu1 %v5093_v13  ;;  %v2035_v1 = vld [vmem:[%s4922_s4] sm:$0xff]  ;;  %v2061_v13 = vld [vmem:[%s4922_s4 + $0xd0] sm:$0xff] }
 0x3fb   :  { %1991 = vmatpush.msra.mxu3 %v5086_v57  ;;  %1939 = vmatpush.msrb.mxu0 %v5091_v9  ;;  %v2036_v57 = vld [vmem:[%s4922_s4 + $0x8] sm:$0xff]  ;;  %v2062_v9 = vld [vmem:[%s4922_s4 + $0xd8] sm:$0xff] }
 0x3fc   :  { %1958 = vmatpush.msrb.mxu2 %v5092_v11  ;;  %1975 = vmatpush.msrb.mxu1 %v5097_v17  ;;  %v1810_v11 = vld [vmem:[%s4921_s3] sm:$0x3] }
 0x3fd   :  { %1992 = vmatpush.msra.mxu3 %v5090_v7  ;;  %1940 = vmatpush.msrb.mxu0 %v5095_v16  ;;  %v2063_v7 = vld [vmem:[%s4922_s4 + $0xe0] sm:$0xff]  ;;  %v1822_v16 = vperm.slane %v1810_v11, 0 }
 0x3fe   :  { %1959 = vmatpush.msrb.mxu2 %v5096_v12  ;;  %1976 = vmatpush.msrb.mxu1 %v5101_v22  ;;  %v2059_v12 = vld [vmem:[%s4922_s4 + $0xc0] sm:$0xff]  ;;  %v2057_v22 = vld [vmem:[%s4922_s4 + $0xb0] sm:$0xff] }
 0x3ff   :  { %1993 = vmatpush.msra.mxu3 %v5094_v14  ;;  %1941 = vmatpush.msrb.mxu0 %v5099_v18  ;;  %v2060_v14 = vld [vmem:[%s4922_s4 + $0xc8] sm:$0xff] }
 0x400   :  { %1960 = vmatpush.msrb.mxu2 %v5100_v10  ;;  %1977 = vmatpush.msrb.mxu1 %v5105_v26 }
 0x401   :  { %1994 = vmatpush.msra.mxu3 %v5098_v5  ;;  %1942 = vmatpush.msrb.mxu0 %v5103_v24  ;;  %v2058_v5 = vld [vmem:[%s4922_s4 + $0xb8] sm:$0xff] }
 0x402   :  { %1961 = vmatpush.msrb.mxu2 %v5104_v25  ;;  %1978 = vmatpush.msrb.mxu1 %v5109_v41  ;;  %v2055_v25 = vld [vmem:[%s4922_s4 + $0xa0] sm:$0xff]  ;;  %v2054_v41 = vld [vmem:[%s4922_s4 + $0x98] sm:$0xff] }
 0x403   :  { %1995 = vmatpush.msra.mxu3 %v5102_v23  ;;  %1943 = vmatpush.msrb.mxu0 %v5107_v29  ;;  %v2056_v23 = vld [vmem:[%s4922_s4 + $0xa8] sm:$0xff] }
 0x404   :  { %1962 = vmatpush.msrb.mxu2 %v5108_v30  ;;  %1979 = vmatpush.msrb.mxu1 %v5113_v46  ;;  %v2052_v46 = vld [vmem:[%s4922_s4 + $0x88] sm:$0xff] }
 0x405   :  { %1996 = vmatpush.msra.mxu3 %v5106_v27  ;;  %1944 = vmatpush.msrb.mxu0 %v5111_v44  ;;  %v2053_v44 = vld [vmem:[%s4922_s4 + $0x90] sm:$0xff] }
 0x406   :  { %1963 = vmatpush.msrb.mxu2 %v5112_v45  ;;  %1980 = vmatpush.msrb.mxu1 %v5117_v50  ;;  %v1823_v50 = vperm.slane %v1810_v11, 1 }
 0x407   :  { %1997 = vmatpush.msra.mxu3 %v5110_v43  ;;  %2017 = vmatpush.msra.mxu0 %v5115_v48  ;;  %v2051_v48 = vld [vmem:[%s4922_s4 + $0x80] sm:$0xff] }
 0x408   :  { %1964 = vmatpush.msrb.mxu2 %v5116_v49  ;;  %1981 = vmatpush.msrb.mxu1 %v5120_v54 }
 0x409   :  { %1998 = vmatpush.msra.mxu3 %v5114_v47  ;;  %2018 = vmatpush.msra.mxu0 %v5119_v53 }
 0x40a   :  { %1965 = vmatmul.f32.vlgmr.msrb.gmra.mxu2 %v1813_v51  ;;  %1982 = vmatpush.msrb.mxu1 %v5123_v61  ;;  %v2049_v51 = vld [vmem:[%s4922_s4 + $0x70] sm:$0xff] }
 0x40b   :  { %1999 = vmatpush.msra.mxu3 %v5118_v52  ;;  %2019 = vmatpush.msra.mxu0 %v5122_v59 }
 0x40c   :  { %1945 = vmatmul.f32.vlgmr.msrb.gmra.mxu0 %v1812_v28  ;;  %1983 = vmatpush.msrb.mxu1 %v5126_v4  ;;  %v5129_v28 = vld [vmem:[#allocation52_spill] sm:$0xff] }
 0x40d   :  { %2000 = vmatpush.msra.mxu3 %v5121_v58  ;;  %2020 = vmatpush.msra.mxu0 %v5125_v63 }
 0x40e   :  { %2068 = vmatpush.msra.mxu2 %v2050_v60  ;;  %1984 = vmatpush.msrb.mxu1 %v5129_v28  ;;  %v2116_v28 = vld [vmem:[%s4924_s6 + $0x28] sm:$0xff] }
 0x40f   :  { %2001 = vmatpush.msra.mxu3 %v5124_v62  ;;  %2021 = vmatpush.msra.mxu0 %v5128_v38  ;;  %v2118_v38 = vld [vmem:[%s4924_s6 + $0x38] sm:$0xff] }
 0x410   :  { %2069 = vmatpush.msra.mxu2 %v2049_v51  ;;  %1985 = vmatmul.f32.vlgmr.msrb.gmra.mxu1 %v1814_v56  ;;  %v2044_v56 = vld [vmem:[%s4922_s4 + $0x48] sm:$0xff] }
 0x411   :  { %2002 = vmatpush.msra.mxu3 %v5127_v15  ;;  %2022 = vmatpush.msra.mxu0 %v5131_v19  ;;  %v2114_v19 = vld [vmem:[%s4924_s6 + $0x18] sm:$0xff] }
 0x412   :  { %2070 = vmatpush.msra.mxu2 %v2048_v40  ;;  %2088 = vmatpush.msra.mxu1 %v2066_v42  ;;  %v2117_v40 = vld [vmem:[%s4924_s6 + $0x30] sm:$0xff] }
 0x413   :  { %2003 = vmatpush.msra.mxu3 %v5130_v0  ;;  %2023 = vmatpush.msra.mxu0 %v5133_v6  ;;  %v2115_v0 = vld [vmem:[%s4924_s6 + $0x20] sm:$0xff] }
 0x414   :  { %2071 = vmatpush.msra.mxu2 %v2047_v2  ;;  %2089 = vmatpush.msra.mxu1 %v2065_v55  ;;  %v2113_v2 = vld [vmem:[%s4924_s6 + $0x10] sm:$0xff]  ;;  %v2111_v6 = vld [vmem:[%s4924_s6] sm:$0xff] }
 0x415   :  { %2004 = vmatpush.msra.mxu3 %v5132_v34  ;;  %2024 = vmatpush.msra.mxu0 %v5134_v36  ;;  %v2112_v34 = vld [vmem:[%s4924_s6 + $0x8] sm:$0xff] }
 0x416   :  { %2005 = vmatmul.f32.vlgmr.msra.gmra.mxu3 %v1815_v35  ;;  %2165 = vmatmul.msk.f32.vlgmr.msra.gmra.mxu0 %vm1826_vm8, %v1816_v21  ;;  %v2043_v35 = vld [vmem:[%s4922_s4 + $0x40] sm:$0xff]  ;;  %v2040_v21 = vld [vmem:[%s4922_s4 + $0x28] sm:$0xff] }
 0x417   :  { %2072 = vmatpush.msra.mxu2 %v2046_v33  ;;  %2090 = vmatpush.msra.mxu1 %v2064_v32  ;;  %v2067_v33 = vld [vmem:[%s4923_s5] sm:$0x1] }
 0x418   :  { %2131 = vmatpush.msrb.mxu3 %v2118_v38 }
 0x419   :  { %2073 = vmatpush.msra.mxu2 %v2045_v31  ;;  %2091 = vmatpush.msra.mxu1 %v2063_v7 }
 0x41a   :  { %2132 = vmatpush.msrb.mxu3 %v2117_v40 }
 0x41b   :  { %2074 = vmatpush.msra.mxu2 %v2044_v56  ;;  %2092 = vmatpush.msra.mxu1 %v2062_v9 }
 0x41c   :  { %2133 = vmatpush.msrb.mxu3 %v2116_v28 }
 0x41d   :  { %2075 = vmatpush.msra.mxu2 %v2043_v35  ;;  %2093 = vmatpush.msra.mxu1 %v2061_v13 }
 0x41e   :  { %2134 = vmatpush.msrb.mxu3 %v2115_v0 }
 0x41f   :  { %2076 = vmatpush.msra.mxu2 %v2042_v3  ;;  %2094 = vmatpush.msra.mxu1 %v2060_v14 }
 0x420   :  { %2135 = vmatpush.msrb.mxu3 %v2114_v19 }
 0x421   :  { %2077 = vmatpush.msra.mxu2 %v2041_v20  ;;  %2095 = vmatpush.msra.mxu1 %v2059_v12 }
 0x422   :  { %2136 = vmatpush.msrb.mxu3 %v2113_v2 }
 0x423   :  { %2078 = vmatpush.msra.mxu2 %v2040_v21  ;;  %2096 = vmatpush.msra.mxu1 %v2058_v5  ;;  %v2119_v21 = vld [vmem:[%s4925_s7] sm:$0x1] }
 0x424   :  { %2137 = vmatpush.msrb.mxu3 %v2112_v34 }
 0x425   :  { %2079 = vmatpush.msra.mxu2 %v2039_v37  ;;  %2097 = vmatpush.msra.mxu1 %v2057_v22 }
 0x426   :  { %2138 = vmatpush.msrb.mxu3 %v2111_v6 }
 0x427   :  { %2080 = vmatpush.msra.mxu2 %v2038_v8  ;;  %2098 = vmatpush.msra.mxu1 %v2056_v23 }
 0x429   :  { %2081 = vmatpush.msra.mxu2 %v2037_v39  ;;  %2099 = vmatpush.msra.mxu1 %v2055_v25 }
 0x42b   :  { %2082 = vmatpush.msra.mxu2 %v2036_v57  ;;  %2100 = vmatpush.msra.mxu1 %v2054_v41 }
 0x42d   :  { %2083 = vmatpush.msra.mxu2 %v2035_v1  ;;  %2101 = vmatpush.msra.mxu1 %v2053_v44 }
 0x42f   :  { %2102 = vmatpush.msra.mxu1 %v2052_v46 }
 0x431   :  { %2103 = vmatpush.msra.mxu1 %v2051_v48 }
 0x469   :  { %v1846_v17 = vpop.f32.mrf.mxu3  ;;  %v1866_v10 = vpop.f32.mrf.mxu0 }
 0x46a   :  { %v1847_v18 = vadd.f32 %v1846_v17, %v1822_v16 }
 0x46c   :  { %v1867_v24 = vadd.f32 %v1866_v10, %v1847_v18 }
 0x46f   :  { %v1906_v29 = vpop.f32.mrf.mxu1 }
 0x471   :  { %v1886_v26 = vpop.f32.mrf.mxu2 }
 0x472   :  { %v1887_v27 = vadd.f32 %v1886_v26, %v1867_v24 }
 0x474   :  { %v1907_v30 = vadd.f32 %v1906_v29, %v1887_v27 }
 0x479   :  { %v1926_v43 = vpop.f32.mrf.mxu3 }
 0x47a   :  { %v1927_v45 = vadd.f32 %v1926_v43, %v1907_v30 }
 0x47c   :  { %vm2029_vm9 = vcmp.gt.f32.partialorder %v1927_v45, 0.0  ;;  %v2031_v47 = vmul.f32 0.01, %v1927_v45 }
 0x47e   :  { %v2033_v49 = vsel %vm2029_vm9, %v1927_v45, %v2031_v47 }
 0x47f   :  { %2084 = vmatmul.f32.vlgmr.msra.gmra.mxu2 %v2033_v49 }
 0x489   :  { %v1946_v52 = vpop.f32.mrf.mxu0 }
 0x48a   :  { %v1947_v53 = vadd.f32 %v1946_v52, %v1823_v50 }
 0x48d   :  { %v1966_v54 = vpop.f32.mrf.mxu2  ;;  %v1986_v59 = vpop.f32.mrf.mxu1 }
 0x48e   :  { %v1967_v58 = vadd.f32 %v1966_v54, %v1947_v53 }
 0x490   :  { %v1987_v60 = vadd.f32 %v1986_v59, %v1967_v58 }
 0x493   :  { %v2026_v62 = vpop.f32.mrf.mxu0 }
 0x499   :  { %v2006_v61 = vpop.f32.mrf.mxu3 }
 0x49a   :  { %v2007_v63 = vadd.f32 %v2006_v61, %v1987_v60 }
 0x49c   :  { %v2027_v51 = vadd.f32 %v2026_v62, %v2007_v63 }
 0x49e   :  { %vm2030_vm10 = vcmp.gt.f32.partialorder %v2027_v51, 0.0  ;;  %v2032_v4 = vmul.f32 0.01, %v2027_v51 }
 0x4a0   :  { %v2034_v15 = vsel %vm2030_vm10, %v2027_v51, %v2032_v4 }
 0x4a1   :  { %2104 = vmatmul.f32.vlgmr.msra.gmra.mxu1 %v2034_v15 }
 0x502   :  { %v2085_v36 = vpop.f32.mrf.mxu2 }
 0x503   :  { %v2086_v31 = vadd.f32 %v2085_v36, %v2067_v33 }
 0x51e   :  { %v2105_v56 = vpop.f32.mrf.mxu1 }
 0x51f   :  { %v2106_v35 = vadd.f32 %v2105_v56, %v2086_v31 }
 0x521   :  { %vm2108_vm11 = vcmp.gt.f32.partialorder %v2106_v35, 0.0  ;;  %v2109_v3 = vmul.f32 0.01, %v2106_v35 }
 0x523   :  { %v2110_v20 = vsel %vm2108_vm11, %v2106_v35, %v2109_v3 }
 0x524   :  { %2166 = vmatmul.msk.f32.vlgmr.msrb.gmra.mxu3 %vm1826_vm8, %v2110_v20 }
 0x5a7   :  { %v2140_v37 = vpop.f32.mrf.mxu3 }
 0x5a8   :  { %v2141_v8 = vadd.f32 %v2140_v37, %v2119_v21 }
 0x5aa   :  { %2143 = vst [vmem:[%s4928_s10] sm:$0x1] %v2141_v8 }
 0x5ab   :  { %2148 = vsyncmov [#allocation4] }
 0x5ae   :  { %s2149_s5 = vpop.sfrf %2148 }
 0x5af   :  { %p2167_p0 = scmp.ne.s32.totalorder %s2149_s5, 0 }
 0x5b1   :  { %2153 = shalt.err (%p2167_p0)  }

</bundles_post_ra>
